<compile_context>
chip_gen: v7x
topology: tpu7x:2x2x1
jax: 0.10.0
libtpu: 0.0.40
codegen_flags: <defaults>
</compile_context>

<pallas_src>
import jax
import jax.numpy as jnp
from jax.experimental import pallas as pl
from jax.experimental.pallas import tpu as pltpu


def _pick_tile(n, cap):
    """Largest divisor of n that is <= cap and a multiple of 128, else n."""
    if n <= cap:
        return n
    t = (cap // 128) * 128
    while t >= 128:
        if n % t == 0:
            return t
        t -= 128
    return n


# --------------------------------------------------------------------------
# Kernel 1: vector quantization
#   distances + argmin + one-hot codebook gather + fused histogram / sq-error
#   z block (D, TN) lane-dense, z_q block (D, TN) lane-dense, tok lane-dense.
# --------------------------------------------------------------------------
def _vq_kernel(z_ref, e_ref, et_ref, e2_ref, tok_ref, zq_ref, stats_ref):
    z = z_ref[...]                       # (D, TN) f32, tokens on lanes
    e = e_ref[...]                       # (K, D)  f32 (grid-invariant)
    et = et_ref[...]                     # (D, K)  f32 (grid-invariant)
    e2 = e2_ref[...]                     # (K, 1)  f32, hoisted ||e_k||^2
    tn = z.shape[1]
    k = e.shape[0]

    # ||e_k||^2 - 2 e_k . z_n  (row-constant ||z||^2 dropped — argmin unchanged)
    # Standard (K,D) x (D,TN) matmul — MXU, no operand transposes.
    ze = jax.lax.dot_general(e, z, dimension_numbers=(((1,), (0,)), ((), ())),
                             preferred_element_type=jnp.float32)      # (K, TN)
    dist = e2 - 2.0 * ze                                              # (K, TN)

    # Manual argmin over the codebook (sublane) axis: min, then first index
    # attaining the min (matches torch.argmin tie-breaking).
    d_min = jnp.min(dist, axis=0, keepdims=True)                      # (1, TN)
    ki = jax.lax.broadcasted_iota(jnp.int32, (k, tn), 0)              # (K, TN)
    kf = ki.astype(jnp.float32)
    tok_f = jnp.min(jnp.where(dist == d_min, kf, float(k)),
                    axis=0, keepdims=True)                            # (1, TN)
    tok = tok_f.astype(jnp.int32)                                     # (1, TN)
    tok_ref[...] = tok[None]                                          # (1,1,TN)

    # One-hot gather of quantized vectors, lane-dense output (D, TN).
    onehot = (ki == tok).astype(jnp.float32)                          # (K, TN)
    zq = jax.lax.dot_general(et, onehot,
                             dimension_numbers=(((1,), (0,)), ((), ())),
                             preferred_element_type=jnp.float32)      # (D, TN)
    zq_ref[...] = zq

    # Fused per-tile histogram (lane reduction of onehot) + squared error,
    # packed into one small stats block: column 0 = hist, column 1 = error.
    hist_col = jnp.sum(onehot, axis=1, keepdims=True)                 # (K, 1)
    diff = zq - z
    err = jnp.sum(diff * diff)                                        # scalar
    row0 = jax.lax.broadcasted_iota(jnp.int32, (k, 1), 0) == 0
    err_col = jnp.where(row0, err, 0.0)                               # (K, 1)
    lane2 = jax.lax.broadcasted_iota(jnp.int32, (k, 2), 1)
    stats_ref[...] = jnp.where(lane2 == 0, hist_col, err_col)[None]   # (1,K,2)


def vq_quantize(z_dn, embedding, *, tile_n=None):
    """z_dn: (D, N) f32 (token axis on lanes), embedding: (K, D) f32.
       Returns token (N,) i32, z_q (D, N) f32, hist (K,) f32, sq_err () f32."""
    d, n = z_dn.shape
    k = embedding.shape[0]
    if tile_n is None:
        tile_n = _pick_tile(n, 2048)
    assert n % tile_n == 0
    num_tiles = n // tile_n

    emb = embedding.astype(jnp.float32)
    # Hoisted codebook transpose and squared norms (computed once, not per step).
    et = emb.T                                                        # (D, K)
    e2 = jnp.sum(emb * emb, axis=1, keepdims=True)                    # (K, 1)

    tok, zq, stats = pl.pallas_call(
        _vq_kernel,
        out_shape=(
            jax.ShapeDtypeStruct((num_tiles, 1, tile_n), jnp.int32),
            jax.ShapeDtypeStruct((d, n), jnp.float32),
            jax.ShapeDtypeStruct((num_tiles, k, 2), jnp.float32),
        ),
        grid_spec=pltpu.PrefetchScalarGridSpec(
            num_scalar_prefetch=0,
            grid=(num_tiles,),
            in_specs=[
                pl.BlockSpec((d, tile_n), lambda i: (0, i)),   # z (lane-dense)
                pl.BlockSpec((k, d), lambda i: (0, 0)),        # E (grid-invariant)
                pl.BlockSpec((d, k), lambda i: (0, 0)),        # E^T (grid-invariant)
                pl.BlockSpec((k, 1), lambda i: (0, 0)),        # ||E||^2
            ],
            out_specs=[
                pl.BlockSpec((1, 1, tile_n), lambda i: (i, 0, 0)),
                pl.BlockSpec((d, tile_n), lambda i: (0, i)),
                pl.BlockSpec((1, k, 2), lambda i: (i, 0, 0)),
            ],
        ),
        compiler_params=pltpu.CompilerParams(
            dimension_semantics=("parallel",),
            vmem_limit_bytes=32 * 1024 * 1024),
    )(z_dn, emb, et, e2)

    token = tok.reshape(n)
    hist = jnp.sum(stats[:, :, 0], axis=0)       # (K,)
    sq_err = jnp.sum(stats[:, :, 1])             # scalar
    return token, zq, hist, sq_err


# --------------------------------------------------------------------------
# Kernel 2: queue statistics (column sums and X^T X) on the transposed queue
#   q block (D, TQ) lane-dense; Gram via rhs-transposed dot_general.
# --------------------------------------------------------------------------
def _queue_stats_kernel(q_ref, sum_ref, xtx_ref):
    q = q_ref[...]                                                    # (D, TQ)
    sum_ref[...] = jnp.sum(q, axis=1, keepdims=True)[None]            # (1, D, 1)
    # X^T X (rows-as-samples) == Q @ Q^T for the transposed queue layout.
    xtx_ref[...] = jax.lax.dot_general(
        q, q, dimension_numbers=(((1,), (1,)), ((), ())),
        preferred_element_type=jnp.float32)[None]                     # (1, D, D)


def queue_stats(queue_t, *, tile_q=32768):
    """queue_t: (D, Q) f32 -> (col_sum (D,), xtx (D, D))."""
    d, q = queue_t.shape
    if q < tile_q:
        tile_q = q
    assert q % tile_q == 0
    num_tiles = q // tile_q

    sums, xtxs = pl.pallas_call(
        _queue_stats_kernel,
        out_shape=(
            jax.ShapeDtypeStruct((num_tiles, d, 1), jnp.float32),
            jax.ShapeDtypeStruct((num_tiles, d, d), jnp.float32),
        ),
        grid_spec=pltpu.PrefetchScalarGridSpec(
            num_scalar_prefetch=0,
            grid=(num_tiles,),
            in_specs=[pl.BlockSpec((d, tile_q), lambda i: (0, i))],
            out_specs=[
                pl.BlockSpec((1, d, 1), lambda i: (i, 0, 0)),
                pl.BlockSpec((1, d, d), lambda i: (i, 0, 0)),
            ],
        ),
        compiler_params=pltpu.CompilerParams(
            dimension_semantics=("parallel",),
            vmem_limit_bytes=32 * 1024 * 1024),
    )(queue_t)
    col_sum = jnp.sum(sums[:, :, 0], axis=0)
    xtx = jnp.sum(xtxs, axis=0)
    return col_sum, xtx


# --------------------------------------------------------------------------
# Wasserstein loss (eigh etc. in plain JAX)
# --------------------------------------------------------------------------
def calc_wasserstein_loss(queue_t, embedding):
    # TODO(synk): torch.linalg.eigh has no Pallas equivalent; jnp.linalg.eigh used.
    d, qn = queue_t.shape
    c = embedding.astype(jnp.float32)                     # (K, D)
    kn = c.shape[0]

    std = jnp.max(jnp.std(c, axis=0, ddof=1))
    s = std + 1e-8

    # Queue moments via the Pallas reduction kernel, then scale by 1/s.
    # (Inside Mosaic the f32 Gram matmul is not downcast to a single bf16 pass.)
    col_sum, xtx = queue_stats(queue_t)
    z_mean = (col_sum / qn) / s
    z_xtx = xtx / (s * s)
    z_cov = (z_xtx - qn * jnp.outer(z_mean, z_mean)) / (qn - 1)
    z_cov = z_cov + 1e-6 * jnp.eye(d, dtype=jnp.float32)

    c_s = c / s
    c_mean = jnp.mean(c_s, axis=0)
    c_cent = c_s - c_mean[None, :]
    c_cov = (jnp.matmul(c_cent.T, c_cent, precision=jax.lax.Precision.HIGHEST)
             / (kn - 1)) + 1e-6 * jnp.eye(d, dtype=jnp.float32)

    part_mean = jnp.sum((z_mean - c_mean) ** 2)

    s1, q1 = jnp.linalg.eigh(z_cov)
    sqrt_s1 = jnp.diag(jnp.sqrt(jax.nn.relu(s1) + 1e-8))
    temp = jnp.nan_to_num(q1 @ sqrt_s1, nan=0.0, posinf=0.0, neginf=0.0)
    z_sqrt_cov = jnp.nan_to_num(temp @ q1.T, nan=0.0, posinf=0.0, neginf=0.0)

    temp = jnp.nan_to_num(z_sqrt_cov @ c_cov, nan=0.0, posinf=0.0, neginf=0.0)
    covariance = jnp.nan_to_num(temp @ z_sqrt_cov, nan=0.0, posinf=0.0, neginf=0.0)

    s2, _ = jnp.linalg.eigh(covariance)
    sqrt_s2 = jnp.sqrt(jax.nn.relu(s2) + 1e-8)
    part_cov = jax.nn.relu(jnp.trace(z_cov + c_cov) - 2.0 * jnp.sum(sqrt_s2))

    return jnp.sqrt(part_mean + part_cov + 1e-10)


# --------------------------------------------------------------------------
# Module wrapper
# --------------------------------------------------------------------------
class WassersteinQuantizerPallas:
    QUEUE_SIZE = 65536

    def __init__(self, codebook_size, codebook_dim, beta, alpha, gamma, key):
        self.codebook_size = codebook_size
        self.codebook_dim = codebook_dim
        self.beta = beta
        self.alpha = alpha
        self.gamma = gamma
        k_emb, k_queue = jax.random.split(key)
        # embedding.weight.data.normal_(0, 0.01)
        self.embedding = (0.01 * jax.random.normal(
            k_emb, (codebook_size, codebook_dim))).astype(jnp.float32)
        # queue buffer (randn * 0.01), stored TRANSPOSED (D, Q) so the enqueue
        # and the stats kernel both work on lane-dense column blocks.
        self.queue = (0.01 * jax.random.normal(
            k_queue, (codebook_dim, self.QUEUE_SIZE))).astype(jnp.float32)
        self.queue_ptr = 0

    def forward(self, z):
        # z: (B, C, H, W) with C == codebook_dim
        b, c, h, w = z.shape
        assert c == self.codebook_dim
        n = b * h * w
        # Lane-dense layout (D, N); column n = (b, h, w) matches torch's
        # 'b c h w -> b h w c' + reshape(-1, D) token ordering.
        z_dn = jnp.transpose(z, (1, 0, 2, 3)).reshape(
            self.codebook_dim, n).astype(jnp.float32)

        # queue dequeue_and_enqueue (no-grad buffer update), column block.
        assert self.QUEUE_SIZE % n == 0
        self.queue = jax.lax.dynamic_update_slice(
            self.queue, z_dn, (0, self.queue_ptr))
        self.queue_ptr = (self.queue_ptr + n) % self.QUEUE_SIZE

        # hot path: nearest-codebook lookup + fused histogram / sq-error.
        token, z_q_dn, histogram, sq_err = vq_quantize(z_dn, self.embedding)

        wasserstein_loss = calc_wasserstein_loss(self.queue, self.embedding)

        # beta*mse(z_q.detach(), z) + alpha*mse(z_q, z.detach()) — identical
        # values in the forward pass (detach only affects gradients).
        mse = sq_err / (n * self.codebook_dim)
        loss = self.beta * mse + self.alpha * mse + self.gamma * wasserstein_loss

        # quant_error: sum over channel dim, mean over b*h*w tokens.
        quant_error = sq_err / n

        # TODO(synk): torch.distributed.all_reduce omitted (single-device script).
        codebook_usage_counts = jnp.sum((histogram > 0).astype(jnp.float32))
        codebook_utilization = codebook_usage_counts / self.codebook_size
        avg_probs = histogram / jnp.sum(histogram)
        codebook_perplexity = jnp.exp(-jnp.sum(avg_probs * jnp.log(avg_probs + 1e-10)))

        # straight-through z + (z_q - z).detach() == z_q numerically;
        # (D, N) -> (C, B, H, W) -> NCHW with a single transpose.
        z_q_out = jnp.transpose(
            z_q_dn.reshape(self.codebook_dim, b, h, w), (1, 0, 2, 3))
        return (z_q_out, loss, wasserstein_loss, quant_error,
                codebook_utilization, codebook_perplexity)


# --------------------------------------------------------------------------
if __name__ == "__main__":
    key = jax.random.PRNGKey(0)
    k_param, k_x = jax.random.split(key)

    codebook_size = 256
    codebook_dim = 16
    beta, alpha, gamma = 1.0, 0.25, 0.1

    quantizer = WassersteinQuantizerPallas(
        codebook_size, codebook_dim, beta, alpha, gamma, k_param)

    # small NCHW input: batch=2, channels=codebook_dim=16, spatial=16x16
    x = jax.random.normal(k_x, (2, codebook_dim, 16, 16), dtype=jnp.float32)

    outs = quantizer.forward(x)
    outs = jax.block_until_ready(outs)

    z_q, loss, wl, qerr, util, ppl = outs
    assert z_q.shape == x.shape
    assert jnp.isfinite(loss) and jnp.isfinite(wl) and jnp.isfinite(qerr)
    print("KERNEL_OK")
</pallas_src>

<mosaic_0001>
module attributes {stable_mosaic.version = 11 : i64} {
  func.func @_vq_kernel(%arg0: i32, %arg1: memref<16x512xf32, #tpu.memory_space<vmem>>, %arg2: memref<256x16xf32, #tpu.memory_space<vmem>>, %arg3: memref<16x256xf32, #tpu.memory_space<vmem>>, %arg4: memref<256x1xf32, #tpu.memory_space<vmem>>, %arg5: memref<1x1x512xi32, #tpu.memory_space<vmem>>, %arg6: memref<16x512xf32, #tpu.memory_space<vmem>>, %arg7: memref<1x256x2xf32, #tpu.memory_space<vmem>>) attributes {dimension_semantics = [#tpu.dimension_semantics<parallel>], iteration_bounds = array<i64: 1>, scalar_prefetch = 0 : i64, scratch_operands = 0 : i64, tpu.core_type = #tpu.core_type<tc>, window_params = [{transform_indices = @transform_0, window_bounds = array<i64: 16, 512>}, {pipeline_mode = #tpu.pipeline_mode<synchronous>, transform_indices = @transform_1, window_bounds = array<i64: 256, 16>}, {pipeline_mode = #tpu.pipeline_mode<synchronous>, transform_indices = @transform_2, window_bounds = array<i64: 16, 256>}, {pipeline_mode = #tpu.pipeline_mode<synchronous>, transform_indices = @transform_3, window_bounds = array<i64: 256, 1>}, {transform_indices = @transform_4, window_bounds = array<i64: 1, 1, 512>}, {transform_indices = @transform_5, window_bounds = array<i64: 16, 512>}, {transform_indices = @transform_6, window_bounds = array<i64: 1, 256, 2>}]} {
    %c0 = arith.constant 0 : index
    %c0_0 = arith.constant 0 : index
    %0 = vector.load %arg1[%c0, %c0_0] : memref<16x512xf32, #tpu.memory_space<vmem>>, vector<16x512xf32>
    %c0_1 = arith.constant 0 : index
    %c0_2 = arith.constant 0 : index
    %1 = vector.load %arg2[%c0_1, %c0_2] : memref<256x16xf32, #tpu.memory_space<vmem>>, vector<256x16xf32>
    %c0_3 = arith.constant 0 : index
    %c0_4 = arith.constant 0 : index
    %2 = vector.load %arg3[%c0_3, %c0_4] : memref<16x256xf32, #tpu.memory_space<vmem>>, vector<16x256xf32>
    %c0_5 = arith.constant 0 : index
    %c0_6 = arith.constant 0 : index
    %3 = vector.load %arg4[%c0_5, %c0_6] : memref<256x1xf32, #tpu.memory_space<vmem>>, vector<256x1xf32>
    %cst = arith.constant dense<0.000000e+00> : vector<256x512xf32>
    %4 = tpu.matmul %1, %0, %cst {dimension_numbers = #tpu.dot_dimension_numbers<[1], [0], [0], [1], [0, 0, 1, 1], [], []>} : vector<256x16xf32>, vector<16x512xf32>, vector<256x512xf32> -> vector<256x512xf32>
    %cst_7 = arith.constant 2.000000e+00 : f32
    %5 = vector.broadcast %cst_7 : f32 to vector<256x512xf32>
    %6 = arith.mulf %5, %4 : vector<256x512xf32>
    %7 = vector.broadcast %3 : vector<256x1xf32> to vector<256x512xf32>
    %8 = arith.subf %7, %6 : vector<256x512xf32>
    %cst_8 = arith.constant dense<0x7F800000> : vector<512xf32>
    %9 = vector.multi_reduction <minimumf>, %8, %cst_8 [0] : vector<256x512xf32> to vector<512xf32>
    %10 = vector.shape_cast %9 : vector<512xf32> to vector<1x512xf32>
    %11 = tpu.iota {dimensions = array<i32: 0>} : vector<256x512xi32>
    %12 = arith.sitofp %11 : vector<256x512xi32> to vector<256x512xf32>
    %13 = vector.broadcast %10 : vector<1x512xf32> to vector<256x512xf32>
    %14 = arith.cmpf oeq, %8, %13 : vector<256x512xf32>
    %cst_9 = arith.constant 2.560000e+02 : f32
    %15 = vector.broadcast %cst_9 : f32 to vector<256x512xf32>
    %16 = arith.select %14, %12, %15 : vector<256x512xi1>, vector<256x512xf32>
    %cst_10 = arith.constant dense<0x7F800000> : vector<512xf32>
    %17 = vector.multi_reduction <minimumf>, %16, %cst_10 [0] : vector<256x512xf32> to vector<512xf32>
    %18 = vector.shape_cast %17 : vector<512xf32> to vector<1x512xf32>
    %19 = arith.fptosi %18 : vector<1x512xf32> to vector<1x512xi32>
    %20 = vector.shape_cast %19 : vector<1x512xi32> to vector<1x1x512xi32>
    %c0_11 = arith.constant 0 : index
    %c0_12 = arith.constant 0 : index
    %c0_13 = arith.constant 0 : index
    %21 = vector.load %arg5[%c0_11, %c0_12, %c0_13] : memref<1x1x512xi32, #tpu.memory_space<vmem>>, vector<1x1x512xi32>
    tpu.vector_store %arg5[%c0_11, %c0_12, %c0_13], %20 {strides = array<i32>} : memref<1x1x512xi32, #tpu.memory_space<vmem>>, vector<1x1x512xi32>,
    %22 = vector.broadcast %19 : vector<1x512xi32> to vector<256x512xi32>
    %23 = arith.cmpi eq, %11, %22 : vector<256x512xi32>
    %24 = arith.extui %23 : vector<256x512xi1> to vector<256x512xi32>
    %25 = arith.sitofp %24 : vector<256x512xi32> to vector<256x512xf32>
    %cst_14 = arith.constant dense<0.000000e+00> : vector<16x512xf32>
    %26 = tpu.matmul %2, %25, %cst_14 {dimension_numbers = #tpu.dot_dimension_numbers<[1], [0], [0], [1], [0, 0, 1, 1], [], []>} : vector<16x256xf32>, vector<256x512xf32>, vector<16x512xf32> -> vector<16x512xf32>
    %c0_15 = arith.constant 0 : index
    %c0_16 = arith.constant 0 : index
    %27 = vector.load %arg6[%c0_15, %c0_16] : memref<16x512xf32, #tpu.memory_space<vmem>>, vector<16x512xf32>
    tpu.vector_store %arg6[%c0_15, %c0_16], %26 {strides = array<i32>} : memref<16x512xf32, #tpu.memory_space<vmem>>, vector<16x512xf32>,
    %cst_17 = arith.constant dense<0.000000e+00> : vector<256xf32>
    %28 = vector.multi_reduction <add>, %25, %cst_17 [1] : vector<256x512xf32> to vector<256xf32>
    %29 = vector.shape_cast %28 : vector<256xf32> to vector<256x1xf32>
    %30 = arith.subf %26, %0 : vector<16x512xf32>
    %31 = arith.mulf %30, %30 : vector<16x512xf32>
    %32 = vector.shape_cast %31 : vector<16x512xf32> to vector<1x16x512xf32>
    %cst_18 = arith.constant dense<0.000000e+00> : vector<1xf32>
    %33 = vector.multi_reduction <add>, %32, %cst_18 [1, 2] : vector<1x16x512xf32> to vector<1xf32>
    %34 = vector.shape_cast %33 : vector<1xf32> to vector<1x1x1xf32>
    %35 = vector.extract %34[0, 0, 0] : f32 from vector<1x1x1xf32>
    %36 = tpu.iota {dimensions = array<i32: 0>} : vector<256x1xi32>
    %c0_i32 = arith.constant 0 : i32
    %37 = vector.broadcast %c0_i32 : i32 to vector<256x1xi32>
    %38 = arith.cmpi eq, %36, %37 : vector<256x1xi32>
    %cst_19 = arith.constant 0.000000e+00 : f32
    %39 = vector.broadcast %35 : f32 to vector<256x1xf32>
    %40 = vector.broadcast %cst_19 : f32 to vector<256x1xf32>
    %41 = arith.select %38, %39, %40 : vector<256x1xi1>, vector<256x1xf32>
    %42 = tpu.iota {dimensions = array<i32: 1>} : vector<256x2xi32>
    %c0_i32_20 = arith.constant 0 : i32
    %43 = vector.broadcast %c0_i32_20 : i32 to vector<256x2xi32>
    %44 = arith.cmpi eq, %42, %43 : vector<256x2xi32>
    %45 = vector.shape_cast %29 : vector<256x1xf32> to vector<256x1xf32>
    %46 = vector.broadcast %45 : vector<256x1xf32> to vector<256x2xf32>
    %47 = vector.shape_cast %41 : vector<256x1xf32> to vector<256x1xf32>
    %48 = vector.broadcast %47 : vector<256x1xf32> to vector<256x2xf32>
    %49 = arith.select %44, %46, %48 : vector<256x2xi1>, vector<256x2xf32>
    %50 = vector.shape_cast %49 : vector<256x2xf32> to vector<1x256x2xf32>
    %c0_21 = arith.constant 0 : index
    %c0_22 = arith.constant 0 : index
    %c0_23 = arith.constant 0 : index
    %51 = vector.load %arg7[%c0_21, %c0_22, %c0_23] : memref<1x256x2xf32, #tpu.memory_space<vmem>>, vector<1x256x2xf32>
    tpu.vector_store %arg7[%c0_21, %c0_22, %c0_23], %50 {strides = array<i32>} : memref<1x256x2xf32, #tpu.memory_space<vmem>>, vector<1x256x2xf32>,
    return
  }
  func.func @transform_0(%arg0: i32) -> (i32, i32) {
    %c0_i32 = arith.constant 0 : i32
    %c0_i32_0 = arith.constant 0 : i32
    return %c0_i32, %arg0 : i32, i32
  }
  func.func @transform_1(%arg0: i32) -> (i32, i32) {
    %c0_i32 = arith.constant 0 : i32
    %c0_i32_0 = arith.constant 0 : i32
    %c0_i32_1 = arith.constant 0 : i32
    return %c0_i32, %c0_i32_0 : i32, i32
  }
  func.func @transform_2(%arg0: i32) -> (i32, i32) {
    %c0_i32 = arith.constant 0 : i32
    %c0_i32_0 = arith.constant 0 : i32
    %c0_i32_1 = arith.constant 0 : i32
    return %c0_i32, %c0_i32_0 : i32, i32
  }
  func.func @transform_3(%arg0: i32) -> (i32, i32) {
    %c0_i32 = arith.constant 0 : i32
    %c0_i32_0 = arith.constant 0 : i32
    %c0_i32_1 = arith.constant 0 : i32
    return %c0_i32, %c0_i32_0 : i32, i32
  }
  func.func @transform_4(%arg0: i32) -> (i32, i32, i32) {
    %c0_i32 = arith.constant 0 : i32
    %c0_i32_0 = arith.constant 0 : i32
    %c0_i32_1 = arith.constant 0 : i32
    return %arg0, %c0_i32, %c0_i32_0 : i32, i32, i32
  }
  func.func @transform_5(%arg0: i32) -> (i32, i32) {
    %c0_i32 = arith.constant 0 : i32
    %c0_i32_0 = arith.constant 0 : i32
    return %c0_i32, %arg0 : i32, i32
  }
  func.func @transform_6(%arg0: i32) -> (i32, i32, i32) {
    %c0_i32 = arith.constant 0 : i32
    %c0_i32_0 = arith.constant 0 : i32
    %c0_i32_1 = arith.constant 0 : i32
    return %arg0, %c0_i32, %c0_i32_0 : i32, i32, i32
  }
}

</mosaic_0001>

<bundles_post_ra>
// kernel: tpu_custom_call.1
= control target key start
LH: loop header
LB: loop body
LE: loop exit
PB: predicated region body
PF: predicated region fallthrough
CT: control target
= control target key end

     0   :  { %12 = vsyncpa [#allocation3], 0  ;;  %v7000_v7 = vmov 0.0   ;;  %v3213_v12 = vmov 0   ;;  %vm98_vm0 = vcmask 130048   ;;  %s6993_s0 = inlined_call_operand.vmem [shape: f32[16,512], index: 0, kind: input, shape index: {}]   ;;  %s6994_s1 = inlined_call_operand.vmem [shape: f32[256,16], index: 1, kind: input, shape index: {}]   ;;  %s6995_s2 = inlined_call_operand.vmem [shape: f32[16,256], index: 2, kind: input, shape index: {}]   ;;  %s6996_s3 = inlined_call_operand.vmem [shape: f32[256,1], index: 3, kind: input, shape index: {}]   ;;  %s6997_s4 = inlined_call_operand.hbm [shape: s32[1,1,512], index: 4, kind: output, shape index: {0}]   ;;  %s6998_s5 = inlined_call_operand.hbm [shape: f32[16,512], index: 5, kind: output, shape index: {1}]   ;;  %s6999_s6 = inlined_call_operand.vmem [shape: f32[1,256,2], index: 6, kind: output, shape index: {2}]  }
   0x1   :  { %v23_v0 = vld [vmem:[%s6993_s0 + $0x8] sm:$0xff]  ;;  %v25_v2 = vld [vmem:[%s6993_s0 + $0x18] sm:$0xff]  ;;  %v22_v5 = vld [vmem:[%s6993_s0] sm:$0xff]  ;;  %259 = vmatprep.mubr.f32.mxu0 %v7000_v7  ;;  %516 = vmatprep.mubr.f32.mxu1 %v7000_v7 }
   0x2   :  { %v27_v1 = vld [vmem:[%s6993_s0 + $0x28] sm:$0xff]  ;;  %v29_v4 = vld [vmem:[%s6993_s0 + $0x38] sm:$0xff]  ;;  %v26_v6 = vld [vmem:[%s6993_s0 + $0x20] sm:$0xff]  ;;  %3154 = vset.pattern.permute.xlu0 %v3213_v12  ;;  %3155 = vset.pattern.permute.xlu1 %v3213_v12 }
   0x3   :  { %v3000_v3 = vpack.c.bf16 %v27_v1, %v23_v0  ;;  %v3004_v8 = vpack.c.bf16 %v29_v4, %v25_v2  ;;  %v3002_v9 = vpack.c.bf16 %v26_v6, %v22_v5  ;;  %v24_v10 = vld [vmem:[%s6993_s0 + $0x10] sm:$0xff]  ;;  %v30_v14 = vld [vmem:[%s6994_s1] sm:$0xff]  ;;  %v31_v15 = vld [vmem:[%s6994_s1 + $0x8] sm:$0xff] }
   0x4   :  { %v28_v11 = vld [vmem:[%s6993_s0 + $0x30] sm:$0xff]  ;;  %v66_v16 = vld [vmem:[%s6996_s3] sm:$0xff]  ;;  %v67_v19 = vld [vmem:[%s6996_s3 + $0x8] sm:$0xff] }
   0x5   :  { %3001 = vmatprep.subr.bf16.mxu0 %v3000_v3  ;;  %v3006_v13 = vpack.c.bf16 %v28_v11, %v24_v10  ;;  %3005 = vmatprep.subr.bf16.mxu1 %v3004_v8  ;;  %v68_v17 = vld [vmem:[%s6996_s3 + $0x10] sm:$0xff]  ;;  %v69_v20 = vld [vmem:[%s6996_s3 + $0x18] sm:$0xff]  ;;  %v70_v22 = vld [vmem:[%s6996_s3 + $0x20] sm:$0xff] }
   0x6   :  { %3003 = vmatpush1.bf16.msra.mxu0 %v3002_v9  ;;  %839 = vperm.xlu0 %3154, %v66_v16   ;;  %v32_v18 = vld [vmem:[%s6994_s1 + $0x10] sm:$0xff]  ;;  %v33_v21 = vld [vmem:[%s6994_s1 + $0x18] sm:$0xff]  ;;  %v71_v23 = vld [vmem:[%s6996_s3 + $0x28] sm:$0xff] }
   0x7   :  { %3007 = vmatpush1.bf16.msra.mxu1 %v3006_v13  ;;  %849 = vperm.xlu1 %3155, %v68_v17   ;;  %v34_v24 = vld [vmem:[%s6994_s1 + $0x20] sm:$0xff]  ;;  %v72_v25 = vld [vmem:[%s6996_s3 + $0x30] sm:$0xff]  ;;  %v73_v26 = vld [vmem:[%s6996_s3 + $0x38] sm:$0xff] }
   0x8   :  { %v35_v27 = vld [vmem:[%s6994_s1 + $0x28] sm:$0xff]  ;;  %v74_v28 = vld [vmem:[%s6996_s3 + $0x40] sm:$0xff] }
   0x9   :  { %2680 = vmatmul.mubr.msk.f32.vlgmr.msra.gmra.mrb[0].mxu0 %vm98_vm0, %v30_v14 }
   0xa   :  { %2712 = vmatmul.mubr.msk.f32.vlgmr.msra.gmra.mrb[0].mxu1 %vm98_vm0, %v30_v14  ;;  %265 = vmatprep.mubr.f32.mxu0 %v7000_v7 }
   0xb   :  { %522 = vmatprep.mubr.f32.mxu1 %v7000_v7  ;;  %844 = vperm.xlu0 %3154, %v67_v19  }
   0xc   :  { %854 = vperm.xlu1 %3155, %v69_v20  }
   0xd   :  { %2681 = vmatmul.mubr.msk.f32.gmra.mrb[2].mxu0 %vm98_vm0, %v31_v15 }
   0xe   :  { %2713 = vmatmul.mubr.msk.f32.gmra.mrb[2].mxu1 %vm98_vm0, %v31_v15  ;;  %271 = vmatprep.mubr.f32.mxu0 %v7000_v7 }
   0xf   :  { %528 = vmatprep.mubr.f32.mxu1 %v7000_v7  ;;  %859 = vperm.xlu0 %3154, %v70_v22  }
  0x10   :  { %864 = vperm.xlu1 %3155, %v71_v23  }
  0x11   :  { %2682 = vmatmul.mubr.msk.f32.gmra.mrb[4].mxu0 %vm98_vm0, %v32_v18 }
  0x12   :  { %2714 = vmatmul.mubr.msk.f32.gmra.mrb[4].mxu1 %vm98_vm0, %v32_v18  ;;  %277 = vmatprep.mubr.f32.mxu0 %v7000_v7 }
  0x13   :  { %534 = vmatprep.mubr.f32.mxu1 %v7000_v7  ;;  %869 = vperm.xlu0 %3154, %v72_v25  }
  0x15   :  { %2683 = vmatmul.mubr.msk.f32.gmra.mrb[6].mxu0 %vm98_vm0, %v33_v21 }
  0x16   :  { %2715 = vmatmul.mubr.msk.f32.gmra.mrb[6].mxu1 %vm98_vm0, %v33_v21  ;;  %283 = vmatprep.mubr.f32.mxu0 %v7000_v7 }
  0x17   :  { %540 = vmatprep.mubr.f32.mxu1 %v7000_v7 }
  0x19   :  { %2684 = vmatmul.mubr.msk.f32.gmra.mrb[8].mxu0 %vm98_vm0, %v34_v24 }
  0x1a   :  { %2716 = vmatmul.mubr.msk.f32.gmra.mrb[8].mxu1 %vm98_vm0, %v34_v24  ;;  %289 = vmatprep.mubr.f32.mxu0 %v7000_v7 }
  0x1b   :  { %13 = vsyncpa [#allocation5], 0  ;;  %546 = vmatprep.mubr.f32.mxu1 %v7000_v7  ;;  %874 = vperm.xlu1 %3155, %v73_v26   ;;  %v75_v29 = vld [vmem:[%s6996_s3 + $0x48] sm:$0xff]  ;;  %v36_v30 = vld [vmem:[%s6994_s1 + $0x30] sm:$0xff]  ;;  %s3217_s19 = smov [#allocation4]  }
  0x1c   :  { %879 = vperm.xlu0 %3154, %v74_v28   ;;  %v76_v31 = vld [vmem:[%s6996_s3 + $0x50] sm:$0xff]  ;;  %v77_v32 = vld [vmem:[%s6996_s3 + $0x58] sm:$0xff]  ;;  %v78_v34 = vld [vmem:[%s6996_s3 + $0x60] sm:$0xff]  ;;  %s2661_s20 = sshll.u32 %s3217_s19, 4  ;;  %s6858_s20 = int_to_ptr.vmem [resolvable:$true] %s2661_s20 }
  0x1d   :  { %2685 = vmatmul.mubr.msk.f32.gmra.mrb[10].mxu0 %vm98_vm0, %v35_v27  ;;  %v37_v33 = vld [vmem:[%s6994_s1 + $0x38] sm:$0xff]  ;;  %v79_v35 = vld [vmem:[%s6996_s3 + $0x68] sm:$0xff]  ;;  %v38_v36 = vld [vmem:[%s6994_s1 + $0x40] sm:$0xff] }
  0x1e   :  { %2717 = vmatmul.mubr.msk.f32.gmra.mrb[10].mxu1 %vm98_vm0, %v35_v27  ;;  %295 = vmatprep.mubr.f32.mxu0 %v7000_v7  ;;  %v80_v37 = vld [vmem:[%s6996_s3 + $0x70] sm:$0xff]  ;;  %v81_v38 = vld [vmem:[%s6996_s3 + $0x78] sm:$0xff]  ;;  %v39_v39 = vld [vmem:[%s6994_s1 + $0x48] sm:$0xff] }
  0x1f   :  { %552 = vmatprep.mubr.f32.mxu1 %v7000_v7  ;;  %884 = vperm.xlu1 %3155, %v75_v29   ;;  %v82_v40 = vld [vmem:[%s6996_s3 + $0x80] sm:$0xff]  ;;  %v83_v41 = vld [vmem:[%s6996_s3 + $0x88] sm:$0xff]  ;;  %v40_v42 = vld [vmem:[%s6994_s1 + $0x50] sm:$0xff] }
  0x20   :  { %889 = vperm.xlu0 %3154, %v76_v31   ;;  %v84_v43 = vld [vmem:[%s6996_s3 + $0x90] sm:$0xff]  ;;  %v85_v44 = vld [vmem:[%s6996_s3 + $0x98] sm:$0xff]  ;;  %v86_v46 = vld [vmem:[%s6996_s3 + $0xa0] sm:$0xff] }
  0x21   :  { %2686 = vmatmul.mubr.msk.f32.gmra.mrb[12].mxu0 %vm98_vm0, %v36_v30  ;;  %v41_v45 = vld [vmem:[%s6994_s1 + $0x58] sm:$0xff]  ;;  %v87_v47 = vld [vmem:[%s6996_s3 + $0xa8] sm:$0xff]  ;;  %v42_v48 = vld [vmem:[%s6994_s1 + $0x60] sm:$0xff] }
  0x22   :  { %2718 = vmatmul.mubr.msk.f32.gmra.mrb[12].mxu1 %vm98_vm0, %v36_v30  ;;  %301 = vmatprep.mubr.f32.mxu0 %v7000_v7  ;;  %v88_v49 = vld [vmem:[%s6996_s3 + $0xb0] sm:$0xff]  ;;  %v89_v50 = vld [vmem:[%s6996_s3 + $0xb8] sm:$0xff]  ;;  %v43_v51 = vld [vmem:[%s6994_s1 + $0x68] sm:$0xff] }
  0x23   :  { %558 = vmatprep.mubr.f32.mxu1 %v7000_v7  ;;  %894 = vperm.xlu1 %3155, %v77_v32   ;;  %v90_v52 = vld [vmem:[%s6996_s3 + $0xc0] sm:$0xff]  ;;  %v91_v53 = vld [vmem:[%s6996_s3 + $0xc8] sm:$0xff]  ;;  %v44_v54 = vld [vmem:[%s6994_s1 + $0x70] sm:$0xff] }
  0x24   :  { %899 = vperm.xlu0 %3154, %v78_v34   ;;  %v92_v55 = vld [vmem:[%s6996_s3 + $0xd0] sm:$0xff]  ;;  %v93_v56 = vld [vmem:[%s6996_s3 + $0xd8] sm:$0xff]  ;;  %v94_v58 = vld [vmem:[%s6996_s3 + $0xe0] sm:$0xff] }
  0x25   :  { %2687 = vmatmul.mubr.msk.f32.gmra.mrb[14].mxu0 %vm98_vm0, %v37_v33  ;;  %v45_v57 = vld [vmem:[%s6994_s1 + $0x78] sm:$0xff]  ;;  %v95_v59 = vld [vmem:[%s6996_s3 + $0xe8] sm:$0xff]  ;;  %v46_v60 = vld [vmem:[%s6994_s1 + $0x80] sm:$0xff] }
  0x26   :  { %2719 = vmatmul.mubr.msk.f32.gmra.mrb[14].mxu1 %vm98_vm0, %v37_v33  ;;  %307 = vmatprep.mubr.f32.mxu0 %v7000_v7  ;;  %v96_v61 = vld [vmem:[%s6996_s3 + $0xf0] sm:$0xff]  ;;  %v97_v62 = vld [vmem:[%s6996_s3 + $0xf8] sm:$0xff]  ;;  %v47_v63 = vld [vmem:[%s6994_s1 + $0x88] sm:$0xff] }
  0x27   :  { %564 = vmatprep.mubr.f32.mxu1 %v7000_v7  ;;  %904 = vperm.xlu1 %3155, %v79_v35   ;;  %v48_v0 = vld [vmem:[%s6994_s1 + $0x90] sm:$0xff]  ;;  %v49_v1 = vld [vmem:[%s6994_s1 + $0x98] sm:$0xff]  ;;  %v50_v2 = vld [vmem:[%s6994_s1 + $0xa0] sm:$0xff] }
  0x28   :  { %909 = vperm.xlu0 %3154, %v80_v37   ;;  %v51_v3 = vld [vmem:[%s6994_s1 + $0xa8] sm:$0xff]  ;;  %v52_v4 = vld [vmem:[%s6994_s1 + $0xb0] sm:$0xff]  ;;  %v53_v5 = vld [vmem:[%s6994_s1 + $0xb8] sm:$0xff] }
  0x29   :  { %2688 = vmatmul.mubr.msk.f32.gmra.mrb[16].mxu0 %vm98_vm0, %v38_v36  ;;  %v54_v6 = vld [vmem:[%s6994_s1 + $0xc0] sm:$0xff]  ;;  %v55_v8 = vld [vmem:[%s6994_s1 + $0xc8] sm:$0xff]  ;;  %v56_v9 = vld [vmem:[%s6994_s1 + $0xd0] sm:$0xff] }
  0x2a   :  { %2720 = vmatmul.mubr.msk.f32.gmra.mrb[16].mxu1 %vm98_vm0, %v38_v36  ;;  %313 = vmatprep.mubr.f32.mxu0 %v7000_v7  ;;  %v57_v10 = vld [vmem:[%s6994_s1 + $0xd8] sm:$0xff]  ;;  %v58_v11 = vld [vmem:[%s6994_s1 + $0xe0] sm:$0xff]  ;;  %v59_v12 = vld [vmem:[%s6994_s1 + $0xe8] sm:$0xff] }
  0x2b   :  { %570 = vmatprep.mubr.f32.mxu1 %v7000_v7  ;;  %914 = vperm.xlu1 %3155, %v81_v38   ;;  %v60_v13 = vld [vmem:[%s6994_s1 + $0xf0] sm:$0xff]  ;;  %v61_v14 = vld [vmem:[%s6994_s1 + $0xf8] sm:$0xff] }
  0x2c   :  { %919 = vperm.xlu0 %3154, %v82_v40  }
  0x2d   :  { %2689 = vmatmul.mubr.msk.f32.gmra.mrb[18].mxu0 %vm98_vm0, %v39_v39 }
  0x2e   :  { %2721 = vmatmul.mubr.msk.f32.gmra.mrb[18].mxu1 %vm98_vm0, %v39_v39  ;;  %319 = vmatprep.mubr.f32.mxu0 %v7000_v7 }
  0x2f   :  { %576 = vmatprep.mubr.f32.mxu1 %v7000_v7  ;;  %924 = vperm.xlu1 %3155, %v83_v41  }
  0x30   :  { %929 = vperm.xlu0 %3154, %v84_v43  }
  0x31   :  { %2690 = vmatmul.mubr.msk.f32.gmra.mrb[20].mxu0 %vm98_vm0, %v40_v42 }
  0x32   :  { %2722 = vmatmul.mubr.msk.f32.gmra.mrb[20].mxu1 %vm98_vm0, %v40_v42  ;;  %325 = vmatprep.mubr.f32.mxu0 %v7000_v7 }
  0x33   :  { %582 = vmatprep.mubr.f32.mxu1 %v7000_v7  ;;  %934 = vperm.xlu1 %3155, %v85_v44  }
  0x34   :  { %939 = vperm.xlu0 %3154, %v86_v46  }
  0x35   :  { %2691 = vmatmul.mubr.msk.f32.gmra.mrb[22].mxu0 %vm98_vm0, %v41_v45 }
  0x36   :  { %2723 = vmatmul.mubr.msk.f32.gmra.mrb[22].mxu1 %vm98_vm0, %v41_v45  ;;  %331 = vmatprep.mubr.f32.mxu0 %v7000_v7 }
  0x37   :  { %588 = vmatprep.mubr.f32.mxu1 %v7000_v7  ;;  %944 = vperm.xlu1 %3155, %v87_v47  }
  0x38   :  { %949 = vperm.xlu0 %3154, %v88_v49  }
  0x39   :  { %2692 = vmatmul.mubr.msk.f32.gmra.mrb[24].mxu0 %vm98_vm0, %v42_v48 }
  0x3a   :  { %2724 = vmatmul.mubr.msk.f32.gmra.mrb[24].mxu1 %vm98_vm0, %v42_v48  ;;  %337 = vmatprep.mubr.f32.mxu0 %v7000_v7 }
  0x3b   :  { %594 = vmatprep.mubr.f32.mxu1 %v7000_v7  ;;  %954 = vperm.xlu1 %3155, %v89_v50  }
  0x3c   :  { %959 = vperm.xlu0 %3154, %v90_v52  }
  0x3d   :  { %2693 = vmatmul.mubr.msk.f32.gmra.mrb[26].mxu0 %vm98_vm0, %v43_v51 }
  0x3e   :  { %2725 = vmatmul.mubr.msk.f32.gmra.mrb[26].mxu1 %vm98_vm0, %v43_v51  ;;  %343 = vmatprep.mubr.f32.mxu0 %v7000_v7 }
  0x3f   :  { %600 = vmatprep.mubr.f32.mxu1 %v7000_v7  ;;  %964 = vperm.xlu1 %3155, %v91_v53  }
  0x40   :  { %969 = vperm.xlu0 %3154, %v92_v55  }
  0x41   :  { %2694 = vmatmul.mubr.msk.f32.gmra.mrb[28].mxu0 %vm98_vm0, %v44_v54 }
  0x42   :  { %2726 = vmatmul.mubr.msk.f32.gmra.mrb[28].mxu1 %vm98_vm0, %v44_v54  ;;  %349 = vmatprep.mubr.f32.mxu0 %v7000_v7 }
  0x43   :  { %606 = vmatprep.mubr.f32.mxu1 %v7000_v7  ;;  %974 = vperm.xlu1 %3155, %v93_v56  }
  0x44   :  { %979 = vperm.xlu0 %3154, %v94_v58  }
  0x45   :  { %2695 = vmatmul.mubr.msk.f32.gmra.mrb[30].mxu0 %vm98_vm0, %v45_v57 }
  0x46   :  { %2727 = vmatmul.mubr.msk.f32.gmra.mrb[30].mxu1 %vm98_vm0, %v45_v57  ;;  %355 = vmatprep.mubr.f32.mxu0 %v7000_v7 }
  0x47   :  { %612 = vmatprep.mubr.f32.mxu1 %v7000_v7  ;;  %984 = vperm.xlu1 %3155, %v95_v59  }
  0x48   :  { %989 = vperm.xlu0 %3154, %v96_v61  }
  0x49   :  { %2696 = vmatmul.mubr.msk.f32.gmra.mrb[32].mxu0 %vm98_vm0, %v46_v60 }
  0x4a   :  { %2728 = vmatmul.mubr.msk.f32.gmra.mrb[32].mxu1 %vm98_vm0, %v46_v60  ;;  %361 = vmatprep.mubr.f32.mxu0 %v7000_v7 }
  0x4b   :  { %618 = vmatprep.mubr.f32.mxu1 %v7000_v7  ;;  %994 = vperm.xlu1 %3155, %v97_v62  }
  0x4d   :  { %2697 = vmatmul.mubr.msk.f32.gmra.mrb[34].mxu0 %vm98_vm0, %v47_v63 }
  0x4e   :  { %2729 = vmatmul.mubr.msk.f32.gmra.mrb[34].mxu1 %vm98_vm0, %v47_v63  ;;  %367 = vmatprep.mubr.f32.mxu0 %v7000_v7 }
  0x4f   :  { %624 = vmatprep.mubr.f32.mxu1 %v7000_v7 }
  0x51   :  { %2698 = vmatmul.mubr.msk.f32.gmra.mrb[36].mxu0 %vm98_vm0, %v48_v0 }
  0x52   :  { %2730 = vmatmul.mubr.msk.f32.gmra.mrb[36].mxu1 %vm98_vm0, %v48_v0  ;;  %373 = vmatprep.mubr.f32.mxu0 %v7000_v7 }
  0x53   :  { %630 = vmatprep.mubr.f32.mxu1 %v7000_v7 }
  0x55   :  { %2699 = vmatmul.mubr.msk.f32.gmra.mrb[38].mxu0 %vm98_vm0, %v49_v1 }
  0x56   :  { %2731 = vmatmul.mubr.msk.f32.gmra.mrb[38].mxu1 %vm98_vm0, %v49_v1  ;;  %379 = vmatprep.mubr.f32.mxu0 %v7000_v7 }
  0x57   :  { %636 = vmatprep.mubr.f32.mxu1 %v7000_v7 }
  0x59   :  { %2700 = vmatmul.mubr.msk.f32.gmra.mrb[40].mxu0 %vm98_vm0, %v50_v2 }
  0x5a   :  { %2732 = vmatmul.mubr.msk.f32.gmra.mrb[40].mxu1 %vm98_vm0, %v50_v2  ;;  %385 = vmatprep.mubr.f32.mxu0 %v7000_v7 }
  0x5b   :  { %642 = vmatprep.mubr.f32.mxu1 %v7000_v7 }
  0x5d   :  { %2701 = vmatmul.mubr.msk.f32.gmra.mrb[42].mxu0 %vm98_vm0, %v51_v3 }
  0x5e   :  { %2733 = vmatmul.mubr.msk.f32.gmra.mrb[42].mxu1 %vm98_vm0, %v51_v3  ;;  %391 = vmatprep.mubr.f32.mxu0 %v7000_v7 }
  0x5f   :  { %648 = vmatprep.mubr.f32.mxu1 %v7000_v7 }
  0x61   :  { %2702 = vmatmul.mubr.msk.f32.gmra.mrb[44].mxu0 %vm98_vm0, %v52_v4 }
  0x62   :  { %2734 = vmatmul.mubr.msk.f32.gmra.mrb[44].mxu1 %vm98_vm0, %v52_v4  ;;  %397 = vmatprep.mubr.f32.mxu0 %v7000_v7 }
  0x63   :  { %654 = vmatprep.mubr.f32.mxu1 %v7000_v7 }
  0x65   :  { %2703 = vmatmul.mubr.msk.f32.gmra.mrb[46].mxu0 %vm98_vm0, %v53_v5 }
  0x66   :  { %2735 = vmatmul.mubr.msk.f32.gmra.mrb[46].mxu1 %vm98_vm0, %v53_v5  ;;  %403 = vmatprep.mubr.f32.mxu0 %v7000_v7 }
  0x67   :  { %660 = vmatprep.mubr.f32.mxu1 %v7000_v7 }
  0x69   :  { %2704 = vmatmul.mubr.msk.f32.gmra.mrb[48].mxu0 %vm98_vm0, %v54_v6 }
  0x6a   :  { %2736 = vmatmul.mubr.msk.f32.gmra.mrb[48].mxu1 %vm98_vm0, %v54_v6  ;;  %409 = vmatprep.mubr.f32.mxu0 %v7000_v7 }
  0x6b   :  { %666 = vmatprep.mubr.f32.mxu1 %v7000_v7 }
  0x6d   :  { %2705 = vmatmul.mubr.msk.f32.gmra.mrb[50].mxu0 %vm98_vm0, %v55_v8 }
  0x6e   :  { %2737 = vmatmul.mubr.msk.f32.gmra.mrb[50].mxu1 %vm98_vm0, %v55_v8  ;;  %415 = vmatprep.mubr.f32.mxu0 %v7000_v7 }
  0x6f   :  { %672 = vmatprep.mubr.f32.mxu1 %v7000_v7 }
  0x71   :  { %2706 = vmatmul.mubr.msk.f32.gmra.mrb[52].mxu0 %vm98_vm0, %v56_v9 }
  0x72   :  { %2738 = vmatmul.mubr.msk.f32.gmra.mrb[52].mxu1 %vm98_vm0, %v56_v9  ;;  %421 = vmatprep.mubr.f32.mxu0 %v7000_v7 }
  0x73   :  { %678 = vmatprep.mubr.f32.mxu1 %v7000_v7 }
  0x75   :  { %2707 = vmatmul.mubr.msk.f32.gmra.mrb[54].mxu0 %vm98_vm0, %v57_v10 }
  0x76   :  { %2739 = vmatmul.mubr.msk.f32.gmra.mrb[54].mxu1 %vm98_vm0, %v57_v10  ;;  %427 = vmatprep.mubr.f32.mxu0 %v7000_v7 }
  0x77   :  { %684 = vmatprep.mubr.f32.mxu1 %v7000_v7 }
  0x79   :  { %2708 = vmatmul.mubr.msk.f32.gmra.mrb[56].mxu0 %vm98_vm0, %v58_v11 }
  0x7a   :  { %2740 = vmatmul.mubr.msk.f32.gmra.mrb[56].mxu1 %vm98_vm0, %v58_v11  ;;  %433 = vmatprep.mubr.f32.mxu0 %v7000_v7 }
  0x7b   :  { %690 = vmatprep.mubr.f32.mxu1 %v7000_v7 }
  0x7d   :  { %2709 = vmatmul.mubr.msk.f32.gmra.mrb[58].mxu0 %vm98_vm0, %v59_v12 }
  0x7e   :  { %2741 = vmatmul.mubr.msk.f32.gmra.mrb[58].mxu1 %vm98_vm0, %v59_v12  ;;  %439 = vmatprep.mubr.f32.mxu0 %v7000_v7 }
  0x7f   :  { %696 = vmatprep.mubr.f32.mxu1 %v7000_v7 }
  0x81   :  { %2710 = vmatmul.mubr.msk.f32.gmra.mrb[60].mxu0 %vm98_vm0, %v60_v13 }
  0x82   :  { %2742 = vmatmul.mubr.msk.f32.gmra.mrb[60].mxu1 %vm98_vm0, %v60_v13  ;;  %445 = vmatprep.mubr.f32.mxu0 %v7000_v7 }
  0x83   :  { %702 = vmatprep.mubr.f32.mxu1 %v7000_v7 }
  0x85   :  { %2711 = vmatmul.mubr.msk.f32.gmra.mrb[62].mxu0 %vm98_vm0, %v61_v14  ;;  %v840_v38 = vpop.permute.xlu0 %839 }
  0x86   :  { %2743 = vmatmul.mubr.msk.f32.gmra.mrb[62].mxu1 %vm98_vm0, %v61_v14  ;;  %v3629_v43 = vpop.permute.xlu1 %849 }
  0x8a   :  { %v845_v45 = vpop.permute.xlu0 %844 }
  0x8b   :  { %v3641_v50 = vpop.permute.xlu1 %854 }
  0x8e   :  { %v3649_v54 = vpop.permute.xlu0 %859 }
  0x8f   :  { %v3659_v59 = vpop.permute.xlu1 %864 }
  0x92   :  { %v3663_v61 = vpop.permute.xlu0 %869 }
  0x9a   :  { %v3673_v10 = vpop.permute.xlu1 %874 }
  0xdc   :  { %v261_v15 = vpop.f32.mrb[0].mxu0 }
  0xdd   :  { %v263_v16 = vpop.f32.mrb[1].mxu0  ;;  %v518_v17 = vpop.f32.mrb[0].mxu1  ;;  %v709_v4 = vmul.f32 2.0, %v261_v15 }
  0xde   :  { %v520_v18 = vpop.f32.mrb[1].mxu1  ;;  %v710_v5 = vmul.f32 2.0, %v263_v16  ;;  %v711_v8 = vmul.f32 2.0, %v518_v17  ;;  %v3685_v15 = vpop.permute.xlu0 %879 }
  0xdf   :  { %v712_v7 = vmul.f32 2.0, %v520_v18  ;;  %v3689_v17 = vsub.f32 %v840_v38, %v709_v4 }
  0xe0   :  { %v267_v19 = vpop.f32.mrb[2].mxu0 }
  0xe1   :  { %v524_v20 = vpop.f32.mrb[2].mxu1  ;;  %v269_v21 = vpop.f32.mrb[3].mxu0  ;;  %v713_v63 = vmul.f32 2.0, %v267_v19  ;;  %7315 = vst [vmem:[#allocation14_spill] sm:$0xff] %v3689_v17 }
  0xe2   :  { %v526_v22 = vpop.f32.mrb[3].mxu1  ;;  %v714_v2 = vmul.f32 2.0, %v269_v21  ;;  %v715_v9 = vmul.f32 2.0, %v524_v20  ;;  %v3691_v20 = vsub.f32 %v840_v38, %v710_v5 }
  0xe3   :  { %v3677_v12 = vsub.f32 %v845_v45, %v713_v63  ;;  %v716_v21 = vmul.f32 2.0, %v526_v22  ;;  %v3696_v63 = vsub.f32 %v840_v38, %v711_v8  ;;  %v3713_v8 = vsub.f32 %v840_v38, %v712_v7 }
  0xe4   :  { %v273_v23 = vpop.f32.mrb[4].mxu0  ;;  %7316 = vst [vmem:[#allocation15_spill] sm:$0xff] %v3691_v20 }
  0xe5   :  { %v3599_v24 = vpop.f32.mrb[4].mxu1  ;;  %v3601_v25 = vpop.f32.mrb[5].mxu0  ;;  %v717_v6 = vmul.f32 2.0, %v273_v23  ;;  %7312 = vst [vmem:[#allocation11_spill] sm:$0xff] %v3677_v12  ;;  %7318 = vst [vmem:[#allocation17_spill] sm:$0xff] %v3696_v63  ;;  %v1125_v4 = vmin.f32 %v3689_v17, %v3677_v12 }
  0xe6   :  { %v3603_v26 = vpop.f32.mrb[5].mxu1  ;;  %v719_v18 = vmul.f32 2.0, %v3599_v24  ;;  %v718_v22 = vmul.f32 2.0, %v3601_v25  ;;  %7321 = vst [vmem:[#allocation20_spill] sm:$0xff] %v3713_v8 }
  0xe7   :  { %v3694_v23 = vsub.f32 %v3629_v43, %v717_v6  ;;  %v720_v25 = vmul.f32 2.0, %v3603_v26 }
  0xe8   :  { %v279_v27 = vpop.f32.mrb[6].mxu0  ;;  %v3736_v26 = vsub.f32 %v3629_v43, %v718_v22 }
  0xe9   :  { %v3605_v28 = vpop.f32.mrb[6].mxu1  ;;  %v3607_v29 = vpop.f32.mrb[7].mxu0  ;;  %v721_v13 = vmul.f32 2.0, %v279_v27  ;;  %7317 = vst [vmem:[#allocation16_spill] sm:$0xff] %v3694_v23  ;;  %v3756_v22 = vsub.f32 %v3629_v43, %v720_v25 }
  0xea   :  { %v3609_v30 = vpop.f32.mrb[7].mxu1  ;;  %7325 = vst [vmem:[#allocation24_spill] sm:$0xff] %v3736_v26 }
  0xeb   :  { %v3707_v5 = vsub.f32 %v3641_v50, %v721_v13  ;;  %v1126_v13 = vmin.f32 %v1125_v4, %v3694_v23  ;;  %7327 = vst [vmem:[#allocation26_spill] sm:$0xff] %v3756_v22 }
  0xec   :  { %v285_v31 = vpop.f32.mrb[8].mxu0 }
  0xed   :  { %v3611_v32 = vpop.f32.mrb[8].mxu1  ;;  %v3613_v33 = vpop.f32.mrb[9].mxu0  ;;  %v725_v27 = vmul.f32 2.0, %v285_v31  ;;  %7320 = vst [vmem:[#allocation19_spill] sm:$0xff] %v3707_v5 }
  0xee   :  { %v3615_v34 = vpop.f32.mrb[9].mxu1 }
  0xef   :  { %v3727_v17 = vsub.f32 %v3649_v54, %v725_v27  ;;  %v724_v27 = vmul.f32 2.0, %v3609_v30 }
  0xf0   :  { %v291_v35 = vpop.f32.mrb[10].mxu0 }
  0xf1   :  { %v3617_v36 = vpop.f32.mrb[10].mxu1  ;;  %v3619_v37 = vpop.f32.mrb[11].mxu0  ;;  %7323 = vst [vmem:[#allocation22_spill] sm:$0xff] %v3727_v17 }
  0xf2   :  { %v3621_v39 = vpop.f32.mrb[11].mxu1 }
  0xf4   :  { %v3623_v40 = vpop.f32.mrb[12].mxu0 }
  0xf5   :  { %v3625_v41 = vpop.f32.mrb[12].mxu1  ;;  %v3627_v42 = vpop.f32.mrb[13].mxu0  ;;  %v733_v7 = vmul.f32 2.0, %v3623_v40 }
  0xf6   :  { %v3631_v44 = vpop.f32.mrb[13].mxu1 }
  0xf8   :  { %v3633_v46 = vpop.f32.mrb[14].mxu0 }
  0xf9   :  { %v3635_v47 = vpop.f32.mrb[14].mxu1  ;;  %v3637_v48 = vpop.f32.mrb[15].mxu0 }
  0xfa   :  { %v3639_v49 = vpop.f32.mrb[15].mxu1 }
  0xfc   :  { %v3643_v51 = vpop.f32.mrb[16].mxu0 }
  0xfd   :  { %v3645_v52 = vpop.f32.mrb[16].mxu1  ;;  %v3647_v53 = vpop.f32.mrb[17].mxu0  ;;  %v741_v23 = vmul.f32 2.0, %v3643_v51 }
  0xfe   :  { %v3651_v55 = vpop.f32.mrb[17].mxu1 }
  0xff   :  { %7309 = vst [vmem:[#allocation8_spill] sm:$0xff] %v3651_v55  ;;  %v3720_v55 = vpop.permute.xlu1 %884 }
 0x100   :  { %v3653_v56 = vpop.f32.mrb[18].mxu0 }
 0x101   :  { %v3655_v57 = vpop.f32.mrb[18].mxu1  ;;  %v3657_v58 = vpop.f32.mrb[19].mxu0  ;;  %v745_v51 = vmul.f32 2.0, %v3653_v56 }
 0x102   :  { %v3661_v60 = vpop.f32.mrb[19].mxu1 }
 0x103   :  { %7310 = vst [vmem:[#allocation9_spill] sm:$0xff] %v3661_v60  ;;  %v3683_v60 = vsub.f32 %v845_v45, %v714_v2  ;;  %v3776_v25 = vpop.permute.xlu1 %894 }
 0x104   :  { %v3665_v62 = vpop.f32.mrb[20].mxu0 }
 0x105   :  { %v3667_v0 = vpop.f32.mrb[20].mxu1  ;;  %v3669_v1 = vpop.f32.mrb[21].mxu0  ;;  %7313 = vst [vmem:[#allocation12_spill] sm:$0xff] %v3683_v60  ;;  %v1162_v24 = vmin.f32 %v3691_v20, %v3683_v60  ;;  %v737_v20 = vmul.f32 2.0, %v3633_v46 }
 0x106   :  { %v3671_v3 = vpop.f32.mrb[21].mxu1  ;;  %v3739_v60 = vpop.permute.xlu0 %889 }
 0x107   :  { %7311 = vst [vmem:[#allocation10_spill] sm:$0xff] %v3671_v3  ;;  %v3698_v3 = vsub.f32 %v845_v45, %v715_v9  ;;  %v3715_v9 = vsub.f32 %v845_v45, %v716_v21  ;;  %v3733_v45 = vsub.f32 %v3629_v43, %v719_v18  ;;  %v722_v21 = vmul.f32 2.0, %v3607_v29 }
 0x108   :  { %v3675_v11 = vpop.f32.mrb[22].mxu0  ;;  %v1163_v43 = vmin.f32 %v1162_v24, %v3736_v26 }
 0x109   :  { %v3679_v14 = vpop.f32.mrb[22].mxu1  ;;  %v3681_v19 = vpop.f32.mrb[23].mxu0  ;;  %7319 = vst [vmem:[#allocation18_spill] sm:$0xff] %v3698_v3  ;;  %7322 = vst [vmem:[#allocation21_spill] sm:$0xff] %v3715_v9  ;;  %v1199_v38 = vmin.f32 %v3696_v63, %v3698_v3  ;;  %v1236_v29 = vmin.f32 %v3713_v8, %v3715_v9  ;;  %v727_v63 = vmul.f32 2.0, %v3611_v32  ;;  %v3773_v32 = vsub.f32 %v3641_v50, %v722_v21 }
 0x10a   :  { %v3687_v16 = vpop.f32.mrb[23].mxu1  ;;  %7324 = vst [vmem:[#allocation23_spill] sm:$0xff] %v3733_v45  ;;  %v3779_v8 = vsub.f32 %v3641_v50, %v724_v27  ;;  %v3798_v27 = vpop.permute.xlu0 %899 }
 0x10b   :  { %7314 = vst [vmem:[#allocation13_spill] sm:$0xff] %v3687_v16  ;;  %v729_v16 = vmul.f32 2.0, %v291_v35  ;;  %v723_v35 = vmul.f32 2.0, %v3605_v28  ;;  %v1127_v28 = vmin.f32 %v1126_v13, %v3707_v5  ;;  %v726_v13 = vmul.f32 2.0, %v3613_v33  ;;  %7330 = vst [vmem:[#allocation29_spill] sm:$0xff] %v3773_v32 }
 0x10c   :  { %v3702_v2 = vpop.f32.mrb[24].mxu0  ;;  %v3767_v5 = vsub.f32 %v3663_v61, %v733_v7  ;;  %v1200_v9 = vmin.f32 %v1199_v38, %v3733_v45  ;;  %v728_v33 = vmul.f32 2.0, %v3615_v34  ;;  %7331 = vst [vmem:[#allocation30_spill] sm:$0xff] %v3779_v8  ;;  %v1237_v21 = vmin.f32 %v1236_v29, %v3756_v22 }
 0x10d   :  { %v3709_v6 = vpop.f32.mrb[24].mxu1  ;;  %v3711_v31 = vpop.f32.mrb[25].mxu0  ;;  %v3746_v40 = vsub.f32 %v3659_v59, %v729_v16  ;;  %v3763_v16 = vsub.f32 %v3641_v50, %v723_v35  ;;  %v1128_v46 = vmin.f32 %v1127_v28, %v3727_v17  ;;  %v3783_v28 = vsub.f32 %v3673_v10, %v737_v20 }
 0x10e   :  { %v3722_v12 = vpop.f32.mrb[25].mxu1  ;;  %7329 = vst [vmem:[#allocation28_spill] sm:$0xff] %v3767_v5  ;;  %v3792_v34 = vsub.f32 %v3649_v54, %v727_v63  ;;  %v3795_v26 = vsub.f32 %v3649_v54, %v726_v13  ;;  %v731_v50 = vmul.f32 2.0, %v3617_v36  ;;  %v3805_v45 = vsub.f32 %v3685_v15, %v741_v23 }
 0x10f   :  { %7326 = vst [vmem:[#allocation25_spill] sm:$0xff] %v3746_v40  ;;  %7328 = vst [vmem:[#allocation27_spill] sm:$0xff] %v3763_v16  ;;  %v1129_v7 = vmin.f32 %v1128_v46, %v3746_v40  ;;  %v1201_v56 = vmin.f32 %v1200_v9, %v3763_v16  ;;  %v749_v29 = vmul.f32 2.0, %v3665_v62  ;;  %v1164_v63 = vmin.f32 %v1163_v43, %v3773_v32 }
 0x110   :  { %v3741_v4 = vpop.f32.mrb[26].mxu0  ;;  %7332 = vst [vmem:[#allocation31_spill] sm:$0xff] %v3783_v28  ;;  %7333 = vst [vmem:[#allocation32_spill] sm:$0xff] %v3792_v34  ;;  %v3810_v13 = vsub.f32 %v3649_v54, %v728_v33  ;;  %v730_v36 = vmul.f32 2.0, %v3619_v37  ;;  %v735_v22 = vmul.f32 2.0, %v3625_v41  ;;  %v1238_v17 = vmin.f32 %v1237_v21, %v3779_v8  ;;  %v3830_v21 = vpop.permute.xlu1 %904 }
 0x111   :  { %v3749_v18 = vpop.f32.mrb[26].mxu1  ;;  %v3751_v3 = vpop.f32.mrb[27].mxu0  ;;  %7334 = vst [vmem:[#allocation33_spill] sm:$0xff] %v3795_v26  ;;  %v1130_v46 = vmin.f32 %v1129_v7, %v3767_v5  ;;  %7335 = vst [vmem:[#allocation34_spill] sm:$0xff] %v3805_v45  ;;  %v3817_v7 = vsub.f32 %v3720_v55, %v745_v51  ;;  %v753_v23 = vmul.f32 2.0, %v3675_v11  ;;  %v1202_v54 = vmin.f32 %v1201_v56, %v3792_v34 }
 0x112   :  { %v3760_v30 = vpop.f32.mrb[27].mxu1  ;;  %7336 = vst [vmem:[#allocation35_spill] sm:$0xff] %v3810_v13  ;;  %v1165_v37 = vmin.f32 %v1164_v63, %v3795_v26  ;;  %v3827_v41 = vsub.f32 %v3659_v59, %v731_v50  ;;  %v739_v33 = vmul.f32 2.0, %v3635_v47  ;;  %v734_v51 = vmul.f32 2.0, %v3627_v42  ;;  %v3849_v26 = vpop.permute.xlu0 %909 }
 0x113   :  { %v1131_v9 = vmin.f32 %v1130_v46, %v3783_v28  ;;  %7337 = vst [vmem:[#allocation36_spill] sm:$0xff] %v3817_v7  ;;  %v3837_v8 = vsub.f32 %v3739_v60, %v749_v29  ;;  %v757_v56 = vmul.f32 2.0, %v3702_v2  ;;  %v3841_v63 = vmin.f32 %v1238_v17, %v3810_v13 }
 0x114   :  { %v345_v35 = vpop.f32.mrb[28].mxu0  ;;  %7338 = vst [vmem:[#allocation37_spill] sm:$0xff] %v3827_v41  ;;  %v3844_v50 = vsub.f32 %v3659_v59, %v730_v36  ;;  %v3847_v47 = vsub.f32 %v3663_v61, %v735_v22  ;;  %v743_v42 = vmul.f32 2.0, %v3645_v52  ;;  %v3855_v2 = vsub.f32 %v3776_v25, %v753_v23 }
 0x115   :  { %v3786_v38 = vpop.f32.mrb[28].mxu1  ;;  %v3788_v24 = vpop.f32.mrb[29].mxu0  ;;  %v1132_v11 = vmin.f32 %v1131_v9, %v3805_v45  ;;  %7339 = vst [vmem:[#allocation38_spill] sm:$0xff] %v3837_v8  ;;  %v738_v9 = vmul.f32 2.0, %v3637_v48  ;;  %v761_v17 = vmul.f32 2.0, %v3741_v4  ;;  %v1203_v22 = vmin.f32 %v1202_v54, %v3827_v41 }
 0x116   :  { %v3800_v20 = vpop.f32.mrb[29].mxu1  ;;  %7340 = vst [vmem:[#allocation39_spill] sm:$0xff] %v3844_v50  ;;  %7341 = vst [vmem:[#allocation40_spill] sm:$0xff] %v3847_v47  ;;  %v3864_v34 = vmul.f32 2.0, %v3621_v39  ;;  %v3867_v52 = vsub.f32 %v3673_v10, %v739_v33  ;;  %v747_v48 = vmul.f32 2.0, %v3655_v57  ;;  %v3873_v23 = vsub.f32 %v3663_v61, %v734_v51  ;;  %v3884_v41 = vpop.permute.xlu1 %914 }
 0x117   :  { %v1133_v29 = vmin.f32 %v1132_v11, %v3817_v7  ;;  %7342 = vst [vmem:[#allocation41_spill] sm:$0xff] %v3855_v2  ;;  %v3877_v16 = vsub.f32 %v3798_v27, %v757_v56  ;;  %v765_v7 = vmul.f32 2.0, %v345_v35  ;;  %v1166_v54 = vmin.f32 %v1165_v37, %v3844_v50 }
 0x118   :  { %v351_v40 = vpop.f32.mrb[30].mxu0  ;;  %7343 = vst [vmem:[#allocation42_spill] sm:$0xff] %v3867_v52  ;;  %7344 = vst [vmem:[#allocation43_spill] sm:$0xff] %v3873_v23  ;;  %v1204_v39 = vmin.f32 %v1203_v22, %v3847_v47  ;;  %v3882_v33 = vsub.f32 %v3685_v15, %v743_v42  ;;  %v751_v57 = vmul.f32 2.0, %v3667_v0  ;;  %v3888_v51 = vsub.f32 %v3673_v10, %v738_v9  ;;  %v3900_v47 = vpop.permute.xlu0 %919 }
 0x119   :  { %v3820_v62 = vpop.f32.mrb[30].mxu1  ;;  %v3822_v43 = vpop.f32.mrb[31].mxu0  ;;  %v1134_v4 = vmin.f32 %v1133_v29, %v3837_v8  ;;  %7345 = vst [vmem:[#allocation44_spill] sm:$0xff] %v3877_v16  ;;  %v3892_v56 = vsub.f32 %v3830_v21, %v761_v17  ;;  %v769_v35 = vmul.f32 2.0, %v351_v40  ;;  %v742_v50 = vmul.f32 2.0, %v3647_v53 }
 0x11a   :  { %v3832_v46 = vpop.f32.mrb[31].mxu1  ;;  %7346 = vst [vmem:[#allocation45_spill] sm:$0xff] %v3882_v33  ;;  %7347 = vst [vmem:[#allocation46_spill] sm:$0xff] %v3888_v51  ;;  %v1205_v42 = vmin.f32 %v1204_v39, %v3867_v52  ;;  %v3903_v0 = vsub.f32 %v3720_v55, %v747_v48  ;;  %v755_v9 = vmul.f32 2.0, %v3679_v14  ;;  %v1167_v17 = vmin.f32 %v1166_v54, %v3873_v23 }
 0x11b   :  { %v1135_v29 = vmin.f32 %v1134_v4, %v3855_v2  ;;  %7348 = vst [vmem:[#allocation47_spill] sm:$0xff] %v3892_v56  ;;  %v3911_v2 = vsub.f32 %v3849_v26, %v765_v7  ;;  %v746_v53 = vmul.f32 2.0, %v3657_v58  ;;  %v3916_v52 = vsub.f32 %v3739_v60, %v751_v57  ;;  %v3930_v57 = vpop.permute.xlu1 %924 }
 0x11c   :  { %v357_v32 = vpop.f32.mrb[32].mxu0  ;;  %7349 = vst [vmem:[#allocation48_spill] sm:$0xff] %v3903_v0  ;;  %v1206_v39 = vmin.f32 %v1205_v42, %v3882_v33  ;;  %v759_v48 = vmul.f32 2.0, %v3709_v6  ;;  %v1168_v28 = vmin.f32 %v1167_v17, %v3888_v51  ;;  %v3927_v42 = vsub.f32 %v3685_v15, %v742_v50 }
 0x11d   :  { %v3858_v13 = vpop.f32.mrb[32].mxu1  ;;  %v3860_v36 = vpop.f32.mrb[33].mxu0  ;;  %v1136_v40 = vmin.f32 %v1135_v29, %v3877_v16  ;;  %7350 = vst [vmem:[#allocation49_spill] sm:$0xff] %v3911_v2  ;;  %v773_v8 = vmul.f32 2.0, %v357_v32  ;;  %7351 = vst [vmem:[#allocation50_spill] sm:$0xff] %v3916_v52  ;;  %v3922_v29 = vsub.f32 %v3884_v41, %v769_v35  ;;  %v3933_v6 = vsub.f32 %v3776_v25, %v755_v9 }
 0x11e   :  { %v3870_v11 = vpop.f32.mrb[33].mxu1  ;;  %7353 = vst [vmem:[#allocation52_spill] sm:$0xff] %v3927_v42  ;;  %v1207_v58 = vmin.f32 %v1206_v39, %v3903_v0  ;;  %v763_v17 = vmul.f32 2.0, %v3749_v18  ;;  %v750_v35 = vmul.f32 2.0, %v3669_v1  ;;  %v3944_v33 = vsub.f32 %v3720_v55, %v746_v53  ;;  %v3946_v39 = vpop.permute.xlu0 %929 }
 0x11f   :  { %v1137_v54 = vmin.f32 %v1136_v40, %v3892_v56  ;;  %7352 = vst [vmem:[#allocation51_spill] sm:$0xff] %v3922_v29  ;;  %7354 = vst [vmem:[#allocation53_spill] sm:$0xff] %v3933_v6  ;;  %v3941_v51 = vsub.f32 %v3900_v47, %v773_v8  ;;  %v3950_v0 = vsub.f32 %v3798_v27, %v759_v48  ;;  %v767_v18 = vmul.f32 2.0, %v3786_v38 }
 0x120   :  { %v363_v45 = vpop.f32.mrb[34].mxu0  ;;  %7356 = vst [vmem:[#allocation55_spill] sm:$0xff] %v3944_v33  ;;  %v1208_v9 = vmin.f32 %v1207_v58, %v3916_v52  ;;  %v754_v1 = vmul.f32 2.0, %v3681_v19  ;;  %v1169_v16 = vmin.f32 %v1168_v28, %v3927_v42  ;;  %v3963_v48 = vsub.f32 %v3830_v21, %v763_v17 }
 0x121   :  { %v3894_v37 = vpop.f32.mrb[34].mxu1  ;;  %v3896_v22 = vpop.f32.mrb[35].mxu0  ;;  %v777_v7 = vmul.f32 2.0, %v363_v45  ;;  %v1138_v45 = vmin.f32 %v1137_v54, %v3911_v2  ;;  %7355 = vst [vmem:[#allocation54_spill] sm:$0xff] %v3941_v51  ;;  %7357 = vst [vmem:[#allocation56_spill] sm:$0xff] %v3950_v0  ;;  %v771_v38 = vmul.f32 2.0, %v3820_v62  ;;  %v3969_v19 = vsub.f32 %v3739_v60, %v750_v35 }
 0x122   :  { %v3906_v4 = vpop.f32.mrb[35].mxu1  ;;  %v1209_v58 = vmin.f32 %v1208_v9, %v3933_v6  ;;  %7359 = vst [vmem:[#allocation58_spill] sm:$0xff] %v3963_v48  ;;  %v1170_v28 = vmin.f32 %v1169_v16, %v3944_v33  ;;  %v3977_v9 = vpop.permute.xlu1 %934  ;;  %v3981_v62 = vsub.f32 %v3849_v26, %v767_v18  ;;  %v775_v42 = vmul.f32 2.0, %v3858_v13 }
 0x123   :  { %v1139_v54 = vmin.f32 %v1138_v45, %v3922_v29  ;;  %v3956_v8 = vsub.f32 %v3930_v57, %v777_v7  ;;  %7360 = vst [vmem:[#allocation59_spill] sm:$0xff] %v3969_v19  ;;  %v758_v7 = vmul.f32 2.0, %v3711_v31  ;;  %v3985_v6 = vsub.f32 %v3776_v25, %v754_v1 }
 0x124   :  { %v369_v14 = vpop.f32.mrb[36].mxu0  ;;  %v1210_v17 = vmin.f32 %v1209_v58, %v3950_v0  ;;  %7362 = vst [vmem:[#allocation61_spill] sm:$0xff] %v3981_v62  ;;  %v762_v58 = vmul.f32 2.0, %v3751_v3  ;;  %v3998_v13 = vsub.f32 %v3884_v41, %v771_v38  ;;  %v779_v1 = vmul.f32 2.0, %v3894_v37 }
 0x125   :  { %v626_v23 = vpop.f32.mrb[36].mxu1  ;;  %v3924_v32 = vpop.f32.mrb[37].mxu0  ;;  %v781_v50 = vmul.f32 2.0, %v369_v14  ;;  %7358 = vst [vmem:[#allocation57_spill] sm:$0xff] %v3956_v8  ;;  %7363 = vst [vmem:[#allocation62_spill] sm:$0xff] %v3985_v6  ;;  %v766_v3 = vmul.f32 2.0, %v3788_v24  ;;  %v4014_v38 = vsub.f32 %v3900_v47, %v775_v42 }
 0x126   :  { %v3936_v40 = vpop.f32.mrb[37].mxu1  ;;  %v1211_v18 = vmin.f32 %v1210_v17, %v3963_v48  ;;  %7365 = vst [vmem:[#allocation64_spill] sm:$0xff] %v3998_v13  ;;  %v783_v37 = vmul.f32 2.0, %v626_v23  ;;  %v736_v29 = vmul.f32 2.0, %v3631_v44  ;;  %v4028_v23 = vsub.f32 %v3930_v57, %v779_v1 }
 0x127   :  { %v3974_v45 = vsub.f32 %v3946_v39, %v781_v50  ;;  %7367 = vst [vmem:[#allocation66_spill] sm:$0xff] %v4014_v38 }
 0x128   :  { %v375_v56 = vpop.f32.mrb[38].mxu0  ;;  %v1212_v17 = vmin.f32 %v1211_v18, %v3981_v62  ;;  %v4024_v18 = vsub.f32 %v3830_v21, %v762_v58  ;;  %7369 = vst [vmem:[#allocation68_spill] sm:$0xff] %v4028_v23  ;;  %v4039_v58 = vsub.f32 %v3849_v26, %v766_v3  ;;  %v4043_v1 = vsub.f32 %v3946_v39, %v783_v37 }
 0x129   :  { %v785_v14 = vmul.f32 2.0, %v375_v56  ;;  %v632_v53 = vpop.f32.mrb[38].mxu1  ;;  %v3958_v2 = vpop.f32.mrb[39].mxu0  ;;  %v1140_v56 = vmin.f32 %v1139_v54, %v3941_v51  ;;  %7361 = vst [vmem:[#allocation60_spill] sm:$0xff] %v3974_v45 }
 0x12a   :  { %v3966_v52 = vpop.f32.mrb[39].mxu1  ;;  %v3993_v51 = vpop.permute.xlu0 %939  ;;  %7368 = vst [vmem:[#allocation67_spill] sm:$0xff] %v4024_v18  ;;  %v1213_v24 = vmin.f32 %v1212_v17, %v3998_v13  ;;  %v787_v42 = vmul.f32 2.0, %v632_v53  ;;  %7370 = vst [vmem:[#allocation69_spill] sm:$0xff] %v4039_v58 }
 0x12b   :  { %v1141_v31 = vmin.f32 %v1140_v56, %v3956_v8  ;;  %v3989_v50 = vsub.f32 %v3977_v9, %v785_v14  ;;  %v1171_v14 = vmin.f32 %v1170_v28, %v3969_v19  ;;  %v4005_v56 = vsub.f32 %v3798_v27, %v758_v7  ;;  %7371 = vst [vmem:[#allocation70_spill] sm:$0xff] %v4043_v1 }
 0x12c   :  { %v381_v35 = vpop.f32.mrb[40].mxu0  ;;  %v1214_v17 = vmin.f32 %v1213_v24, %v4014_v38 }
 0x12d   :  { %7364 = vst [vmem:[#allocation63_spill] sm:$0xff] %v3989_v50  ;;  %v789_v54 = vmul.f32 2.0, %v381_v35  ;;  %v638_v16 = vpop.f32.mrb[40].mxu1  ;;  %v3991_v33 = vpop.f32.mrb[41].mxu0  ;;  %7366 = vst [vmem:[#allocation65_spill] sm:$0xff] %v4005_v56  ;;  %v1142_v35 = vmin.f32 %v1141_v31, %v3974_v45  ;;  %v1172_v28 = vmin.f32 %v1171_v14, %v3985_v6 }
 0x12e   :  { %v4001_v0 = vpop.f32.mrb[41].mxu1  ;;  %v791_v53 = vmul.f32 2.0, %v638_v16  ;;  %v4053_v3 = vpop.permute.xlu0 %949  ;;  %v1215_v37 = vmin.f32 %v1214_v17, %v4028_v23  ;;  %v4058_v16 = vsub.f32 %v3977_v9, %v787_v42 }
 0x12f   :  { %v4009_v8 = vsub.f32 %v3993_v51, %v789_v54  ;;  %v1143_v7 = vmin.f32 %v1142_v35, %v3989_v50  ;;  %v4021_v54 = vpop.permute.xlu1 %944  ;;  %v1173_v14 = vmin.f32 %v1172_v28, %v4005_v56  ;;  %v4047_v28 = vsub.f32 %v3659_v59, %v3864_v34 }
 0x130   :  { %v387_v48 = vpop.f32.mrb[42].mxu0  ;;  %7373 = vst [vmem:[#allocation72_spill] sm:$0xff] %v4058_v16  ;;  %v4063_v34 = vsub.f32 %v3663_v61, %v736_v29  ;;  %v1216_v17 = vmin.f32 %v1215_v37, %v4043_v1  ;;  %v4075_v42 = vsub.f32 %v3993_v51, %v791_v53  ;;  %v782_v29 = vmul.f32 2.0, %v3924_v32 }
 0x131   :  { %v793_v19 = vmul.f32 2.0, %v387_v48  ;;  %v644_v31 = vpop.f32.mrb[42].mxu1  ;;  %v4019_v45 = vpop.f32.mrb[43].mxu0  ;;  %v770_v48 = vmul.f32 2.0, %v3822_v43  ;;  %v1144_v35 = vmin.f32 %v1143_v7, %v4009_v8  ;;  %7372 = vst [vmem:[#allocation71_spill] sm:$0xff] %v4047_v28  ;;  %v774_v43 = vmul.f32 2.0, %v3860_v36 }
 0x132   :  { %v4030_v44 = vpop.f32.mrb[43].mxu1  ;;  %v1174_v24 = vmin.f32 %v1173_v14, %v4024_v18  ;;  %v795_v38 = vmul.f32 2.0, %v644_v31  ;;  %7374 = vst [vmem:[#allocation73_spill] sm:$0xff] %v4063_v34  ;;  %7376 = vst [vmem:[#allocation75_spill] sm:$0xff] %v4075_v42  ;;  %v1217_v53 = vmin.f32 %v1216_v17, %v4058_v16  ;;  %v740_v17 = vmul.f32 2.0, %v3639_v49  ;;  %v4111_v50 = vpop.permute.xlu0 %959 }
 0x133   :  { %v4036_v6 = vsub.f32 %v4021_v54, %v793_v19  ;;  %v4066_v36 = vsub.f32 %v3884_v41, %v770_v48  ;;  %v4078_v61 = vsub.f32 %v3900_v47, %v774_v43  ;;  %v790_v49 = vmul.f32 2.0, %v3991_v33 }
 0x134   :  { %v393_v13 = vpop.f32.mrb[44].mxu0  ;;  %v1175_v14 = vmin.f32 %v1174_v24, %v4039_v58  ;;  %v1240_v24 = vmin.f32 %v3841_v63, %v4047_v28  ;;  %v4084_v58 = vpop.permute.xlu1 %954  ;;  %v4129_v33 = vsub.f32 %v3673_v10, %v740_v17 }
 0x135   :  { %v1145_v7 = vmin.f32 %v1144_v35, %v4036_v6  ;;  %v797_v19 = vmul.f32 2.0, %v393_v13  ;;  %v650_v56 = vpop.f32.mrb[44].mxu1  ;;  %v4051_v62 = vpop.f32.mrb[45].mxu0  ;;  %7375 = vst [vmem:[#allocation74_spill] sm:$0xff] %v4066_v36  ;;  %v778_v13 = vmul.f32 2.0, %v3896_v22  ;;  %7377 = vst [vmem:[#allocation76_spill] sm:$0xff] %v4078_v61  ;;  %v4142_v10 = vsub.f32 %v3993_v51, %v790_v49 }
 0x136   :  { %v4060_v59 = vpop.f32.mrb[45].mxu1  ;;  %v799_v31 = vmul.f32 2.0, %v650_v56  ;;  %v4088_v56 = vsub.f32 %v4021_v54, %v795_v38  ;;  %v1176_v32 = vmin.f32 %v1175_v14, %v4066_v36  ;;  %v1241_v63 = vmin.f32 %v1240_v24, %v4063_v34  ;;  %7386 = vst [vmem:[#allocation83_spill] sm:$0xff] %v4129_v33 }
 0x137   :  { %v4070_v35 = vsub.f32 %v4053_v3, %v797_v19  ;;  %v1218_v38 = vmin.f32 %v1217_v53, %v4075_v42 }
 0x138   :  { %v399_v18 = vpop.f32.mrb[46].mxu0  ;;  %7378 = vst [vmem:[#allocation77_spill] sm:$0xff] %v4088_v56  ;;  %v1177_v14 = vmin.f32 %v1176_v32, %v4078_v61  ;;  %v7384_v32 = vld [vmem:[#allocation8_spill] sm:$0xff] }
 0x139   :  { %v1146_v48 = vmin.f32 %v1145_v7, %v4070_v35  ;;  %v801_v22 = vmul.f32 2.0, %v399_v18  ;;  %v656_v23 = vpop.f32.mrb[46].mxu1  ;;  %v401_v19 = vpop.f32.mrb[47].mxu0  ;;  %v4094_v7 = vsub.f32 %v3930_v57, %v778_v13  ;;  %v786_v18 = vmul.f32 2.0, %v3958_v2 }
 0x13a   :  { %v803_v37 = vmul.f32 2.0, %v656_v23  ;;  %v4090_v43 = vpop.f32.mrb[47].mxu1  ;;  %v4104_v23 = vsub.f32 %v4053_v3, %v799_v31  ;;  %v4108_v13 = vsub.f32 %v3946_v39, %v782_v29  ;;  %v1219_v24 = vmin.f32 %v1218_v38, %v4088_v56 }
 0x13b   :  { %7379 = vst [vmem:[#allocation78_spill] sm:$0xff] %v4094_v7  ;;  %v4098_v1 = vsub.f32 %v4084_v58, %v801_v22  ;;  %v744_v29 = vmul.f32 2.0, %v7384_v32  ;;  %v1178_v61 = vmin.f32 %v1177_v14, %v4094_v7  ;;  %v794_v38 = vmul.f32 2.0, %v4019_v45  ;;  %v7388_v32 = vld [vmem:[#allocation9_spill] sm:$0xff] }
 0x13c   :  { %7381 = vst [vmem:[#allocation80_spill] sm:$0xff] %v4104_v23  ;;  %v405_v28 = vpop.f32.mrb[48].mxu0  ;;  %7382 = vst [vmem:[#allocation81_spill] sm:$0xff] %v4108_v13  ;;  %v4116_v31 = vsub.f32 %v4084_v58, %v803_v37  ;;  %v1220_v37 = vmin.f32 %v1219_v24, %v4104_v23  ;;  %v748_v42 = vmul.f32 2.0, %v7388_v32  ;;  %v798_v45 = vmul.f32 2.0, %v4051_v62 }
 0x13d   :  { %7380 = vst [vmem:[#allocation79_spill] sm:$0xff] %v4098_v1  ;;  %v1147_v2 = vmin.f32 %v1146_v48, %v4098_v1  ;;  %v805_v36 = vmul.f32 2.0, %v405_v28  ;;  %v662_v22 = vpop.f32.mrb[48].mxu1  ;;  %v407_v16 = vpop.f32.mrb[49].mxu0  ;;  %v4123_v28 = vsub.f32 %v3977_v9, %v786_v18  ;;  %v1179_v14 = vmin.f32 %v1178_v61, %v4108_v13  ;;  %7389 = vst [vmem:[#allocation9_spill] sm:$0xff] %v4142_v10  ;;  %v7391_v61 = vld [vmem:[#allocation10_spill] sm:$0xff] }
 0x13e   :  { %7383 = vst [vmem:[#allocation82_spill] sm:$0xff] %v4116_v31  ;;  %v807_v53 = vmul.f32 2.0, %v662_v22  ;;  %v4118_v34 = vpop.f32.mrb[49].mxu1  ;;  %v4139_v1 = vpop.permute.xlu1 %964  ;;  %v1221_v17 = vmin.f32 %v1220_v37, %v4116_v31  ;;  %v4149_v32 = vsub.f32 %v3685_v15, %v744_v29  ;;  %v4157_v49 = vsub.f32 %v4021_v54, %v794_v38 }
 0x13f   :  { %7385 = vst [vmem:[#allocation8_spill] sm:$0xff] %v4123_v28  ;;  %v4126_v48 = vsub.f32 %v4111_v50, %v805_v36  ;;  %v802_v23 = vmul.f32 2.0, %v401_v19  ;;  %v1242_v15 = vmin.f32 %v1241_v63, %v4129_v33  ;;  %v4165_v29 = vsub.f32 %v3720_v55, %v748_v42  ;;  %v4168_v31 = vpop.permute.xlu0 %969  ;;  %v7396_v42 = vld [vmem:[#allocation13_spill] sm:$0xff] }
 0x140   :  { %v4134_v22 = vsub.f32 %v4111_v50, %v807_v53  ;;  %v411_v56 = vpop.f32.mrb[50].mxu0  ;;  %7390 = vst [vmem:[#allocation85_spill] sm:$0xff] %v4149_v32  ;;  %7392 = vst [vmem:[#allocation10_spill] sm:$0xff] %v4157_v49  ;;  %v4172_v38 = vsub.f32 %v4053_v3, %v798_v45  ;;  %v756_v63 = vmul.f32 2.0, %v7396_v42 }
 0x141   :  { %v1148_v18 = vmin.f32 %v1147_v2, %v4126_v48  ;;  %v809_v7 = vmul.f32 2.0, %v411_v56  ;;  %v668_v36 = vpop.f32.mrb[50].mxu1  ;;  %v413_v5 = vpop.f32.mrb[51].mxu0  ;;  %v752_v2 = vmul.f32 2.0, %v7391_v61  ;;  %v1180_v56 = vmin.f32 %v1179_v14, %v4123_v28  ;;  %7394 = vst [vmem:[#allocation87_spill] sm:$0xff] %v4165_v29 }
 0x142   :  { %7387 = vst [vmem:[#allocation84_spill] sm:$0xff] %v4134_v22  ;;  %v811_v24 = vmul.f32 2.0, %v668_v36  ;;  %v4146_v53 = vpop.f32.mrb[51].mxu1  ;;  %v1222_v62 = vmin.f32 %v1221_v17, %v4134_v22  ;;  %7395 = vst [vmem:[#allocation88_spill] sm:$0xff] %v4172_v38  ;;  %v1243_v55 = vmin.f32 %v1242_v15, %v4149_v32  ;;  %v4187_v45 = vsub.f32 %v4084_v58, %v802_v23 }
 0x143   :  { %v4154_v13 = vsub.f32 %v4139_v1, %v809_v7  ;;  %v1181_v19 = vmin.f32 %v1180_v56, %v4142_v10  ;;  %v4183_v33 = vsub.f32 %v3739_v60, %v752_v2  ;;  %v810_v32 = vmul.f32 2.0, %v413_v5  ;;  %v4195_v2 = vpop.permute.xlu1 %974 }
 0x144   :  { %v4161_v37 = vsub.f32 %v4139_v1, %v811_v24  ;;  %v417_v36 = vpop.f32.mrb[52].mxu0  ;;  %7398 = vst [vmem:[#allocation89_spill] sm:$0xff] %v4187_v45  ;;  %v1244_v15 = vmin.f32 %v1243_v55, %v4165_v29  ;;  %v760_v60 = vmul.f32 2.0, %v3722_v12 }
 0x145   :  { %v1149_v14 = vmin.f32 %v1148_v18, %v4154_v13  ;;  %v813_v61 = vmul.f32 2.0, %v417_v36  ;;  %v674_v7 = vpop.f32.mrb[52].mxu1  ;;  %v419_v28 = vpop.f32.mrb[53].mxu0  ;;  %v806_v18 = vmul.f32 2.0, %v407_v16  ;;  %7397 = vst [vmem:[#allocation13_spill] sm:$0xff] %v4183_v33  ;;  %v1182_v56 = vmin.f32 %v1181_v19, %v4157_v49 }
 0x146   :  { %7393 = vst [vmem:[#allocation86_spill] sm:$0xff] %v4161_v37  ;;  %v1223_v17 = vmin.f32 %v1222_v62, %v4161_v37  ;;  %v815_v24 = vmul.f32 2.0, %v674_v7  ;;  %v4175_v22 = vpop.f32.mrb[53].mxu1  ;;  %v4202_v37 = vsub.f32 %v3776_v25, %v756_v63  ;;  %v1245_v12 = vmin.f32 %v1244_v15, %v4183_v33  ;;  %v4223_v15 = vpop.permute.xlu0 %979 }
 0x147   :  { %v4180_v36 = vsub.f32 %v4168_v31, %v813_v61  ;;  %v1183_v19 = vmin.f32 %v1182_v56, %v4172_v38  ;;  %v4205_v5 = vsub.f32 %v4111_v50, %v806_v18  ;;  %v4217_v25 = vsub.f32 %v4139_v1, %v810_v32 }
 0x148   :  { %v4190_v62 = vsub.f32 %v4168_v31, %v815_v24  ;;  %v423_v7 = vpop.f32.mrb[54].mxu0  ;;  %7400 = vst [vmem:[#allocation91_spill] sm:$0xff] %v4202_v37  ;;  %v4221_v38 = vsub.f32 %v3798_v27, %v760_v60  ;;  %v1246_v33 = vmin.f32 %v1245_v12, %v4202_v37  ;;  %v768_v60 = vmul.f32 2.0, %v3800_v20 }
 0x149   :  { %v1150_v16 = vmin.f32 %v1149_v14, %v4180_v36  ;;  %v817_v42 = vmul.f32 2.0, %v423_v7  ;;  %v680_v61 = vpop.f32.mrb[54].mxu1  ;;  %v425_v10 = vpop.f32.mrb[55].mxu0  ;;  %7401 = vst [vmem:[#allocation92_spill] sm:$0xff] %v4205_v5  ;;  %v814_v14 = vmul.f32 2.0, %v419_v28  ;;  %v764_v7 = vmul.f32 2.0, %v3760_v30 }
 0x14a   :  { %7399 = vst [vmem:[#allocation90_spill] sm:$0xff] %v4190_v62  ;;  %v1224_v23 = vmin.f32 %v1223_v17, %v4190_v62  ;;  %v819_v49 = vmul.f32 2.0, %v680_v61  ;;  %v4199_v24 = vpop.f32.mrb[55].mxu1  ;;  %v1184_v56 = vmin.f32 %v1183_v19, %v4187_v45  ;;  %7403 = vst [vmem:[#allocation94_spill] sm:$0xff] %v4217_v25  ;;  %v818_v18 = vmul.f32 2.0, %v425_v10 }
 0x14b   :  { %v4208_v55 = vsub.f32 %v4195_v2, %v817_v42  ;;  %7404 = vst [vmem:[#allocation95_spill] sm:$0xff] %v4221_v38  ;;  %v4237_v27 = vsub.f32 %v3830_v21, %v764_v7  ;;  %v1247_v21 = vmin.f32 %v1246_v33, %v4221_v38  ;;  %v4249_v7 = vpop.permute.xlu1 %984 }
 0x14c   :  { %v4214_v17 = vsub.f32 %v4195_v2, %v819_v49  ;;  %v429_v61 = vpop.f32.mrb[56].mxu0  ;;  %v1185_v32 = vmin.f32 %v1184_v56, %v4205_v5  ;;  %v4245_v56 = vsub.f32 %v4195_v2, %v818_v18 }
 0x14d   :  { %v1151_v63 = vmin.f32 %v1150_v16, %v4208_v55  ;;  %v821_v28 = vmul.f32 2.0, %v429_v61  ;;  %v686_v29 = vpop.f32.mrb[56].mxu1  ;;  %v431_v42 = vpop.f32.mrb[57].mxu0  ;;  %v4231_v16 = vsub.f32 %v4168_v31, %v814_v14  ;;  %7406 = vst [vmem:[#allocation97_spill] sm:$0xff] %v4237_v27 }
 0x14e   :  { %7402 = vst [vmem:[#allocation93_spill] sm:$0xff] %v4214_v17  ;;  %v1225_v30 = vmin.f32 %v1224_v23, %v4214_v17  ;;  %v823_v19 = vmul.f32 2.0, %v686_v29  ;;  %v4226_v49 = vpop.f32.mrb[57].mxu1  ;;  %v822_v29 = vmul.f32 2.0, %v431_v42  ;;  %v1186_v12 = vmin.f32 %v1185_v32, %v4217_v25  ;;  %7408 = vst [vmem:[#allocation99_spill] sm:$0xff] %v4245_v56 }
 0x14f   :  { %7405 = vst [vmem:[#allocation96_spill] sm:$0xff] %v4231_v16  ;;  %v4234_v10 = vsub.f32 %v4223_v15, %v821_v28  ;;  %v772_v32 = vmul.f32 2.0, %v3832_v46 }
 0x150   :  { %v4241_v23 = vsub.f32 %v4223_v15, %v823_v19  ;;  %v435_v61 = vpop.f32.mrb[58].mxu0  ;;  %v1187_v18 = vmin.f32 %v1186_v12, %v4231_v16  ;;  %v4264_v33 = vsub.f32 %v4223_v15, %v822_v29 }
 0x151   :  { %v1152_v14 = vmin.f32 %v1151_v63, %v4234_v10  ;;  %v825_v37 = vmul.f32 2.0, %v435_v61  ;;  %v692_v28 = vpop.f32.mrb[58].mxu1  ;;  %v437_v5 = vpop.f32.mrb[59].mxu0  ;;  %v1248_v63 = vmin.f32 %v1247_v21, %v4237_v27  ;;  %v4261_v61 = vsub.f32 %v3849_v26, %v768_v60 }
 0x152   :  { %7407 = vst [vmem:[#allocation98_spill] sm:$0xff] %v4241_v23  ;;  %v1226_v20 = vmin.f32 %v1225_v30, %v4241_v23  ;;  %v827_v19 = vmul.f32 2.0, %v692_v28  ;;  %v826_v45 = vmul.f32 2.0, %v437_v5  ;;  %v4252_v42 = vpop.f32.mrb[59].mxu1  ;;  %7410 = vst [vmem:[#allocation101_spill] sm:$0xff] %v4264_v33  ;;  %v776_v28 = vmul.f32 2.0, %v3870_v11  ;;  %v4272_v21 = vpop.permute.xlu0 %989 }
 0x153   :  { %v4257_v25 = vsub.f32 %v4249_v7, %v825_v37  ;;  %7409 = vst [vmem:[#allocation100_spill] sm:$0xff] %v4261_v61  ;;  %v1188_v46 = vmin.f32 %v1187_v18, %v4245_v56  ;;  %v4281_v11 = vsub.f32 %v3884_v41, %v772_v32  ;;  %v784_v41 = vmul.f32 2.0, %v3936_v40 }
 0x154   :  { %v4267_v30 = vsub.f32 %v4249_v7, %v827_v19  ;;  %v441_v5 = vpop.f32.mrb[60].mxu0  ;;  %v4276_v60 = vsub.f32 %v4249_v7, %v826_v45  ;;  %v4296_v23 = vsub.f32 %v3900_v47, %v776_v28 }
 0x155   :  { %v1153_v12 = vmin.f32 %v1152_v14, %v4257_v25  ;;  %v829_v37 = vmul.f32 2.0, %v441_v5  ;;  %v698_v38 = vpop.f32.mrb[60].mxu1  ;;  %v443_v16 = vpop.f32.mrb[61].mxu0  ;;  %7413 = vst [vmem:[#allocation104_spill] sm:$0xff] %v4281_v11  ;;  %v780_v14 = vmul.f32 2.0, %v3906_v4  ;;  %v1249_v5 = vmin.f32 %v1248_v63, %v4261_v61 }
 0x156   :  { %7411 = vst [vmem:[#allocation102_spill] sm:$0xff] %v4267_v30  ;;  %v1227_v26 = vmin.f32 %v1226_v20, %v4267_v30  ;;  %7412 = vst [vmem:[#allocation103_spill] sm:$0xff] %v4276_v60  ;;  %v831_v29 = vmul.f32 2.0, %v698_v38  ;;  %v830_v19 = vmul.f32 2.0, %v443_v16  ;;  %v4278_v27 = vpop.f32.mrb[61].mxu1  ;;  %v1189_v20 = vmin.f32 %v1188_v46, %v4264_v33  ;;  %v4300_v63 = vpop.permute.xlu1 %994 }
 0x157   :  { %v4285_v18 = vsub.f32 %v4272_v21, %v829_v37  ;;  %7416 = vst [vmem:[#allocation107_spill] sm:$0xff] %v4296_v23  ;;  %v7417_v30 = vlaneseq  ;;  %v1250_v40 = vmin.f32 %v1249_v5, %v4281_v11  ;;  %v4311_v28 = vsub.f32 %v3930_v57, %v780_v14 }
 0x158   :  { %v4290_v45 = vsub.f32 %v4272_v21, %v831_v29  ;;  %v4293_v38 = vsub.f32 %v4272_v21, %v830_v19  ;;  %v447_v16 = vpop.f32.mrb[62].mxu0  ;;  %v1190_v46 = vmin.f32 %v1189_v20, %v4276_v60  ;;  %v4327_v57 = vsub.f32 %v3946_v39, %v784_v41 }
 0x159   :  { %7414 = vst [vmem:[#allocation105_spill] sm:$0xff] %v4285_v18  ;;  %v1154_v4 = vmin.f32 %v1153_v12, %v4285_v18  ;;  %v833_v32 = vmul.f32 2.0, %v447_v16  ;;  %v704_v37 = vpop.f32.mrb[62].mxu1  ;;  %v449_v56 = vpop.f32.mrb[63].mxu0  ;;  %v4307_v47 = vshrl.u32 %v7417_v30, 7  ;;  %7419 = vst [vmem:[#allocation109_spill] sm:$0xff] %v4311_v28 }
 0x15a   :  { %7415 = vst [vmem:[#allocation106_spill] sm:$0xff] %v4290_v45  ;;  %v1228_v29 = vmin.f32 %v1227_v26, %v4290_v45  ;;  %v835_v61 = vmul.f32 2.0, %v704_v37  ;;  %v834_v19 = vmul.f32 2.0, %v449_v56  ;;  %v4304_v33 = vpop.f32.mrb[63].mxu1  ;;  %v788_v16 = vmul.f32 2.0, %v3966_v52  ;;  %7422 = vst [vmem:[#allocation112_spill] sm:$0xff] %v4327_v57 }
 0x15b   :  { %7418 = vst [vmem:[#allocation108_spill] sm:$0xff] %v4307_v47  ;;  %v4314_v12 = vsub.f32 %v4300_v63, %v833_v32  ;;  %v1191_v20 = vmin.f32 %v1190_v46, %v4293_v38  ;;  %v1251_v37 = vmin.f32 %v1250_v40, %v4296_v23  ;;  %v792_v14 = vmul.f32 2.0, %v4001_v0  ;;  %v7481_v45 = vld [vmem:[#allocation36_spill] sm:$0xff] }
 0x15c   :  { %v4319_v26 = vsub.f32 %v4300_v63, %v835_v61  ;;  %v4322_v56 = vsub.f32 %v4300_v63, %v834_v19  ;;  %v4335_v61 = vadd.s32 8, %v4307_v47  ;;  %v4339_v40 = vsub.f32 %v3977_v9, %v788_v16  ;;  %v7493_v18 = vld [vmem:[#allocation32_spill] sm:$0xff] }
 0x15d   :  { %7420 = vst [vmem:[#allocation110_spill] sm:$0xff] %v4314_v12  ;;  %v1155_v5 = vmin.f32 %v1154_v4, %v4314_v12  ;;  %v1252_v19 = vmin.f32 %v1251_v37, %v4311_v28  ;;  %v796_v4 = vmul.f32 2.0, %v4030_v44  ;;  %v4343_v39 = vadd.s32 16, %v4307_v47 }
 0x15e   :  { %7421 = vst [vmem:[#allocation111_spill] sm:$0xff] %v4319_v26  ;;  %v1229_v32 = vmin.f32 %v1228_v29, %v4319_v26  ;;  %v4332_v52 = vmin.f32 %v1191_v20, %v4322_v56  ;;  %7423 = vst [vmem:[#allocation113_spill] sm:$0xff] %v4335_v61  ;;  %v4347_v29 = vsub.f32 %v3993_v51, %v792_v14  ;;  %v800_v20 = vmul.f32 2.0, %v4060_v59 }
 0x15f   :  { %v1156_v46 = vrot.slane %v1155_v5, 4  ;;  %7424 = vst [vmem:[#allocation114_spill] sm:$0xff] %v4339_v40  ;;  %7425 = vst [vmem:[#allocation115_spill] sm:$0xff] %v4343_v39  ;;  %v1253_v41 = vmin.f32 %v1252_v19, %v4327_v57  ;;  %v4351_v30 = vcvt.s32.f32 %v4307_v47  ;;  %v4354_v9 = vcvt.s32.f32 %v4335_v61 }
 0x160   :  { %7426 = vst [vmem:[#allocation116_spill] sm:$0xff] %v4347_v29  ;;  %v4358_v16 = vsub.f32 %v4021_v54, %v796_v4  ;;  %v4365_v51 = vadd.s32 24, %v4307_v47  ;;  %v4368_v59 = vadd.s32 32, %v4307_v47  ;;  %v4371_v19 = vadd.s32 40, %v4307_v47 }
 0x161   :  { %v1157_v0 = vmin.f32 %v1155_v5, %v1156_v46  ;;  %v1254_v44 = vmin.f32 %v1253_v41, %v4339_v40  ;;  %v804_v5 = vmul.f32 2.0, %v4090_v43  ;;  %v4362_v46 = vcvt.s32.f32 %v4343_v39 }
 0x162   :  { %7427 = vst [vmem:[#allocation117_spill] sm:$0xff] %v4358_v16  ;;  %7428 = vst [vmem:[#allocation118_spill] sm:$0xff] %v4365_v51  ;;  %v4375_v54 = vsub.f32 %v4053_v3, %v800_v20  ;;  %v808_v43 = vmul.f32 2.0, %v4118_v34  ;;  %v4379_v4 = vadd.s32 48, %v4307_v47  ;;  %v4382_v39 = vadd.s32 56, %v4307_v47 }
 0x163   :  { %v1158_v37 = vrot.slane %v1157_v0, 2  ;;  %7429 = vst [vmem:[#allocation119_spill] sm:$0xff] %v4368_v59  ;;  %7430 = vst [vmem:[#allocation120_spill] sm:$0xff] %v4371_v19  ;;  %v1255_v41 = vmin.f32 %v1254_v44, %v4347_v29  ;;  %v4385_v61 = vadd.s32 64, %v4307_v47  ;;  %v4392_v3 = vsub.f32 %v4084_v58, %v804_v5 }
 0x164   :  { %7431 = vst [vmem:[#allocation121_spill] sm:$0xff] %v4375_v54  ;;  %7432 = vst [vmem:[#allocation122_spill] sm:$0xff] %v4379_v4  ;;  %v4395_v34 = vcvt.s32.f32 %v4365_v51  ;;  %v4398_v29 = vcvt.s32.f32 %v4368_v59  ;;  %v4401_v40 = vadd.s32 80, %v4307_v47  ;;  %v4404_v57 = vadd.s32 88, %v4307_v47 }
 0x165   :  { %v1159_v14 = vmin.f32 %v1157_v0, %v1158_v37  ;;  %7433 = vst [vmem:[#allocation123_spill] sm:$0xff] %v4382_v39  ;;  %7434 = vst [vmem:[#allocation124_spill] sm:$0xff] %v4385_v61  ;;  %v1230_v0 = vrot.slane %v1229_v32, 4  ;;  %v4388_v37 = vadd.s32 72, %v4307_v47  ;;  %v1256_v44 = vmin.f32 %v1255_v41, %v4358_v16 }
 0x166   :  { %7436 = vst [vmem:[#allocation126_spill] sm:$0xff] %v4392_v3  ;;  %7437 = vst [vmem:[#allocation127_spill] sm:$0xff] %v4401_v40  ;;  %v4407_v28 = vcvt.s32.f32 %v4371_v19  ;;  %v4411_v58 = vsub.f32 %v4111_v50, %v808_v43  ;;  %v812_v5 = vmul.f32 2.0, %v4146_v53  ;;  %v4415_v51 = vcvt.s32.f32 %v4379_v4 }
 0x167   :  { %7435 = vst [vmem:[#allocation125_spill] sm:$0xff] %v4388_v37  ;;  %v1160_v20 = vrot.slane %v1159_v14, 1  ;;  %7438 = vst [vmem:[#allocation128_spill] sm:$0xff] %v4404_v57  ;;  %v1257_v41 = vmin.f32 %v1256_v44, %v4375_v54  ;;  %v4418_v59 = vcvt.s32.f32 %v4382_v39  ;;  %v816_v16 = vmul.f32 2.0, %v4175_v22  ;;  %v7467_v54 = vld [vmem:[#allocation22_spill] sm:$0xff] }
 0x168   :  { %7439 = vst [vmem:[#allocation129_spill] sm:$0xff] %v4411_v58  ;;  %v1231_v23 = vmin.f32 %v1229_v32, %v1230_v0  ;;  %v4422_v11 = vcvt.s32.f32 %v4385_v61  ;;  %v4425_v19 = vcvt.s32.f32 %v4388_v37  ;;  %v4431_v53 = vcvt.s32.f32 %v4401_v40 }
 0x169   :  { %v1258_v50 = vmin.f32 %v1257_v41, %v4392_v3  ;;  %v4428_v43 = vmin.f32 %v1159_v14, %v1160_v20  ;;  %v4434_v44 = vcvt.s32.f32 %v4404_v57  ;;  %v4437_v4 = vadd.s32 96, %v4307_v47 }
 0x16a   :  { %v4440_v22 = vadd.s32 104, %v4307_v47  ;;  %v4443_v32 = vadd.s32 112, %v4307_v47  ;;  %v4446_v0 = vadd.s32 120, %v4307_v47  ;;  %v4450_v20 = vsub.f32 %v4139_v1, %v812_v5  ;;  %v7446_v1 = vld [vmem:[#allocation79_spill] sm:$0xff] }
 0x16b   :  { %7440 = vst [vmem:[#allocation130_spill] sm:$0xff] %v4437_v4  ;;  %v1259_v14 = vmin.f32 %v1258_v50, %v4411_v58  ;;  %v4453_v41 = vsub.f32 %v4168_v31, %v816_v16  ;;  %v820_v40 = vmul.f32 2.0, %v4199_v24  ;;  %v824_v61 = vmul.f32 2.0, %v4226_v49 }
 0x16c   :  { %7441 = vst [vmem:[#allocation131_spill] sm:$0xff] %v4440_v22  ;;  %7442 = vst [vmem:[#allocation132_spill] sm:$0xff] %v4443_v32  ;;  %v1232_v57 = vrot.slane %v1231_v23, 2  ;;  %vm1418_vm1 = vcmp.eq.f32.partialorder %v4009_v8, %v4428_v43  ;;  %vm1422_vm2 = vcmp.eq.f32.partialorder %v4036_v6, %v4428_v43  ;;  %vm1426_vm3 = vcmp.eq.f32.partialorder %v4070_v35, %v4428_v43  ;;  %v7505_v8 = vld [vmem:[#allocation50_spill] sm:$0xff] }
 0x16d   :  { %7443 = vst [vmem:[#allocation133_spill] sm:$0xff] %v4446_v0  ;;  %7444 = vst [vmem:[#allocation134_spill] sm:$0xff] %v4450_v20  ;;  %vm1430_vm4 = vcmp.eq.f32.partialorder %v7446_v1, %v4428_v43  ;;  %vm1434_vm5 = vcmp.eq.f32.partialorder %v4126_v48, %v4428_v43  ;;  %vm1438_vm6 = vcmp.eq.f32.partialorder %v4154_v13, %v4428_v43  ;;  %v4482_v31 = vadd.s32 128, %v4307_v47  ;;  %v7510_v13 = vld [vmem:[#allocation56_spill] sm:$0xff] }
 0x16e   :  { %7445 = vst [vmem:[#allocation135_spill] sm:$0xff] %v4453_v41  ;;  %vm1442_vm7 = vcmp.eq.f32.partialorder %v4180_v36, %v4428_v43  ;;  %v4485_v24 = vadd.s32 136, %v4307_v47  ;;  %v1260_v49 = vmin.f32 %v1259_v14, %v4450_v20  ;;  %v4489_v16 = vsub.f32 %v4195_v2, %v820_v40  ;;  %v7453_v14 = vld [vmem:[#allocation14_spill] sm:$0xff]  ;;  %v7454_v2 = vld [vmem:[#allocation11_spill] sm:$0xff] }
 0x16f   :  { %7447 = vst [vmem:[#allocation79_spill] sm:$0xff] %v4482_v31  ;;  %v4492_v5 = vcvt.s32.f32 %v4437_v4  ;;  %v4495_v50 = vcvt.s32.f32 %v4440_v22  ;;  %v4498_v37 = vcvt.s32.f32 %v4443_v32  ;;  %v828_v39 = vmul.f32 2.0, %v4252_v42 }
 0x170   :  { %7448 = vst [vmem:[#allocation136_spill] sm:$0xff] %v4485_v24  ;;  %7449 = vst [vmem:[#allocation137_spill] sm:$0xff] %v4489_v16  ;;  %v4502_v58 = vadd.s32 144, %v4307_v47  ;;  %v1261_v3 = vmin.f32 %v1260_v49, %v4453_v41  ;;  %vm1338_vm13 = vcmp.eq.f32.partialorder %v7453_v14, %v4428_v43  ;;  %vm1342_vm14 = vcmp.eq.f32.partialorder %v7454_v2, %v4428_v43 }
 0x171   :  { %7450 = vst [vmem:[#allocation138_spill] sm:$0xff] %v4495_v50  ;;  %7451 = vst [vmem:[#allocation139_spill] sm:$0xff] %v4498_v37  ;;  %v4510_v40 = vadd.s32 152, %v4307_v47  ;;  %v4513_v4 = vsub.f32 %v4223_v15, %v824_v61  ;;  %v832_v32 = vmul.f32 2.0, %v4278_v27  ;;  %v1233_v42 = vmin.f32 %v1231_v23, %v1232_v57 }
 0x172   :  { %7452 = vst [vmem:[#allocation140_spill] sm:$0xff] %v4502_v58  ;;  %v4517_v22 = vcvt.s32.f32 %v4446_v0  ;;  %v4520_v49 = vcvt.s32.f32 %v4482_v31  ;;  %v4523_v14 = vcvt.s32.f32 %v4485_v24  ;;  %v1262_v2 = vmin.f32 %v1261_v3, %v4489_v16  ;;  %v7461_v3 = vld [vmem:[#allocation16_spill] sm:$0xff]  ;;  %v7465_v16 = vld [vmem:[#allocation19_spill] sm:$0xff] }
 0x173   :  { %7455 = vst [vmem:[#allocation14_spill] sm:$0xff] %v4510_v40  ;;  %7456 = vst [vmem:[#allocation11_spill] sm:$0xff] %v4513_v4  ;;  %v4527_v41 = vsub.f32 %v4249_v7, %v828_v39  ;;  %v1466_v15 = vsel %vm1338_vm13, %v4351_v30, 256.0  ;;  %v1470_v61 = vsel %vm1342_vm14, %v4354_v9, 256.0  ;;  %v836_v27 = vmul.f32 2.0, %v4304_v33 }
 0x174   :  { %7457 = vst [vmem:[#allocation141_spill] sm:$0xff] %v4517_v22  ;;  %v4533_v23 = vcvt.s32.f32 %v4502_v58  ;;  %v4536_v57 = vadd.s32 160, %v4307_v47  ;;  %v4539_v31 = vadd.s32 168, %v4307_v47  ;;  %vm1346_vm15 = vcmp.eq.f32.partialorder %v7461_v3, %v4428_v43 }
 0x175   :  { %7458 = vst [vmem:[#allocation142_spill] sm:$0xff] %v4527_v41  ;;  %v4544_v7 = vcvt.s32.f32 %v4510_v40  ;;  %v1263_v39 = vmin.f32 %v1262_v2, %v4513_v4  ;;  %v4548_v24 = vsub.f32 %v4272_v21, %v832_v32  ;;  %v1234_v33 = vrot.slane %v1233_v42, 1 }
 0x176   :  { %7459 = vst [vmem:[#allocation143_spill] sm:$0xff] %v4536_v57  ;;  %7460 = vst [vmem:[#allocation144_spill] sm:$0xff] %v4539_v31  ;;  %v4551_v58 = vadd.s32 176, %v4307_v47  ;;  %v4554_v0 = vadd.s32 184, %v4307_v47  ;;  %vm1350_vm0 = vcmp.eq.f32.partialorder %v7465_v16, %v4428_v43  ;;  %v1594_v20 = vmin.f32 %v1466_v15, %v1470_v61  ;;  %v7468_v61 = vld [vmem:[#allocation25_spill] sm:$0xff] }
 0x177   :  { %7462 = vst [vmem:[#allocation16_spill] sm:$0xff] %v4548_v24  ;;  %v1264_v3 = vmin.f32 %v1263_v39, %v4527_v41  ;;  %v1474_v40 = vsel %vm1346_vm15, %v4362_v46, 256.0  ;;  %v1193_v2 = vrot.slane %v4332_v52, 4  ;;  %v4562_v21 = vsub.f32 %v4300_v63, %v836_v27 }
 0x178   :  { %7463 = vst [vmem:[#allocation145_spill] sm:$0xff] %v4551_v58  ;;  %7464 = vst [vmem:[#allocation146_spill] sm:$0xff] %v4554_v0  ;;  %v4565_v32 = vcvt.s32.f32 %v4536_v57  ;;  %v4568_v4 = vcvt.s32.f32 %v4539_v31  ;;  %vm1354_vm13 = vcmp.eq.f32.partialorder %v7467_v54, %v4428_v43  ;;  %v1595_v16 = vmin.f32 %v1594_v20, %v1474_v40  ;;  %v7479_v31 = vld [vmem:[#allocation34_spill] sm:$0xff] }
 0x179   :  { %7466 = vst [vmem:[#allocation19_spill] sm:$0xff] %v4562_v21  ;;  %v1265_v15 = vmin.f32 %v1264_v3, %v4548_v24  ;;  %vm1358_vm14 = vcmp.eq.f32.partialorder %v7468_v61, %v4428_v43  ;;  %v1478_v39 = vsel %vm1350_vm0, %v4395_v34, 256.0  ;;  %v4576_v41 = vmin.f32 %v1233_v42, %v1234_v33  ;;  %v7471_v33 = vld [vmem:[#allocation28_spill] sm:$0xff]  ;;  %v7472_v61 = vld [vmem:[#allocation31_spill] sm:$0xff] }
 0x17a   :  { %v4579_v63 = vcvt.s32.f32 %v4551_v58  ;;  %v4582_v27 = vcvt.s32.f32 %v4554_v0  ;;  %v4585_v57 = vadd.s32 192, %v4307_v47  ;;  %v1596_v54 = vmin.f32 %v1595_v16, %v1478_v39 }
 0x17b   :  { %v4588_v20 = vadd.s32 200, %v4307_v47  ;;  %v1482_v40 = vsel %vm1354_vm13, %v4398_v29, 256.0  ;;  %v1194_v3 = vmin.f32 %v4332_v52, %v1193_v2  ;;  %v1266_v42 = vmin.f32 %v1265_v15, %v4562_v21  ;;  %v7482_v2 = vld [vmem:[#allocation17_spill] sm:$0xff] }
 0x17c   :  { %7469 = vst [vmem:[#allocation22_spill] sm:$0xff] %v4585_v57  ;;  %vm1362_vm15 = vcmp.eq.f32.partialorder %v7471_v33, %v4428_v43  ;;  %vm1366_vm0 = vcmp.eq.f32.partialorder %v7472_v61, %v4428_v43  ;;  %v1486_v58 = vsel %vm1358_vm14, %v4407_v28, 256.0  ;;  %v1597_v0 = vmin.f32 %v1596_v54, %v1482_v40 }
 0x17d   :  { %7470 = vst [vmem:[#allocation25_spill] sm:$0xff] %v4588_v20  ;;  %v4613_v54 = vadd.s32 208, %v4307_v47  ;;  %v1490_v40 = vsel %vm1362_vm15, %v4415_v51, 256.0  ;;  %v1267_v33 = vrot.slane %v1266_v42, 4  ;;  %vm1370_vm14 = vcmp.eq.f32.partialorder %v7479_v31, %v4428_v43  ;;  %v7483_v31 = vld [vmem:[#allocation18_spill] sm:$0xff] }
 0x17e   :  { %v1598_v52 = vmin.f32 %v1597_v0, %v1486_v58  ;;  %v4619_v58 = vcvt.s32.f32 %v4585_v57  ;;  %v4622_v0 = vadd.s32 216, %v4307_v47  ;;  %v4627_v24 = vcvt.s32.f32 %v4588_v20 }
 0x17f   :  { %7477 = vst [vmem:[#allocation28_spill] sm:$0xff] %v4613_v54  ;;  %v4630_v60 = vadd.s32 224, %v4307_v47  ;;  %v1494_v26 = vsel %vm1366_vm0, %v4418_v59, 256.0  ;;  %v1195_v57 = vrot.slane %v1194_v3, 2  ;;  %vm1374_vm15 = vcmp.eq.f32.partialorder %v7481_v45, %v4428_v43 }
 0x180   :  { %7478 = vst [vmem:[#allocation31_spill] sm:$0xff] %v4622_v0  ;;  %v1599_v21 = vmin.f32 %v1598_v52, %v1490_v40  ;;  %vm1340_vm13 = vcmp.eq.f32.partialorder %v7482_v2, %v4576_v41  ;;  %vm1344_vm8 = vcmp.eq.f32.partialorder %v7483_v31, %v4576_v41  ;;  %v4643_v52 = vcvt.s32.f32 %v4613_v54 }
 0x181   :  { %7480 = vst [vmem:[#allocation34_spill] sm:$0xff] %v4630_v60  ;;  %v4646_v40 = vadd.s32 232, %v4307_v47  ;;  %v1498_v61 = vsel %vm1370_vm14, %v4422_v11, 256.0  ;;  %v1268_v20 = vmin.f32 %v1266_v42, %v1267_v33  ;;  %v4650_v17 = vcvt.s32.f32 %v4622_v0  ;;  %v7487_v42 = vld [vmem:[#allocation41_spill] sm:$0xff]  ;;  %v7488_v0 = vld [vmem:[#allocation23_spill] sm:$0xff] }
 0x182   :  { %v1600_v15 = vmin.f32 %v1599_v21, %v1494_v26  ;;  %v4653_v45 = vadd.s32 240, %v4307_v47  ;;  %v7486_v26 = vld [vmem:[#allocation38_spill] sm:$0xff]  ;;  %v1502_v2 = vsel %vm1374_vm15, %v4425_v19, 256.0  ;;  %v1468_v31 = vsel %vm1340_vm13, %v4351_v30, 256.0 }
 0x183   :  { %7484 = vst [vmem:[#allocation36_spill] sm:$0xff] %v4646_v40  ;;  %vm1378_vm0 = vcmp.eq.f32.partialorder %v7486_v26, %v4428_v43  ;;  %v1472_v54 = vsel %vm1344_vm8, %v4354_v9, 256.0  ;;  %v1196_v62 = vmin.f32 %v1194_v3, %v1195_v57  ;;  %v4661_v39 = vcvt.s32.f32 %v4630_v60  ;;  %v7490_v57 = vld [vmem:[#allocation44_spill] sm:$0xff]  ;;  %v7491_v60 = vld [vmem:[#allocation27_spill] sm:$0xff] }
 0x184   :  { %7485 = vst [vmem:[#allocation17_spill] sm:$0xff] %v4653_v45  ;;  %v1601_v21 = vmin.f32 %v1600_v15, %v1498_v61  ;;  %vm1382_vm14 = vcmp.eq.f32.partialorder %v7487_v42, %v4428_v43  ;;  %vm1348_vm9 = vcmp.eq.f32.partialorder %v7488_v0, %v4576_v41  ;;  %v4668_v26 = vcvt.s32.f32 %v4646_v40 }
 0x185   :  { %v4671_v15 = vadd.s32 248, %v4307_v47  ;;  %v1506_v61 = vsel %vm1378_vm0, %v4431_v53, 256.0  ;;  %v1269_v16 = vrot.slane %v1268_v20, 2  ;;  %vm1386_vm8 = vcmp.eq.f32.partialorder %v7490_v57, %v4428_v43  ;;  %v7492_v47 = vld [vmem:[#allocation47_spill] sm:$0xff]  ;;  %v7494_v57 = vld [vmem:[#allocation49_spill] sm:$0xff] }
 0x186   :  { %v1602_v33 = vmin.f32 %v1601_v21, %v1502_v2  ;;  %vm1352_vm13 = vcmp.eq.f32.partialorder %v7491_v60, %v4576_v41  ;;  %v1668_v21 = vmin.f32 %v1468_v31, %v1472_v54  ;;  %v4679_v2 = vcvt.s32.f32 %v4653_v45 }
 0x187   :  { %7489 = vst [vmem:[#allocation18_spill] sm:$0xff] %v4671_v15  ;;  %v1510_v0 = vsel %vm1382_vm14, %v4434_v44, 256.0  ;;  %v1476_v42 = vsel %vm1348_vm9, %v4362_v46, 256.0  ;;  %v1197_v40 = vrot.slane %v1196_v62, 1  ;;  %vm1390_vm15 = vcmp.eq.f32.partialorder %v7492_v47, %v4428_v43  ;;  %v7495_v47 = vld [vmem:[#allocation37_spill] sm:$0xff] }
 0x188   :  { %v1603_v3 = vmin.f32 %v1602_v33, %v1506_v61  ;;  %vm1356_vm0 = vcmp.eq.f32.partialorder %v7493_v18, %v4576_v41  ;;  %v1669_v33 = vmin.f32 %v1668_v21, %v1476_v42  ;;  %v4688_v61 = vcvt.s32.f32 %v4671_v15  ;;  %v7496_v18 = vld [vmem:[#allocation51_spill] sm:$0xff]  ;;  %v7520_v15 = vld [vmem:[#allocation61_spill] sm:$0xff] }
 0x189   :  { %v1514_v60 = vsel %vm1386_vm8, %v4492_v5, 256.0  ;;  %v1480_v54 = vsel %vm1352_vm13, %v4395_v34, 256.0  ;;  %v4692_v31 = vmin.f32 %v1268_v20, %v1269_v16  ;;  %vm1394_vm9 = vcmp.eq.f32.partialorder %v7494_v57, %v4428_v43  ;;  %v7497_v20 = vld [vmem:[#allocation54_spill] sm:$0xff]  ;;  %v7498_v57 = vld [vmem:[#allocation40_spill] sm:$0xff] }
 0x18a   :  { %v1604_v12 = vmin.f32 %v1603_v3, %v1510_v0  ;;  %vm1360_vm14 = vcmp.eq.f32.partialorder %v7495_v47, %v4576_v41  ;;  %v1670_v3 = vmin.f32 %v1669_v33, %v1480_v54  ;;  %vm1398_vm10 = vcmp.eq.f32.partialorder %v7496_v18, %v4428_v43 }
 0x18b   :  { %v1518_v21 = vsel %vm1390_vm15, %v4495_v50, 256.0  ;;  %v1484_v0 = vsel %vm1356_vm0, %v4398_v29, 256.0  ;;  %v4702_v42 = vmin.f32 %v1196_v62, %v1197_v40  ;;  %vm1402_vm8 = vcmp.eq.f32.partialorder %v7497_v20, %v4428_v43  ;;  %v7500_v62 = vld [vmem:[#allocation60_spill] sm:$0xff]  ;;  %v7501_v20 = vld [vmem:[#allocation42_spill] sm:$0xff] }
 0x18c   :  { %v1605_v45 = vmin.f32 %v1604_v12, %v1514_v60  ;;  %vm1364_vm13 = vcmp.eq.f32.partialorder %v7498_v57, %v4576_v41  ;;  %v1671_v12 = vmin.f32 %v1670_v3, %v1484_v0  ;;  %v7499_v60 = vld [vmem:[#allocation57_spill] sm:$0xff]  ;;  %v1522_v33 = vsel %vm1394_vm9, %v4498_v37, 256.0 }
 0x18d   :  { %vm1406_vm11 = vcmp.eq.f32.partialorder %v7499_v60, %v4428_v43  ;;  %v1488_v54 = vsel %vm1360_vm14, %v4407_v28, 256.0  ;;  %vm1410_vm15 = vcmp.eq.f32.partialorder %v7500_v62, %v4428_v43  ;;  %vm1368_vm0 = vcmp.eq.f32.partialorder %v7501_v20, %v4576_v41  ;;  %v7503_v62 = vld [vmem:[#allocation45_spill] sm:$0xff]  ;;  %v7504_v20 = vld [vmem:[#allocation48_spill] sm:$0xff] }
 0x18e   :  { %v1606_v16 = vmin.f32 %v1605_v45, %v1518_v21  ;;  %v1672_v45 = vmin.f32 %v1671_v12, %v1488_v54  ;;  %v7502_v21 = vld [vmem:[#allocation63_spill] sm:$0xff]  ;;  %v1526_v3 = vsel %vm1398_vm10, %v4517_v22, 256.0  ;;  %v1530_v0 = vsel %vm1402_vm8, %v4520_v49, 256.0 }
 0x18f   :  { %vm1414_vm12 = vcmp.eq.f32.partialorder %v7502_v21, %v4428_v43  ;;  %v1492_v57 = vsel %vm1364_vm13, %v4415_v51, 256.0  ;;  %vm1372_vm9 = vcmp.eq.f32.partialorder %v7503_v62, %v4576_v41  ;;  %v1534_v12 = vsel %vm1406_vm11, %v4523_v14, 256.0 }
 0x190   :  { %v1607_v40 = vmin.f32 %v1606_v16, %v1522_v33  ;;  %v1673_v16 = vmin.f32 %v1672_v45, %v1492_v57  ;;  %v1538_v18 = vsel %vm1410_vm15, %v4533_v23, 256.0  ;;  %v1496_v33 = vsel %vm1368_vm0, %v4418_v59, 256.0 }
 0x191   :  { %v1542_v54 = vsel %vm1414_vm12, %v4544_v7, 256.0  ;;  %vm1376_vm8 = vcmp.eq.f32.partialorder %v7504_v20, %v4576_v41  ;;  %v1546_v60 = vsel %vm1418_vm1, %v4565_v32, 256.0  ;;  %v1550_v21 = vsel %vm1422_vm2, %v4568_v4, 256.0 }
 0x192   :  { %v1608_v47 = vmin.f32 %v1607_v40, %v1526_v3  ;;  %v1674_v45 = vmin.f32 %v1673_v16, %v1496_v33  ;;  %v1554_v3 = vsel %vm1426_vm3, %v4579_v63, 256.0  ;;  %vm1380_vm1 = vcmp.eq.f32.partialorder %v7505_v8, %v4576_v41  ;;  %v7506_v16 = vld [vmem:[#allocation15_spill] sm:$0xff]  ;;  %v7507_v33 = vld [vmem:[#allocation12_spill] sm:$0xff] }
 0x193   :  { %v1562_v6 = vsel %vm1434_vm5, %v4619_v58, 256.0  ;;  %v1504_v35 = vsel %vm1376_vm8, %v4425_v19, 256.0  ;;  %vm1339_vm2 = vcmp.eq.f32.partialorder %v7506_v16, %v4702_v42  ;;  %vm1343_vm3 = vcmp.eq.f32.partialorder %v7507_v33, %v4702_v42  ;;  %v7514_v16 = vld [vmem:[#allocation105_spill] sm:$0xff] }
 0x194   :  { %v1609_v40 = vmin.f32 %v1608_v47, %v1530_v0  ;;  %v1500_v47 = vsel %vm1372_vm9, %v4422_v11, 256.0  ;;  %v1558_v0 = vsel %vm1430_vm4, %v4582_v27, 256.0  ;;  %v4772_v1 = vsel %vm1438_vm6, %v4627_v24, 256.0 }
 0x195   :  { %v1675_v62 = vmin.f32 %v1674_v45, %v1500_v47  ;;  %v1570_v20 = vsel %vm1442_vm7, %v4643_v52, 256.0  ;;  %vm7509_vm5 = vcmp.eq.f32.partialorder %v4208_v55, %v4428_v43  ;;  %vm1388_vm6 = vcmp.eq.f32.partialorder %v7510_v13, %v4576_v41 }
 0x196   :  { %v1610_v57 = vmin.f32 %v1609_v40, %v1534_v12  ;;  %v7508_v40 = vld [vmem:[#allocation53_spill] sm:$0xff]  ;;  %v4784_v45 = vsel %vm7509_vm5, %v4650_v17, 256.0  ;;  %v1467_v8 = vsel %vm1339_vm2, %v4351_v30, 256.0  ;;  %vm7511_vm7 = vcmp.eq.f32.partialorder %v4234_v10, %v4428_v43 }
 0x197   :  { %vm1384_vm4 = vcmp.eq.f32.partialorder %v7508_v40, %v4576_v41  ;;  %v1676_v48 = vmin.f32 %v1675_v62, %v1504_v35  ;;  %v1471_v62 = vsel %vm1343_vm3, %v4354_v9, 256.0  ;;  %v4795_v36 = vsel %vm7511_vm7, %v4661_v39, 256.0 }
 0x198   :  { %v1611_v12 = vmin.f32 %v1610_v57, %v1538_v18  ;;  %v1508_v18 = vsel %vm1380_vm1, %v4431_v53, 256.0  ;;  %vm7512_vm11 = vcmp.eq.f32.partialorder %v4257_v25, %v4428_v43  ;;  %v1512_v35 = vsel %vm1384_vm4, %v4434_v44, 256.0  ;;  %v7517_v25 = vld [vmem:[#allocation110_spill] sm:$0xff] }
 0x199   :  { %v1677_v57 = vmin.f32 %v1676_v48, %v1508_v18  ;;  %v4801_v55 = vsel %vm7512_vm11, %v4668_v26, 256.0  ;;  %vm7515_vm13 = vcmp.eq.f32.partialorder %v7514_v16, %v4428_v43  ;;  %vm7518_vm0 = vcmp.eq.f32.partialorder %v7517_v25, %v4428_v43  ;;  %v7519_v18 = vld [vmem:[#allocation29_spill] sm:$0xff] }
 0x19a   :  { %v1612_v47 = vmin.f32 %v1611_v12, %v1542_v54  ;;  %v7513_v54 = vld [vmem:[#allocation24_spill] sm:$0xff]  ;;  %v4810_v33 = vsel %vm7515_vm13, %v4679_v2, 256.0  ;;  %v7516_v12 = vld [vmem:[#allocation58_spill] sm:$0xff]  ;;  %v4818_v48 = vsel %vm7518_vm0, %v4688_v61, 256.0  ;;  %v1516_v13 = vsel %vm1388_vm6, %v4492_v5, 256.0 }
 0x19b   :  { %vm1347_vm12 = vcmp.eq.f32.partialorder %v7513_v54, %v4702_v42  ;;  %vm1392_vm15 = vcmp.eq.f32.partialorder %v7516_v12, %v4576_v41  ;;  %v1678_v40 = vmin.f32 %v1677_v57, %v1512_v35  ;;  %vm1351_vm9 = vcmp.eq.f32.partialorder %v7519_v18, %v4702_v42  ;;  %v7521_v57 = vld [vmem:[#allocation64_spill] sm:$0xff]  ;;  %v7522_v35 = vld [vmem:[#allocation33_spill] sm:$0xff]  ;;  %v7523_v18 = vld [vmem:[#allocation66_spill] sm:$0xff] }
 0x19c   :  { %v1613_v10 = vmin.f32 %v1612_v47, %v1546_v60  ;;  %v1631_v54 = vmin.f32 %v1467_v8, %v1471_v62  ;;  %vm1396_vm8 = vcmp.eq.f32.partialorder %v7520_v15, %v4576_v41  ;;  %v1475_v47 = vsel %vm1347_vm12, %v4362_v46, 256.0  ;;  %v7524_v15 = vld [vmem:[#allocation68_spill] sm:$0xff] }
 0x19d   :  { %v1679_v60 = vmin.f32 %v1678_v40, %v1516_v13  ;;  %vm1400_vm1 = vcmp.eq.f32.partialorder %v7521_v57, %v4576_v41  ;;  %v1520_v43 = vsel %vm1392_vm15, %v4495_v50, 256.0  ;;  %vm1355_vm2 = vcmp.eq.f32.partialorder %v7522_v35, %v4702_v42  ;;  %v7526_v35 = vld [vmem:[#allocation70_spill] sm:$0xff] }
 0x19e   :  { %v1614_v16 = vmin.f32 %v1613_v10, %v1550_v21  ;;  %v1632_v12 = vmin.f32 %v1631_v54, %v1475_v47  ;;  %vm1404_vm3 = vcmp.eq.f32.partialorder %v7523_v18, %v4576_v41  ;;  %v1479_v8 = vsel %vm1351_vm9, %v4395_v34, 256.0  ;;  %v7525_v10 = vld [vmem:[#allocation39_spill] sm:$0xff] }
 0x19f   :  { %v1680_v21 = vmin.f32 %v1679_v60, %v1520_v43  ;;  %vm1408_vm4 = vcmp.eq.f32.partialorder %v7524_v15, %v4576_v41  ;;  %v1524_v62 = vsel %vm1396_vm8, %v4498_v37, 256.0  ;;  %vm1359_vm5 = vcmp.eq.f32.partialorder %v7525_v10, %v4702_v42  ;;  %v7528_v47 = vld [vmem:[#allocation43_spill] sm:$0xff] }
 0x1a0   :  { %v1615_v25 = vmin.f32 %v1614_v16, %v1554_v3  ;;  %v1633_v40 = vmin.f32 %v1632_v12, %v1479_v8  ;;  %vm1412_vm6 = vcmp.eq.f32.partialorder %v7526_v35, %v4576_v41  ;;  %v1483_v54 = vsel %vm1355_vm2, %v4398_v29, 256.0  ;;  %v7527_v16 = vld [vmem:[#allocation72_spill] sm:$0xff]  ;;  %v7530_v8 = vld [vmem:[#allocation77_spill] sm:$0xff] }
 0x1a1   :  { %v1681_v3 = vmin.f32 %v1680_v21, %v1524_v62  ;;  %vm1416_vm7 = vcmp.eq.f32.partialorder %v7527_v16, %v4576_v41  ;;  %v1528_v60 = vsel %vm1400_vm1, %v4517_v22, 256.0  ;;  %vm1363_vm11 = vcmp.eq.f32.partialorder %v7528_v47, %v4702_v42  ;;  %v7531_v62 = vld [vmem:[#allocation46_spill] sm:$0xff] }
 0x1a2   :  { %v1616_v13 = vmin.f32 %v1615_v25, %v1558_v0  ;;  %v1634_v43 = vmin.f32 %v1633_v40, %v1483_v54  ;;  %v7529_v0 = vld [vmem:[#allocation75_spill] sm:$0xff]  ;;  %v1487_v21 = vsel %vm1359_vm5, %v4407_v28, 256.0  ;;  %vm1424_vm13 = vcmp.eq.f32.partialorder %v7530_v8, %v4576_v41  ;;  %v7532_v40 = vld [vmem:[#allocation80_spill] sm:$0xff]  ;;  %v7533_v54 = vld [vmem:[#allocation82_spill] sm:$0xff] }
 0x1a3   :  { %vm1420_vm12 = vcmp.eq.f32.partialorder %v7529_v0, %v4576_v41  ;;  %v1682_v25 = vmin.f32 %v1681_v3, %v1528_v60  ;;  %v1532_v57 = vsel %vm1404_vm3, %v4520_v49, 256.0  ;;  %vm1367_vm15 = vcmp.eq.f32.partialorder %v7531_v62, %v4702_v42  ;;  %v7534_v60 = vld [vmem:[#allocation52_spill] sm:$0xff] }
 0x1a4   :  { %v1617_v12 = vmin.f32 %v1616_v13, %v1562_v6  ;;  %v1635_v10 = vmin.f32 %v1634_v43, %v1487_v21  ;;  %vm1428_vm0 = vcmp.eq.f32.partialorder %v7532_v40, %v4576_v41  ;;  %v1491_v3 = vsel %vm1363_vm11, %v4415_v51, 256.0 }
 0x1a5   :  { %v1683_v13 = vmin.f32 %v1682_v25, %v1532_v57  ;;  %vm1432_vm9 = vcmp.eq.f32.partialorder %v7533_v54, %v4576_v41  ;;  %v1536_v18 = vsel %vm1408_vm4, %v4523_v14, 256.0  ;;  %vm1371_vm8 = vcmp.eq.f32.partialorder %v7534_v60, %v4702_v42 }
 0x1a6   :  { %v1618_v6 = vmin.f32 %v1617_v12, %v4772_v1  ;;  %v1636_v47 = vmin.f32 %v1635_v10, %v1491_v3  ;;  %v1540_v1 = vsel %vm1412_vm6, %v4533_v23, 256.0  ;;  %v1495_v25 = vsel %vm1367_vm15, %v4418_v59, 256.0  ;;  %v7537_v3 = vld [vmem:[#allocation84_spill] sm:$0xff] }
 0x1a7   :  { %v1684_v12 = vmin.f32 %v1683_v13, %v1536_v18  ;;  %v1544_v21 = vsel %vm1416_vm7, %v4544_v7, 256.0  ;;  %v1548_v15 = vsel %vm1420_vm12, %v4565_v32, 256.0  ;;  %v1552_v62 = vsel %vm1424_vm13, %v4568_v4, 256.0 }
 0x1a8   :  { %v1619_v43 = vmin.f32 %v1618_v6, %v1570_v20  ;;  %v7535_v20 = vld [vmem:[#allocation55_spill] sm:$0xff]  ;;  %v1637_v57 = vmin.f32 %v1636_v47, %v1495_v25  ;;  %v1499_v16 = vsel %vm1371_vm8, %v4422_v11, 256.0  ;;  %v1556_v0 = vsel %vm1428_vm0, %v4579_v63, 256.0  ;;  %v7539_v47 = vld [vmem:[#allocation86_spill] sm:$0xff] }
 0x1a9   :  { %vm1375_vm1 = vcmp.eq.f32.partialorder %v7535_v20, %v4702_v42  ;;  %v1685_v10 = vmin.f32 %v1684_v12, %v1540_v1  ;;  %v1560_v6 = vsel %vm1432_vm9, %v4582_v27, 256.0  ;;  %vm7538_vm3 = vcmp.eq.f32.partialorder %v7537_v3, %v4576_v41 }
 0x1aa   :  { %v1620_v35 = vmin.f32 %v1619_v43, %v4784_v45  ;;  %v7536_v45 = vld [vmem:[#allocation59_spill] sm:$0xff]  ;;  %v1638_v13 = vmin.f32 %v1637_v57, %v1499_v16  ;;  %v1564_v18 = vsel %vm7538_vm3, %v4619_v58, 256.0  ;;  %v1503_v40 = vsel %vm1375_vm1, %v4425_v19, 256.0  ;;  %v7541_v43 = vld [vmem:[#allocation90_spill] sm:$0xff] }
 0x1ab   :  { %vm1379_vm2 = vcmp.eq.f32.partialorder %v7536_v45, %v4702_v42  ;;  %v1686_v60 = vmin.f32 %v1685_v10, %v1544_v21  ;;  %vm7540_vm4 = vcmp.eq.f32.partialorder %v7539_v47, %v4576_v41  ;;  %vm7542_vm5 = vcmp.eq.f32.partialorder %v7541_v43, %v4576_v41  ;;  %v7544_v21 = vld [vmem:[#allocation93_spill] sm:$0xff]  ;;  %v7546_v10 = vld [vmem:[#allocation98_spill] sm:$0xff] }
 0x1ac   :  { %v1621_v8 = vmin.f32 %v1620_v35, %v4795_v36  ;;  %v1568_v54 = vsel %vm7540_vm4, %v4627_v24, 256.0  ;;  %v1572_v1 = vsel %vm7542_vm5, %v4643_v52, 256.0  ;;  %v7543_v36 = vld [vmem:[#allocation62_spill] sm:$0xff]  ;;  %v1639_v12 = vmin.f32 %v1638_v13, %v1503_v40  ;;  %v7548_v45 = vld [vmem:[#allocation65_spill] sm:$0xff] }
 0x1ad   :  { %vm1383_vm6 = vcmp.eq.f32.partialorder %v7543_v36, %v4702_v42  ;;  %vm7545_vm7 = vcmp.eq.f32.partialorder %v7544_v21, %v4576_v41  ;;  %v1687_v57 = vmin.f32 %v1686_v60, %v1548_v15  ;;  %v1507_v35 = vsel %vm1379_vm2, %v4431_v53, 256.0  ;;  %v7550_v15 = vld [vmem:[#allocation102_spill] sm:$0xff] }
 0x1ae   :  { %v1622_v25 = vmin.f32 %v1621_v8, %v4801_v55  ;;  %v4925_v20 = vsel %vm7545_vm7, %v4650_v17, 256.0  ;;  %vm7547_vm11 = vcmp.eq.f32.partialorder %v7546_v10, %v4576_v41  ;;  %vm1387_vm12 = vcmp.eq.f32.partialorder %v7548_v45, %v4702_v42  ;;  %v7552_v43 = vld [vmem:[#allocation106_spill] sm:$0xff] }
 0x1af   :  { %v1580_v16 = vsel %vm7547_vm11, %v4661_v39, 256.0  ;;  %v1640_v13 = vmin.f32 %v1639_v12, %v1507_v35  ;;  %v7549_v55 = vrot.slane %v4692_v31, 1  ;;  %vm7551_vm13 = vcmp.eq.f32.partialorder %v7550_v15, %v4576_v41  ;;  %v7556_v12 = vld [vmem:[#allocation67_spill] sm:$0xff]  ;;  %v7558_v10 = vld [vmem:[#allocation74_spill] sm:$0xff] }
 0x1b0   :  { %v1623_v3 = vmin.f32 %v1622_v25, %v4810_v33  ;;  %v4944_v60 = vsel %vm7551_vm13, %v4668_v26, 256.0  ;;  %v1688_v40 = vmin.f32 %v1687_v57, %v1552_v62  ;;  %v1511_v47 = vsel %vm1383_vm6, %v4434_v44, 256.0  ;;  %v7557_v57 = vld [vmem:[#allocation69_spill] sm:$0xff] }
 0x1b1   :  { %v4937_v8 = vmin.f32 %v4692_v31, %v7549_v55  ;;  %vm7553_vm15 = vcmp.eq.f32.partialorder %v7552_v43, %v4576_v41  ;;  %v7554_v31 = vld [vmem:[#allocation111_spill] sm:$0xff]  ;;  %vm1391_vm9 = vcmp.eq.f32.partialorder %v7556_v12, %v4702_v42  ;;  %v1641_v25 = vmin.f32 %v1640_v13, %v1511_v47  ;;  %v7560_v55 = vld [vmem:[#allocation21_spill] sm:$0xff]  ;;  %v7561_v13 = vld [vmem:[#allocation76_spill] sm:$0xff] }
 0x1b2   :  { %v4951_v36 = vsel %vm7553_vm15, %v4679_v2, 256.0  ;;  %vm7555_vm0 = vcmp.eq.f32.partialorder %v7554_v31, %v4576_v41  ;;  %v1624_v62 = vmin.f32 %v1623_v3, %v4818_v48  ;;  %v1689_v21 = vmin.f32 %v1688_v40, %v1556_v0  ;;  %v7559_v41 = vld [vmem:[#allocation20_spill] sm:$0xff]  ;;  %v7562_v48 = vld [vmem:[#allocation78_spill] sm:$0xff]  ;;  %v7563_v3 = vld [vmem:[#allocation81_spill] sm:$0xff] }
 0x1b3   :  { %v4957_v33 = vsel %vm7555_vm0, %v4688_v61, 256.0  ;;  %vm1395_vm8 = vcmp.eq.f32.partialorder %v7557_v57, %v4702_v42  ;;  %v1515_v35 = vsel %vm1387_vm12, %v4492_v5, 256.0  ;;  %vm1399_vm1 = vcmp.eq.f32.partialorder %v7558_v10, %v4702_v42  ;;  %v7564_v40 = vld [vmem:[#allocation8_spill] sm:$0xff]  ;;  %v7565_v47 = vld [vmem:[#allocation9_spill] sm:$0xff] }
 0x1b4   :  { %v1642_v45 = vmin.f32 %v1641_v25, %v1515_v35  ;;  %vm1341_vm2 = vcmp.eq.f32.partialorder %v7559_v41, %v4937_v8  ;;  %vm1345_vm3 = vcmp.eq.f32.partialorder %v7560_v55, %v4937_v8  ;;  %v1690_v15 = vmin.f32 %v1689_v21, %v1560_v6  ;;  %v7566_v21 = vld [vmem:[#allocation10_spill] sm:$0xff]  ;;  %v7567_v57 = vld [vmem:[#allocation88_spill] sm:$0xff] }
 0x1b5   :  { %vm1403_vm4 = vcmp.eq.f32.partialorder %v7561_v13, %v4702_v42  ;;  %vm1407_vm5 = vcmp.eq.f32.partialorder %v7562_v48, %v4702_v42  ;;  %v1519_v0 = vsel %vm1391_vm9, %v4495_v50, 256.0  ;;  %vm1411_vm6 = vcmp.eq.f32.partialorder %v7563_v3, %v4702_v42  ;;  %v7568_v41 = vld [vmem:[#allocation26_spill] sm:$0xff]  ;;  %v7575_v50 = vld [vmem:[#allocation35_spill] sm:$0xff] }
 0x1b6   :  { %vm1415_vm7 = vcmp.eq.f32.partialorder %v7564_v40, %v4702_v42  ;;  %vm1419_vm11 = vcmp.eq.f32.partialorder %v7565_v47, %v4702_v42  ;;  %v1643_v43 = vmin.f32 %v1642_v45, %v1519_v0  ;;  %v1691_v31 = vmin.f32 %v1690_v15, %v1564_v18  ;;  %v7569_v45 = vld [vmem:[#allocation89_spill] sm:$0xff]  ;;  %v7570_v18 = vld [vmem:[#allocation92_spill] sm:$0xff]  ;;  %v7577_v13 = vld [vmem:[#allocation103_spill] sm:$0xff] }
 0x1b7   :  { %v1523_v6 = vsel %vm1395_vm8, %v4498_v37, 256.0  ;;  %v1469_v12 = vsel %vm1341_vm2, %v4351_v30, 256.0  ;;  %v1473_v25 = vsel %vm1345_vm3, %v4354_v9, 256.0  ;;  %vm1423_vm12 = vcmp.eq.f32.partialorder %v7566_v21, %v4702_v42  ;;  %v7571_v9 = vld [vmem:[#allocation94_spill] sm:$0xff]  ;;  %v7572_v15 = vld [vmem:[#allocation96_spill] sm:$0xff] }
 0x1b8   :  { %vm1427_vm13 = vcmp.eq.f32.partialorder %v7567_v57, %v4702_v42  ;;  %v1644_v35 = vmin.f32 %v1643_v43, %v1523_v6  ;;  %vm1349_vm15 = vcmp.eq.f32.partialorder %v7568_v41, %v4937_v8  ;;  %v1692_v55 = vmin.f32 %v1691_v31, %v1568_v54  ;;  %v7573_v54 = vld [vmem:[#allocation30_spill] sm:$0xff] }
 0x1b9   :  { %vm1431_vm0 = vcmp.eq.f32.partialorder %v7569_v45, %v4702_v42  ;;  %vm1435_vm9 = vcmp.eq.f32.partialorder %v7570_v18, %v4702_v42  ;;  %v1527_v30 = vsel %vm1399_vm1, %v4517_v22, 256.0  ;;  %vm1439_vm8 = vcmp.eq.f32.partialorder %v7571_v9, %v4702_v42  ;;  %v7574_v22 = vld [vmem:[#allocation99_spill] sm:$0xff] }
 0x1ba   :  { %vm1443_vm2 = vcmp.eq.f32.partialorder %v7572_v15, %v4702_v42  ;;  %v1645_v0 = vmin.f32 %v1644_v35, %v1527_v30  ;;  %vm1353_vm3 = vcmp.eq.f32.partialorder %v7573_v54, %v4937_v8  ;;  %v1705_v43 = vmin.f32 %v1469_v12, %v1473_v25  ;;  %v7576_v12 = vld [vmem:[#allocation101_spill] sm:$0xff] }
 0x1bb   :  { %v1625_v31 = vrot.slane %v1624_v62, 4  ;;  %v1693_v6 = vmin.f32 %v1692_v55, %v1572_v1  ;;  %v1531_v41 = vsel %vm1403_vm4, %v4520_v49, 256.0  ;;  %v1477_v10 = vsel %vm1349_vm15, %v4362_v46, 256.0  ;;  %v7578_v55 = vld [vmem:[#allocation71_spill] sm:$0xff] }
 0x1bc   :  { %vm1447_vm1 = vcmp.eq.f32.partialorder %v7574_v22, %v4702_v42  ;;  %v1646_v37 = vmin.f32 %v1645_v0, %v1531_v41  ;;  %vm1357_vm10 = vcmp.eq.f32.partialorder %v7575_v50, %v4937_v8  ;;  %v1706_v35 = vmin.f32 %v1705_v43, %v1477_v10 }
 0x1bd   :  { %v1694_v30 = vmin.f32 %v1693_v6, %v4925_v20  ;;  %vm1451_vm14 = vcmp.eq.f32.partialorder %v7576_v12, %v4702_v42  ;;  %v1535_v1 = vsel %vm1407_vm5, %v4523_v14, 256.0  ;;  %v1481_v46 = vsel %vm1353_vm3, %v4395_v34, 256.0 }
 0x1be   :  { %vm1455_vm4 = vcmp.eq.f32.partialorder %v7577_v13, %v4702_v42  ;;  %v1647_v25 = vmin.f32 %v1646_v37, %v1535_v1  ;;  %vm1361_vm15 = vcmp.eq.f32.partialorder %v7578_v55, %v4937_v8  ;;  %v1707_v50 = vmin.f32 %v1706_v35, %v1481_v46  ;;  %v7579_v37 = vld [vmem:[#allocation73_spill] sm:$0xff] }
 0x1bf   :  { %v1626_v0 = vmin.f32 %v1624_v62, %v1625_v31  ;;  %v1695_v20 = vmin.f32 %v1694_v30, %v1580_v16  ;;  %v1539_v54 = vsel %vm1411_vm6, %v4533_v23, 256.0  ;;  %v1485_v48 = vsel %vm1357_vm10, %v4398_v29, 256.0  ;;  %v7581_v30 = vld [vmem:[#allocation85_spill] sm:$0xff] }
 0x1c0   :  { %v1543_v34 = vsel %vm1415_vm7, %v4544_v7, 256.0  ;;  %v1648_v43 = vmin.f32 %v1647_v25, %v1539_v54  ;;  %vm1365_vm5 = vcmp.eq.f32.partialorder %v7579_v37, %v4937_v8  ;;  %v1708_v6 = vmin.f32 %v1707_v50, %v1485_v48  ;;  %v7586_v37 = vld [vmem:[#allocation91_spill] sm:$0xff] }
 0x1c1   :  { %v1696_v62 = vmin.f32 %v1695_v20, %v4944_v60  ;;  %v1547_v16 = vsel %vm1419_vm11, %v4565_v32, 256.0  ;;  %v1551_v29 = vsel %vm1423_vm12, %v4568_v4, 256.0  ;;  %v1489_v3 = vsel %vm1361_vm15, %v4407_v28, 256.0  ;;  %v7580_v60 = vld [vmem:[#allocation83_spill] sm:$0xff] }
 0x1c2   :  { %v1555_v40 = vsel %vm1427_vm13, %v4579_v63, 256.0  ;;  %v1649_v31 = vmin.f32 %v1648_v43, %v1543_v34  ;;  %vm1369_vm10 = vcmp.eq.f32.partialorder %v7580_v60, %v4937_v8  ;;  %v1709_v41 = vmin.f32 %v1708_v6, %v1489_v3  ;;  %v7592_v60 = vld [vmem:[#allocation109_spill] sm:$0xff] }
 0x1c3   :  { %v1627_v10 = vrot.slane %v1626_v0, 2  ;;  %v1697_v47 = vmin.f32 %v1696_v62, %v4951_v36  ;;  %v1559_v21 = vsel %vm1431_vm0, %v4582_v27, 256.0  ;;  %v1493_v28 = vsel %vm1365_vm5, %v4415_v51, 256.0 }
 0x1c4   :  { %v1563_v57 = vsel %vm1435_vm9, %v4619_v58, 256.0  ;;  %v1650_v35 = vmin.f32 %v1649_v31, %v1547_v16  ;;  %vm1373_vm6 = vcmp.eq.f32.partialorder %v7581_v30, %v4937_v8  ;;  %v1710_v1 = vmin.f32 %v1709_v41, %v1493_v28  ;;  %v7587_v16 = vld [vmem:[#allocation95_spill] sm:$0xff] }
 0x1c5   :  { %v1698_v46 = vmin.f32 %v1697_v47, %v4957_v33  ;;  %v1567_v36 = vsel %vm1439_vm8, %v4627_v24, 256.0  ;;  %v1571_v51 = vsel %vm1443_vm2, %v4643_v52, 256.0  ;;  %v1497_v45 = vsel %vm1369_vm10, %v4418_v59, 256.0  ;;  %v7582_v33 = vld [vmem:[#allocation87_spill] sm:$0xff]  ;;  %v63_v59 = vld [vmem:[%s6995_s2 + $0x8] sm:$0xff]  ;;  %v7594_v47 = vld [vmem:[#allocation114_spill] sm:$0xff] }
 0x1c6   :  { %v1575_v18 = vsel %vm1447_vm1, %v4650_v17, 256.0  ;;  %v1651_v25 = vmin.f32 %v1650_v35, %v1551_v29  ;;  %vm1377_vm7 = vcmp.eq.f32.partialorder %v7582_v33, %v4937_v8  ;;  %v1711_v55 = vmin.f32 %v1710_v1, %v1497_v45  ;;  %2223 = vmatprep.mubr.f32.mxu0 %v63_v59  ;;  %2300 = vmatprep.mubr.f32.mxu1 %v63_v59  ;;  %v7591_v31 = vld [vmem:[#allocation107_spill] sm:$0xff]  ;;  %v7596_v35 = vld [vmem:[#allocation117_spill] sm:$0xff]  ;;  %v7600_v33 = vld [vmem:[#allocation134_spill] sm:$0xff] }
 0x1c7   :  { %v1628_v50 = vmin.f32 %v1626_v0, %v1627_v10  ;;  %v1699_v9 = vrot.slane %v1698_v46, 4  ;;  %v1579_v15 = vsel %vm1451_vm14, %v4661_v39, 256.0  ;;  %v1501_v20 = vsel %vm1373_vm6, %v4422_v11, 256.0  ;;  %v7583_v0 = vld [vmem:[#allocation13_spill] sm:$0xff] }
 0x1c8   :  { %v5093_v22 = vsel %vm1455_vm4, %v4668_v26, 256.0  ;;  %v1652_v54 = vmin.f32 %v1651_v25, %v1555_v40  ;;  %vm1381_vm11 = vcmp.eq.f32.partialorder %v7583_v0, %v4937_v8  ;;  %v1712_v48 = vmin.f32 %v1711_v55, %v1501_v20  ;;  %v7597_v1 = vld [vmem:[#allocation121_spill] sm:$0xff]  ;;  %v7601_v55 = vld [vmem:[#allocation138_spill] sm:$0xff] }
 0x1c9   :  { %v1700_v12 = vmin.f32 %v1698_v46, %v1699_v9  ;;  %vm7584_vm14 = vcmp.eq.f32.partialorder %v4293_v38, %v4702_v42  ;;  %vm7585_vm12 = vcmp.eq.f32.partialorder %v4322_v56, %v4702_v42  ;;  %v1505_v13 = vsel %vm1377_vm7, %v4425_v19, 256.0  ;;  %v7588_v38 = vld [vmem:[#allocation97_spill] sm:$0xff]  ;;  %v7589_v42 = vld [vmem:[#allocation100_spill] sm:$0xff]  ;;  %v7598_v46 = vld [vmem:[#allocation126_spill] sm:$0xff] }
 0x1ca   :  { %v1587_v11 = vsel %vm7584_vm14, %v4679_v2, 256.0  ;;  %v5105_v34 = vsel %vm7585_vm12, %v4688_v61, 256.0  ;;  %v1653_v43 = vmin.f32 %v1652_v54, %v1559_v21  ;;  %vm1385_vm13 = vcmp.eq.f32.partialorder %v7586_v37, %v4937_v8  ;;  %v7590_v19 = vld [vmem:[#allocation104_spill] sm:$0xff]  ;;  %v7599_v25 = vld [vmem:[#allocation129_spill] sm:$0xff]  ;;  %v7604_v54 = vld [vmem:[#allocation11_spill] sm:$0xff] }
 0x1cb   :  { %v1713_v6 = vmin.f32 %v1712_v48, %v1505_v13  ;;  %v1629_v62 = vrot.slane %v1628_v50, 1  ;;  %vm1389_vm0 = vcmp.eq.f32.partialorder %v7587_v16, %v4937_v8  ;;  %vm1393_vm9 = vcmp.eq.f32.partialorder %v7588_v38, %v4937_v8  ;;  %v7603_v9 = vld [vmem:[#allocation137_spill] sm:$0xff]  ;;  %v7605_v0 = vld [vmem:[#allocation142_spill] sm:$0xff]  ;;  %v7606_v48 = vld [vmem:[#allocation139_spill] sm:$0xff] }
 0x1cc   :  { %v1509_v29 = vsel %vm1381_vm11, %v4431_v53, 256.0  ;;  %v1654_v56 = vmin.f32 %v1653_v43, %v1563_v57  ;;  %vm1397_vm8 = vcmp.eq.f32.partialorder %v7589_v42, %v4937_v8  ;;  %vm1401_vm2 = vcmp.eq.f32.partialorder %v7590_v19, %v4937_v8  ;;  %v7593_v53 = vld [vmem:[#allocation112_spill] sm:$0xff] }
 0x1cd   :  { %v1714_v3 = vmin.f32 %v1713_v6, %v1509_v29  ;;  %v1701_v40 = vrot.slane %v1700_v12, 2  ;;  %vm1405_vm3 = vcmp.eq.f32.partialorder %v7591_v31, %v4937_v8  ;;  %vm1409_vm1 = vcmp.eq.f32.partialorder %v7592_v60, %v4937_v8  ;;  %v7595_v57 = vld [vmem:[#allocation116_spill] sm:$0xff]  ;;  %v7608_v6 = vld [vmem:[#allocation19_spill] sm:$0xff] }
 0x1ce   :  { %v1513_v41 = vsel %vm1385_vm13, %v4434_v44, 256.0  ;;  %v1655_v10 = vmin.f32 %v1654_v56, %v1567_v36  ;;  %vm1413_vm4 = vcmp.eq.f32.partialorder %v7593_v53, %v4937_v8  ;;  %vm1417_vm15 = vcmp.eq.f32.partialorder %v7594_v47, %v4937_v8  ;;  %v7607_v13 = vld [vmem:[#allocation16_spill] sm:$0xff]  ;;  %v7613_v47 = vld [vmem:[#allocation118_spill] sm:$0xff] }
 0x1cf   :  { %v1715_v21 = vmin.f32 %v1714_v3, %v1513_v41  ;;  %v1630_v28 = vmin.f32 %v1628_v50, %v1629_v62  ;;  %vm1421_vm5 = vcmp.eq.f32.partialorder %v7595_v57, %v4937_v8  ;;  %vm1425_vm10 = vcmp.eq.f32.partialorder %v7596_v35, %v4937_v8  ;;  %v7602_v50 = vld [vmem:[#allocation135_spill] sm:$0xff]  ;;  %v7609_v62 = vld [vmem:[#allocation141_spill] sm:$0xff] }
 0x1d0   :  { %v1517_v44 = vsel %vm1389_vm0, %v4492_v5, 256.0  ;;  %v1656_v30 = vmin.f32 %v1655_v10, %v1571_v51  ;;  %vm1429_vm6 = vcmp.eq.f32.partialorder %v7597_v1, %v4937_v8  ;;  %vm1433_vm7 = vcmp.eq.f32.partialorder %v7598_v46, %v4937_v8  ;;  %v7615_v57 = vld [vmem:[#allocation123_spill] sm:$0xff]  ;;  %v7617_v1 = vld [vmem:[#allocation128_spill] sm:$0xff] }
 0x1d1   :  { %v1716_v36 = vmin.f32 %v1715_v21, %v1517_v44  ;;  %v1702_v45 = vmin.f32 %v1700_v12, %v1701_v40  ;;  %vm1437_vm11 = vcmp.eq.f32.partialorder %v7599_v25, %v4937_v8  ;;  %v1521_v5 = vsel %vm1393_vm9, %v7601_v55, 256.0  ;;  %v7614_v21 = vld [vmem:[#allocation120_spill] sm:$0xff]  ;;  %v7621_v55 = vld [vmem:[#allocation133_spill] sm:$0xff] }
 0x1d2   :  { %v1657_v51 = vmin.f32 %v1656_v30, %v1575_v18  ;;  %vm1445_vm12 = vcmp.eq.f32.partialorder %v7602_v50, %v4937_v8  ;;  %v3136_v59 = vtrunc.f32 %v1630_v28  ;;  %vm1453_vm0 = vcmp.eq.f32.partialorder %v7604_v54, %v4937_v8  ;;  %v7616_v30 = vld [vmem:[#allocation125_spill] sm:$0xff]  ;;  %v7622_v54 = vld [vmem:[#allocation136_spill] sm:$0xff] }
 0x1d3   :  { %v1717_v20 = vmin.f32 %v1716_v36, %v1521_v5  ;;  %vm1457_vm14 = vcmp.eq.f32.partialorder %v7605_v0, %v4937_v8  ;;  %v1525_v12 = vsel %vm1397_vm8, %v7606_v48, 256.0  ;;  %vm1461_vm9 = vcmp.eq.f32.partialorder %v7607_v13, %v4937_v8  ;;  %v7623_v0 = vld [vmem:[#allocation14_spill] sm:$0xff]  ;;  %v7624_v48 = vld [vmem:[#allocation113_spill] sm:$0xff]  ;;  %v7625_v13 = vld [vmem:[#allocation144_spill] sm:$0xff] }
 0x1d4   :  { %v1658_v18 = vmin.f32 %v1657_v51, %v1579_v15  ;;  %v1703_v37 = vrot.slane %v1702_v45, 1  ;;  %vm1465_vm13 = vcmp.eq.f32.partialorder %v7608_v6, %v4937_v8  ;;  %v1529_v16 = vsel %vm1401_vm2, %v7609_v62, 256.0  ;;  %v7627_v62 = vld [vmem:[#allocation25_spill] sm:$0xff] }
 0x1d5   :  { %v1718_v43 = vmin.f32 %v1717_v20, %v1525_v12  ;;  %v1533_v38 = vsel %vm1405_vm3, %v4520_v49, 256.0  ;;  %v1537_v29 = vsel %vm1409_vm1, %v4523_v14, 256.0  ;;  %v1541_v56 = vsel %vm1413_vm4, %v4533_v23, 256.0 }
 0x1d6   :  { %v1659_v15 = vmin.f32 %v1658_v18, %v5093_v22  ;;  %v5181_v19 = vcvt.f32.s32 %v3136_v59  ;;  %v1545_v49 = vsel %vm1417_vm15, %v4544_v7, 256.0  ;;  %v1549_v22 = vsel %vm1421_vm5, %v4565_v32, 256.0 }
 0x1d7   :  { %v1719_v42 = vmin.f32 %v1718_v43, %v1529_v16  ;;  %v3214_v3 = vmov 1966171168   ;;  %v1553_v23 = vsel %vm1425_vm10, %v4568_v4, 256.0  ;;  %v1557_v31 = vsel %vm1429_vm6, %v4579_v63, 256.0  ;;  %v7626_v43 = vld [vmem:[#allocation146_spill] sm:$0xff]  ;;  %v7628_v16 = vld [vmem:[#allocation31_spill] sm:$0xff] }
 0x1d8   :  { %v1749_v14 = vunpack.c.l.s4 %v3214_v3  ;;  %v1660_v40 = vmin.f32 %v1659_v15, %v1587_v11  ;;  %v1704_v7 = vmin.f32 %v1702_v45, %v1703_v37  ;;  %v5203_v32 = vsel %vm1433_vm7, %v4582_v27, 256.0 }
 0x1d9   :  { %v1720_v60 = vmin.f32 %v1719_v42, %v1533_v38  ;;  %v1565_v11 = vsel %vm1437_vm11, %v4619_v58, 256.0  ;;  %vm7610_vm8 = vcmp.eq.f32.partialorder %v7600_v33, %v4937_v8  ;;  %v5220_v41 = vsel %vm1445_vm12, %v4643_v52, 256.0  ;;  %v7612_v52 = vld [vmem:[#allocation108_spill] sm:$0xff]  ;;  %v7620_v33 = vld [vmem:[#allocation131_spill] sm:$0xff] }
 0x1da   :  { %v5213_v4 = vsel %vm7610_vm8, %v4627_v24, 256.0  ;;  %v1661_v63 = vmin.f32 %v1660_v40, %v5105_v34  ;;  %vm7611_vm2 = vcmp.eq.f32.partialorder %v7603_v9, %v4937_v8  ;;  %v5232_v24 = vsel %vm1453_vm0, %v4661_v39, 256.0  ;;  %v7629_v42 = vld [vmem:[#allocation115_spill] sm:$0xff] }
 0x1db   :  { %v5226_v27 = vsel %vm7611_vm2, %v4650_v17, 256.0  ;;  %v1721_v58 = vmin.f32 %v1720_v60, %v1537_v29  ;;  %v5238_v34 = vsel %vm1457_vm14, %v4668_v26, 256.0  ;;  %vm1775_vm3 = vcmp.eq.s32.totalorder %v7612_v52, %v5181_v19 }
 0x1dc   :  { %v1750_v10 = vunpack.c.0.s8 %v1749_v14  ;;  %v1662_v53 = vrot.slane %v1661_v63, 4  ;;  %vm1787_vm1 = vcmp.eq.s32.totalorder %v7613_v47, %v5181_v19  ;;  %vm1795_vm4 = vcmp.eq.s32.totalorder %v7614_v21, %v5181_v19 }
 0x1dd   :  { %v1722_v17 = vmin.f32 %v1721_v58, %v1541_v56  ;;  %v3140_v39 = vtrunc.f32 %v1704_v7  ;;  %v5250_v28 = vsel %vm1461_vm9, %v4679_v2, 256.0  ;;  %v5256_v26 = vsel %vm1465_vm13, %v4688_v61, 256.0  ;;  %v7630_v58 = vld [vmem:[#allocation119_spill] sm:$0xff] }
 0x1de   :  { %vm1803_vm15 = vcmp.eq.s32.totalorder %v7615_v57, %v5181_v19  ;;  %v1663_v35 = vmin.f32 %v1661_v63, %v1662_v53  ;;  %vm7242_vm5 = vcmp.eq.s32.totalorder %v7616_v30, %v5181_v19  ;;  %vm7241_vm10 = vcmp.eq.s32.totalorder %v7617_v1, %v5181_v19 }
 0x1df   :  { %v1723_v44 = vmin.f32 %v1722_v17, %v1545_v49  ;;  %v7618_v46 = vmov 0.0   ;;  %v5283_v36 = vsub.s32 %v1750_v10, %v7612_v52  ;;  %vm7240_vm6 = vcmp.eq.s32.totalorder %v7620_v33, %v5181_v19 }
 0x1e0   :  { %v5268_v2 = vsel %vm1775_vm3, 1.0, %v7618_v46  ;;  %v5274_v61 = vsel %vm1787_vm1, 1.0, %v7618_v46  ;;  %v5280_v8 = vsel %vm1795_vm4, 1.0, %v7618_v46  ;;  %v1664_v45 = vrot.slane %v1663_v35, 2 }
 0x1e1   :  { %7619 = vst [vmem:[#allocation38_spill] sm:$0xff] %v5283_v36  ;;  %v1724_v25 = vmin.f32 %v1723_v44, %v1549_v22  ;;  %vm7239_vm7 = vcmp.eq.s32.totalorder %v7621_v55, %v5181_v19  ;;  %v5289_v5 = vcvt.f32.s32 %v3140_v39  ;;  %v5295_v51 = vsel %vm1803_vm15, 1.0, %v7618_v46 }
 0x1e2   :  { %v5301_v50 = vsel %vm7242_vm5, 1.0, %v7618_v46  ;;  %v5307_v9 = vsel %vm7241_vm10, 1.0, %v7618_v46  ;;  %v1665_v20 = vmin.f32 %v1663_v35, %v1664_v45  ;;  %vm7252_vm11 = vcmp.eq.s32.totalorder %v7622_v54, %v5181_v19 }
 0x1e3   :  { %v1725_v59 = vmin.f32 %v1724_v25, %v1553_v23  ;;  %vm7247_vm14 = vcmp.eq.s32.totalorder %v7623_v0, %v5181_v19  ;;  %vm1779_vm12 = vcmp.eq.s32.totalorder %v7624_v48, %v5181_v19  ;;  %v5319_v12 = vsel %vm7240_vm6, 1.0, %v7618_v46  ;;  %v7631_v25 = vld [vmem:[#allocation36_spill] sm:$0xff] }
 0x1e4   :  { %v5325_v18 = vsel %vm7239_vm7, 1.0, %v7618_v46  ;;  %vm7243_vm13 = vcmp.eq.s32.totalorder %v7625_v13, %v5181_v19  ;;  %vm7244_vm0 = vcmp.eq.s32.totalorder %v7626_v43, %v5181_v19  ;;  %v1666_v37 = vrot.slane %v1665_v20, 1 }
 0x1e5   :  { %v1726_v6 = vmin.f32 %v1725_v59, %v1557_v31  ;;  %vm7246_vm9 = vcmp.eq.s32.totalorder %v7627_v62, %v5181_v19  ;;  %vm7245_vm8 = vcmp.eq.s32.totalorder %v7628_v16, %v5181_v19  ;;  %vm7254_vm2 = vcmp.eq.s32.totalorder %v7612_v52, %v5289_v5  ;;  %v7632_v59 = vld [vmem:[#allocation122_spill] sm:$0xff] }
 0x1e6   :  { %vm7250_vm7 = vcmp.eq.s32.totalorder %v7613_v47, %v5289_v5  ;;  %v5343_v38 = vsel %vm7252_vm11, 1.0, %v7618_v46  ;;  %v5349_v15 = vsel %vm7247_vm14, 1.0, %v7618_v46  ;;  %v1667_v29 = vmin.f32 %v1665_v20, %v1666_v37 }
 0x1e7   :  { %v1727_v56 = vmin.f32 %v1726_v6, %v5203_v32  ;;  %vm7249_vm6 = vcmp.eq.s32.totalorder %v7614_v21, %v5289_v5  ;;  %vm7248_vm10 = vcmp.eq.s32.totalorder %v7615_v57, %v5289_v5  ;;  %vm1783_vm5 = vcmp.eq.s32.totalorder %v7629_v42, %v5181_v19 }
 0x1e8   :  { %v5362_v49 = vsel %vm7243_vm13, 1.0, %v7618_v46  ;;  %v5368_v22 = vsel %vm7244_vm0, 1.0, %v7618_v46  ;;  %v5374_v3 = vsel %vm7246_vm9, 1.0, %v7618_v46  ;;  %v5380_v14 = vsel %vm7245_vm8, 1.0, %v7618_v46 }
 0x1e9   :  { %v3138_v40 = vtrunc.f32 %v1667_v29  ;;  %v1728_v23 = vmin.f32 %v1727_v56, %v1565_v11  ;;  %vm7251_vm13 = vcmp.eq.s32.totalorder %v7616_v30, %v5289_v5  ;;  %vm7253_vm0 = vcmp.eq.s32.totalorder %v7617_v1, %v5289_v5 }
 0x1ea   :  { %v2746_v31 = vsel %vm7254_vm2, 1.0, %v7618_v46  ;;  %v2758_v60 = vsel %vm7250_vm7, 1.0, %v7618_v46  ;;  %v2766_v7 = vsel %vm7249_vm6, 1.0, %v7618_v46  ;;  %v2774_v32 = vsel %vm7248_vm10, 1.0, %v7618_v46 }
 0x1eb   :  { %v5402_v11 = vcvt.f32.s32 %v3138_v40  ;;  %v1729_v63 = vmin.f32 %v1728_v23, %v5213_v4  ;;  %vm7255_vm8 = vcmp.eq.s32.totalorder %v7620_v33, %v5289_v5  ;;  %vm7256_vm9 = vcmp.eq.s32.totalorder %v7621_v55, %v5289_v5 }
 0x1ec   :  { %vm7266_vm14 = vcmp.eq.s32.totalorder %v7630_v58, %v5181_v19  ;;  %v5415_v10 = vsel %vm7251_vm13, 1.0, %v7618_v46  ;;  %v5421_v4 = vsel %vm7253_vm0, 1.0, %v7618_v46  ;;  %vm7258_vm10 = vcmp.eq.s32.totalorder %v7622_v54, %v5289_v5 }
 0x1ed   :  { %vm7259_vm6 = vcmp.eq.s32.totalorder %v7623_v0, %v5289_v5  ;;  %v1730_v53 = vmin.f32 %v1729_v63, %v5220_v41  ;;  %vm1776_vm7 = vcmp.eq.s32.totalorder %v7612_v52, %v5402_v11  ;;  %vm7257_vm13 = vcmp.eq.s32.totalorder %v7624_v48, %v5402_v11 }
 0x1ee   :  { %vm7260_vm11 = vcmp.eq.s32.totalorder %v7629_v42, %v5402_v11  ;;  %v2745_v17 = vsel %vm1776_vm7, 1.0, %v7618_v46  ;;  %vm3008_vm0 = vmpackc.low %vm7257_vm13, %vm1776_vm7  ;;  %vm1788_vm2 = vcmp.eq.s32.totalorder %v7613_v47, %v5402_v11  ;;  %v5444_v41 = vsel %vm7255_vm8, 1.0, %v7618_v46 }
 0x1ef   :  { %v5450_v39 = vsel %vm7256_vm9, 1.0, %v7618_v46  ;;  %v1731_v35 = vmin.f32 %v1730_v53, %v5226_v27  ;;  %v7291_v44 = vmov 1.0|1.0   ;;  %vm3010_vm7 = vmpackc.low %vm1779_vm12, %vm1775_vm3  ;;  %v2757_v45 = vsel %vm1788_vm2, 1.0, %v7618_v46 }
 0x1f0   :  { %3009 = vmatprep.subr.msk.bf16.mxu0 %vm3008_vm0, %v7291_v44  ;;  %vm1796_vm8 = vcmp.eq.s32.totalorder %v7614_v21, %v5402_v11  ;;  %v5467_v27 = vsel %vm7258_vm10, 1.0, %v7618_v46  ;;  %vm7270_vm0 = vcmp.eq.s32.totalorder %v7631_v25, %v5181_v19  ;;  %vm3012_vm3 = vmpackc.low %vm1788_vm2, %vm7260_vm11  ;;  %vm7262_vm9 = vcmp.eq.s32.totalorder %v7630_v58, %v5402_v11 }
 0x1f1   :  { %3011 = vmatpush1.bf16.msk.msra.mxu0 %vm3010_vm7, %v7291_v44  ;;  %v2321_v20 = vadd.f32 %v2745_v17, %v5268_v2  ;;  %vm1799_vm13 = vcmp.eq.s32.totalorder %v7632_v59, %v5181_v19  ;;  %vm7261_vm10 = vcmp.eq.s32.totalorder %v7625_v13, %v5289_v5  ;;  %v5486_v37 = vsel %vm7259_vm6, 1.0, %v7618_v46  ;;  %vm3014_vm6 = vmpackc.low %vm1787_vm1, %vm1783_vm5 }
 0x1f2   :  { %v1732_v6 = vmin.f32 %v1731_v35, %v5232_v24  ;;  %3013 = vmatprep.subr.msk.bf16.mxu0 %vm3012_vm3, %v7291_v44  ;;  %v2765_v2 = vsel %vm1796_vm8, 1.0, %v7618_v46  ;;  %vm1804_vm2 = vcmp.eq.s32.totalorder %v7615_v57, %v5402_v11  ;;  %v2336_v29 = vadd.f32 %v2757_v45, %v5274_v61  ;;  %vm3016_vm1 = vmpackc.low %vm1796_vm8, %vm7262_vm9 }
 0x1f3   :  { %v5497_v56 = vadd.f32 %v2746_v31, %v2321_v20  ;;  %v2773_v40 = vsel %vm1804_vm2, 1.0, %v7618_v46  ;;  %vm1812_vm7 = vcmp.eq.s32.totalorder %v7616_v30, %v5402_v11  ;;  %vm7263_vm3 = vcmp.eq.s32.totalorder %v7626_v43, %v5289_v5  ;;  %v7635_v20 = vld [vmem:[#allocation18_spill] sm:$0xff] }
 0x1f4   :  { %v1733_v24 = vmin.f32 %v1732_v6, %v5238_v34  ;;  %v5514_v61 = vadd.f32 %v2758_v60, %v2336_v29  ;;  %v5520_v23 = vsel %vm7261_vm10, 1.0, %v7618_v46  ;;  %vm7268_vm11 = vcmp.eq.s32.totalorder %v7627_v62, %v5289_v5  ;;  %v7633_v60 = vld [vmem:[#allocation124_spill] sm:$0xff] }
 0x1f5   :  { %3015 = vmatpush1.bf16.msk.msra.mxu0 %vm3014_vm6, %v7291_v44  ;;  %v2781_v34 = vsel %vm1812_vm7, 1.0, %v7618_v46  ;;  %v2346_v31 = vadd.f32 %v2765_v2, %v5280_v8  ;;  %vm7277_vm10 = vcmp.eq.s32.totalorder %v7633_v60, %v5181_v19  ;;  %vm7265_vm6 = vcmp.eq.s32.totalorder %v7617_v1, %v5402_v11 }
 0x1f6   :  { %v2356_v63 = vadd.f32 %v2773_v40, %v5295_v51  ;;  %v1734_v53 = vmin.f32 %v1733_v24, %v5250_v28  ;;  %3017 = vmatprep.subr.msk.bf16.mxu0 %vm3016_vm1, %v7291_v44  ;;  %vm1800_vm8 = vcmp.eq.s32.totalorder %v7632_v59, %v5402_v11  ;;  %v2789_v8 = vsel %vm7265_vm6, 1.0, %v7618_v46 }
 0x1f7   :  { %v5553_v17 = vsel %vm7263_vm3, 1.0, %v7618_v46  ;;  %v5555_v35 = vadd.f32 %v2766_v7, %v2346_v31  ;;  %vm7264_vm1 = vcmp.eq.s32.totalorder %v7620_v33, %v5402_v11  ;;  %vm7267_vm9 = vcmp.eq.s32.totalorder %v7628_v16, %v5289_v5  ;;  %vm3018_vm3 = vmpackc.low %vm1795_vm4, %vm7266_vm14  ;;  %v7636_v31 = vld [vmem:[#allocation130_spill] sm:$0xff] }
 0x1f8   :  { %v5557_v51 = vadd.f32 %v2774_v32, %v2356_v63  ;;  %v1735_v28 = vmin.f32 %v1734_v53, %v5256_v26  ;;  %v2797_v7 = vsel %vm7264_vm1, 1.0, %v7618_v46  ;;  %v2366_v32 = vadd.f32 %v2781_v34, %v5301_v50  ;;  %vm3020_vm4 = vmpackc.low %vm1804_vm2, %vm1800_vm8  ;;  %v7634_v26 = vld [vmem:[#allocation127_spill] sm:$0xff] }
 0x1f9   :  { %v5579_v45 = vsel %vm7268_vm11, 1.0, %v7618_v46  ;;  %3019 = vmatpush1.bf16.msk.msra.mxu0 %vm3018_vm3, %v7291_v44  ;;  %vm7275_vm1 = vcmp.eq.s32.totalorder %v7633_v60, %v5402_v11  ;;  %vm7285_vm6 = vcmp.eq.s32.totalorder %v7634_v26, %v5181_v19  ;;  %vm1836_vm14 = vcmp.eq.s32.totalorder %v7621_v55, %v5402_v11 }
 0x1fa   :  { %v2376_v50 = vadd.f32 %v2789_v8, %v5307_v9  ;;  %vm7269_vm3 = vcmp.eq.s32.totalorder %v7635_v20, %v5181_v19  ;;  %v1736_v6 = vrot.slane %v1735_v28, 4  ;;  %3021 = vmatprep.subr.msk.bf16.mxu0 %vm3020_vm4, %v7291_v44  ;;  %v5599_v2 = vadd.f32 %v5415_v10, %v2366_v32  ;;  %vm3022_vm4 = vmpackc.low %vm1803_vm15, %vm1799_vm13 }
 0x1fb   :  { %v2805_v29 = vsel %vm1836_vm14, 1.0, %v7618_v46  ;;  %vm7278_vm2 = vcmp.eq.s32.totalorder %v7622_v54, %v5402_v11  ;;  %v2386_v9 = vadd.f32 %v2797_v7, %v5319_v12  ;;  %v5615_v24 = vsel %vm7267_vm9, 1.0, %v7618_v46  ;;  %vm3024_vm11 = vmpackc.low %vm1812_vm7, %vm7275_vm1  ;;  %v7637_v7 = vld [vmem:[#allocation132_spill] sm:$0xff] }
 0x1fc   :  { %v5608_v40 = vadd.f32 %v5421_v4, %v2376_v50  ;;  %v5621_v10 = vsel %vm7270_vm0, 1.0, %v7618_v46  ;;  %v1737_v34 = vmin.f32 %v1735_v28, %v1736_v6  ;;  %v2813_v12 = vsel %vm7278_vm2, 1.0, %v7618_v46 }
 0x1fd   :  { %vm7272_vm9 = vcmp.eq.s32.totalorder %v7623_v0, %v5402_v11  ;;  %v2396_v4 = vadd.f32 %v2805_v29, %v5325_v18  ;;  %3023 = vmatpush1.bf16.msk.msra.mxu0 %vm3022_vm4, %v7291_v44  ;;  %vm7284_vm15 = vcmp.eq.s32.totalorder %v7636_v31, %v5181_v19  ;;  %v5646_v63 = vadd.f32 %v5444_v41, %v2386_v9 }
 0x1fe   :  { %v2821_v18 = vsel %vm7272_vm9, 1.0, %v7618_v46  ;;  %v2868_v53 = vsel %vm7269_vm3, 1.0, %v7618_v46  ;;  %v2748_v8 = vsel %vm1779_vm12, 1.0, %v7618_v46  ;;  %v1738_v28 = vrot.slane %v1737_v34, 2  ;;  %3025 = vmatprep.subr.msk.bf16.mxu0 %vm3024_vm11, %v7291_v44 }
 0x1ff   :  { %vm7274_vm7 = vcmp.eq.s32.totalorder %v7634_v26, %v5402_v11  ;;  %v5664_v41 = vadd.f32 %v5450_v39, %v2396_v4  ;;  %vm7271_vm4 = vcmp.eq.s32.totalorder %v7625_v13, %v5402_v11  ;;  %vm7286_vm3 = vcmp.eq.s32.totalorder %v7637_v7, %v5181_v19 }
 0x200   :  { %v2829_v32 = vsel %vm7271_vm4, 1.0, %v7618_v46  ;;  %v2406_v50 = vadd.f32 %v2813_v12, %v5343_v38  ;;  %vm7273_vm11 = vcmp.eq.s32.totalorder %v7626_v43, %v5402_v11  ;;  %v2752_v39 = vsel %vm1783_vm5, 1.0, %v7618_v46 }
 0x201   :  { %v1739_v6 = vmin.f32 %v1737_v34, %v1738_v28  ;;  %vm7638_vm12 = vcmp.eq.s32.totalorder %v7616_v30, %v5181_v19  ;;  %v2837_v38 = vsel %vm7273_vm11, 1.0, %v7618_v46  ;;  %v2416_v29 = vadd.f32 %v2821_v18, %v5349_v15 }
 0x202   :  { %vm3026_vm0 = vmpackc.low %vm7638_vm12, %vm7277_vm10  ;;  %vm7639_vm4 = vcmp.eq.s32.totalorder %v7630_v58, %v5181_v19  ;;  %vm1781_vm5 = vcmp.eq.s32.totalorder %v7624_v48, %v5289_v5  ;;  %vm7640_vm12 = vcmp.eq.s32.totalorder %v7617_v1, %v5402_v11  ;;  %v5706_v34 = vadd.f32 %v5467_v27, %v2406_v50 }
 0x203   :  { %v2760_v9 = vsel %vm7639_vm4, 1.0, %v7618_v46  ;;  %3027 = vmatpush1.bf16.msk.msra.mxu0 %vm3026_vm0, %v7291_v44  ;;  %vm3028_vm9 = vmpackc.low %vm7640_vm12, %vm7274_vm7  ;;  %vm7276_vm11 = vcmp.eq.s32.totalorder %v7627_v62, %v5402_v11  ;;  %v2426_v15 = vadd.f32 %v2829_v32, %v5362_v49  ;;  %vm7289_vm4 = vcmp.eq.s32.totalorder %v7631_v25, %v5289_v5 }
 0x204   :  { %v2768_v12 = vsel %vm1799_vm13, 1.0, %v7618_v46  ;;  %v1740_v4 = vrot.slane %v1739_v6, 1  ;;  %vm1785_vm0 = vcmp.eq.s32.totalorder %v7629_v42, %v5289_v5  ;;  %vm1793_vm12 = vcmp.eq.s32.totalorder %v7630_v58, %v5289_v5  ;;  %3029 = vmatprep.subr.msk.bf16.mxu0 %vm3028_vm9, %v7291_v44 }
 0x205   :  { %vm7283_vm7 = vcmp.eq.s32.totalorder %v7636_v31, %v5402_v11  ;;  %v5725_v49 = vadd.f32 %v5486_v37, %v2416_v29  ;;  %v2845_v27 = vsel %vm7276_vm11, 1.0, %v7618_v46  ;;  %vm7642_vm13 = vcmp.eq.s32.totalorder %v7624_v48, %v5402_v11 }
 0x206   :  { %v2749_v18 = vsel %vm7642_vm13, 1.0, %v7618_v46  ;;  %v5736_v28 = vadd.f32 %v5520_v23, %v2426_v15  ;;  %vm7281_vm9 = vcmp.eq.s32.totalorder %v7628_v16, %v5402_v11  ;;  %v2436_v32 = vadd.f32 %v2837_v38, %v5368_v22  ;;  %v7647_v22 = vld [vmem:[#allocation79_spill] sm:$0xff] }
 0x207   :  { %7641 = vst [vmem:[#allocation41_spill] sm:$0xff] %v5725_v49  ;;  %v1741_v37 = vmin.f32 %v1739_v6, %v1740_v4  ;;  %vm7644_vm1 = vcmp.eq.s32.totalorder %v7629_v42, %v5402_v11  ;;  %vm7645_vm11 = vcmp.eq.s32.totalorder %v7630_v58, %v5402_v11  ;;  %vm7646_vm13 = vcmp.eq.s32.totalorder %v7617_v1, %v5181_v19 }
 0x208   :  { %7643 = vst [vmem:[#allocation23_spill] sm:$0xff] %v5736_v28  ;;  %v2753_v50 = vsel %vm7644_vm1, 1.0, %v7618_v46  ;;  %v2761_v29 = vsel %vm7645_vm11, 1.0, %v7618_v46  ;;  %vm3030_vm10 = vmpackc.low %vm7646_vm13, %vm7285_vm6  ;;  %v2853_v23 = vsel %vm7281_vm9, 1.0, %v7618_v46  ;;  %v2769_v6 = vsel %vm1800_vm8, 1.0, %v7618_v46 }
 0x209   :  { %3031 = vmatpush1.bf16.msk.msra.mxu0 %vm3030_vm10, %v7291_v44  ;;  %vm7648_vm1 = vcmp.eq.s32.totalorder %v7620_v33, %v5402_v11  ;;  %v5773_v38 = vadd.f32 %v5553_v17, %v2436_v32  ;;  %vm7279_vm13 = vcmp.eq.s32.totalorder %v7631_v25, %v5402_v11  ;;  %v2446_v15 = vadd.f32 %v2845_v27, %v5374_v3 }
 0x20a   :  { %vm3032_vm11 = vmpackc.low %vm7648_vm1, %vm7283_vm7  ;;  %v3142_v4 = vtrunc.f32 %v1741_v37  ;;  %vm7282_vm10 = vcmp.eq.s32.totalorder %v7637_v7, %v5402_v11  ;;  %v2861_v28 = vsel %vm7279_vm13, 1.0, %v7618_v46  ;;  %vm7280_vm8 = vcmp.eq.s32.totalorder %v7635_v20, %v5402_v11 }
 0x20b   :  { %7649 = vst [vmem:[#allocation44_spill] sm:$0xff] %v5773_v38  ;;  %3033 = vmatprep.subr.msk.bf16.mxu0 %vm3032_vm11, %v7291_v44  ;;  %v5788_v17 = vadd.f32 %v5579_v45, %v2446_v15  ;;  %v2869_v3 = vsel %vm7280_vm8, 1.0, %v7618_v46  ;;  %v2456_v27 = vadd.f32 %v2853_v23, %v5380_v14  ;;  %vm7288_vm1 = vcmp.eq.s32.totalorder %v7635_v20, %v5289_v5  ;;  %vm3036_vm8 = vmpackc.low %vm1836_vm14, %vm7282_vm10  ;;  %v7673_v38 = vld [vmem:[#allocation28_spill] sm:$0xff]  ;;  %v7678_v20 = vld [vmem:[#allocation34_spill] sm:$0xff] }
 0x20c   :  { %v5797_v32 = vcvt.f32.s32 %v3142_v4  ;;  %vm7651_vm11 = vcmp.eq.s32.totalorder %v7620_v33, %v5181_v19  ;;  %v5806_v45 = vadd.f32 %v2861_v28, %v5621_v10  ;;  %v5808_v37 = vadd.f32 %v2869_v3, %v2868_v53 }
 0x20d   :  { %7650 = vst [vmem:[#allocation27_spill] sm:$0xff] %v5788_v17  ;;  %vm3034_vm13 = vmpackc.low %vm7651_vm11, %vm7284_vm15  ;;  %v5810_v15 = vadd.f32 %v2749_v18, %v2748_v8  ;;  %v5820_v14 = vadd.f32 %v5615_v24, %v2456_v27  ;;  %v5822_v23 = vadd.f32 %v2753_v50, %v2752_v39  ;;  %v5824_v10 = vadd.f32 %v2761_v29, %v2760_v9  ;;  %v7656_v39 = vld [vmem:[#allocation140_spill] sm:$0xff] }
 0x20e   :  { %3035 = vmatpush1.bf16.msk.msra.mxu0 %vm3034_vm13, %v7291_v44  ;;  %v5826_v53 = vadd.f32 %v2769_v6, %v2768_v12  ;;  %vm1778_vm11 = vcmp.eq.s32.totalorder %v7612_v52, %v5797_v32  ;;  %vm7287_vm13 = vcmp.eq.s32.totalorder %v7624_v48, %v5797_v32  ;;  %vm7290_vm9 = vcmp.eq.s32.totalorder %v7629_v42, %v5797_v32  ;;  %v7658_v12 = vld [vmem:[#allocation143_spill] sm:$0xff] }
 0x20f   :  { %7652 = vst [vmem:[#allocation47_spill] sm:$0xff] %v5820_v14  ;;  %vm1790_vm14 = vcmp.eq.s32.totalorder %v7613_v47, %v5797_v32  ;;  %3037 = vmatprep.subr.msk.bf16.mxu0 %vm3036_vm8, %v7291_v44  ;;  %vm7653_vm10 = vcmp.eq.s32.totalorder %v7621_v55, %v5181_v19  ;;  %vm3072_vm15 = vmpackc.low %vm7287_vm13, %vm1778_vm11  ;;  %v2747_v8 = vsel %vm1778_vm11, 1.0, %v7618_v46  ;;  %vm7299_vm6 = vcmp.eq.s32.totalorder %v7632_v59, %v5289_v5  ;;  %v7670_v14 = vld [vmem:[#allocation22_spill] sm:$0xff] }
 0x210   :  { %vm5843_vm7 = vmpackc.low %vm7653_vm10, %vm7286_vm3  ;;  %vm1840_vm8 = vcmp.eq.s32.totalorder %v7647_v22, %v5402_v11  ;;  %3073 = vmatprep.subr.msk.bf16.mxu1 %vm3072_vm15, %v7291_v44  ;;  %vm7657_vm10 = vcmp.eq.s32.totalorder %v7612_v52, %v5289_v5  ;;  %v2323_v9 = vadd.f32 %v2747_v8, %v5497_v56  ;;  %vm7296_vm11 = vcmp.eq.s32.totalorder %v7633_v60, %v5289_v5 }
 0x211   :  { %vm3074_vm3 = vmpackc.low %vm1781_vm5, %vm7657_vm10  ;;  %vm7294_vm13 = vcmp.eq.s32.totalorder %v7634_v26, %v5289_v5  ;;  %vm7306_vm2 = vcmp.eq.s32.totalorder %v7658_v12, %v5181_v19  ;;  %v5875_v18 = vsel %vm7289_vm4, 1.0, %v7618_v46  ;;  %v5891_v56 = vsel %vm7288_vm1, 1.0, %v7618_v46 }
 0x212   :  { %3075 = vmatpush1.bf16.msk.msra.mxu1 %vm3074_vm3, %v7291_v44  ;;  %vm3076_vm15 = vmpackc.low %vm1790_vm14, %vm7290_vm9  ;;  %3039 = vmatpush1.bf16.msk.msra.mxu0 %vm5843_vm7, %v7291_v44  ;;  %v5897_v28 = vsel %vm1781_vm5, 1.0, %v7618_v46  ;;  %v5903_v50 = vsel %vm1785_vm0, 1.0, %v7618_v46  ;;  %v5909_v29 = vsel %vm1793_vm12, 1.0, %v7618_v46  ;;  %vm7295_vm3 = vcmp.eq.s32.totalorder %v7630_v58, %v5797_v32 }
 0x213   :  { %3077 = vmatprep.subr.msk.bf16.mxu1 %vm3076_vm15, %v7291_v44  ;;  %vm1798_vm7 = vcmp.eq.s32.totalorder %v7614_v21, %v5797_v32  ;;  %2324 = vadd.xlane.f32.xlu1 %v2323_v9  ;;  %vm7659_vm5 = vcmp.eq.s32.totalorder %v7622_v54, %v5402_v11  ;;  %v5926_v6 = vsel %vm7299_vm6, 1.0, %v7618_v46  ;;  %vm7660_vm15 = vcmp.eq.s32.totalorder %v7633_v60, %v5181_v19 }
 0x214   :  { %vm3040_vm10 = vmpackc.low %vm7659_vm5, %vm1840_vm8  ;;  %v5932_v4 = vsel %vm7660_vm15, 1.0, %v7618_v46  ;;  %v2759_v3 = vsel %vm1790_vm14, 1.0, %v7618_v46  ;;  %vm7661_vm5 = vcmp.eq.s32.totalorder %v7647_v22, %v5181_v19  ;;  %vm7662_vm1 = vcmp.eq.s32.totalorder %v7622_v54, %v5181_v19 }
 0x215   :  { %3041 = vmatprep.subr.msk.bf16.mxu0 %vm3040_vm10, %v7291_v44  ;;  %vm3042_vm4 = vmpackc.low %vm7662_vm1, %vm7661_vm5  ;;  %vm1848_vm9 = vcmp.eq.s32.totalorder %v7656_v39, %v5402_v11  ;;  %v5951_v27 = vsel %vm7296_vm11, 1.0, %v7618_v46  ;;  %vm7663_vm14 = vcmp.eq.s32.totalorder %v7634_v26, %v5181_v19  ;;  %vm7664_vm1 = vcmp.eq.s32.totalorder %v7613_v47, %v5289_v5  ;;  %v7666_v44 = vld [vmem:[#allocation145_spill] sm:$0xff] }
 0x216   :  { %v5957_v24 = vsel %vm7663_vm14, 1.0, %v7618_v46  ;;  %vm3078_vm10 = vmpackc.low %vm7664_vm1, %vm1785_vm0  ;;  %v2338_v8 = vadd.f32 %v2759_v3, %v5514_v61  ;;  %vm7665_vm15 = vcmp.eq.s32.totalorder %v7633_v60, %v5402_v11  ;;  %v5978_v52 = vsel %vm7294_vm13, 1.0, %v7618_v46 }
 0x217   :  { %v5970_v9 = vsel %vm7665_vm15, 1.0, %v7618_v46  ;;  %vm7667_vm0 = vcmp.eq.s32.totalorder %v7636_v31, %v5181_v19  ;;  %v7668_v61 = vmov 1.0|1.0   ;;  %vm3080_vm14 = vmpackc.low %vm1798_vm7, %vm7295_vm3  ;;  %vm7669_vm1 = vcmp.eq.s32.totalorder %v7634_v26, %v5402_v11 }
 0x218   :  { %v5984_v47 = vsel %vm7667_vm0, 1.0, %v7618_v46  ;;  %3079 = vmatpush1.bf16.msk.msra.mxu1 %vm3078_vm10, %v7668_v61  ;;  %v5997_v3 = vsel %vm7669_vm1, 1.0, %v7618_v46  ;;  %3043 = vmatpush1.bf16.msk.msra.mxu0 %vm3042_vm4, %v7668_v61  ;;  %vm1856_vm15 = vcmp.eq.s32.totalorder %v7658_v12, %v5402_v11  ;;  %vm1864_vm10 = vcmp.eq.s32.totalorder %v7666_v44, %v5402_v11 }
 0x219   :  { %vm1872_vm0 = vcmp.eq.s32.totalorder %v7670_v14, %v5402_v11  ;;  %3081 = vmatprep.subr.msk.bf16.mxu1 %vm3080_vm14, %v7668_v61  ;;  %vm7304_vm13 = vcmp.eq.s32.totalorder %v7632_v59, %v5797_v32  ;;  %vm1806_vm1 = vcmp.eq.s32.totalorder %v7615_v57, %v5797_v32  ;;  %2339 = vadd.xlane.f32.xlu1 %v2338_v8  ;;  %v2767_v8 = vsel %vm1798_vm7, 1.0, %v7618_v46 }
 0x21a   :  { %vm7671_vm4 = vcmp.eq.s32.totalorder %v7636_v31, %v5402_v11  ;;  %vm7672_vm3 = vcmp.eq.s32.totalorder %v7623_v0, %v5402_v11  ;;  %vm7302_vm11 = vcmp.eq.s32.totalorder %v7673_v38, %v5402_v11  ;;  %v6039_v36 = vsel %vm1840_vm8, 1.0, %v7618_v46 }
 0x21b   :  { %v6015_v17 = vsel %vm7671_vm4, 1.0, %v7618_v46  ;;  %vm3044_vm14 = vmpackc.low %vm7672_vm3, %vm1848_vm9  ;;  %vm7674_vm4 = vcmp.eq.s32.totalorder %v7637_v7, %v5402_v11  ;;  %7675 = vst [vmem:[#allocation32_spill] sm:$0xff] %v6039_v36  ;;  %vm7676_vm3 = vcmp.eq.s32.totalorder %v7656_v39, %v5181_v19  ;;  %vm7677_vm7 = vcmp.eq.s32.totalorder %v7623_v0, %v5181_v19 }
 0x21c   :  { %v6033_v49 = vsel %vm7674_vm4, 1.0, %v7618_v46  ;;  %3045 = vmatprep.subr.msk.bf16.mxu0 %vm3044_vm14, %v7668_v61  ;;  %vm3046_vm5 = vmpackc.low %vm7677_vm7, %vm7676_vm3  ;;  %vm7303_vm6 = vcmp.eq.s32.totalorder %v7678_v20, %v5402_v11  ;;  %vm7679_vm4 = vcmp.eq.s32.totalorder %v7614_v21, %v5289_v5  ;;  %vm1814_vm14 = vcmp.eq.s32.totalorder %v7616_v30, %v5797_v32 }
 0x21d   :  { %vm3082_vm8 = vmpackc.low %vm7679_vm4, %vm1793_vm12  ;;  %v2348_v25 = vadd.f32 %v2767_v8, %v5555_v35  ;;  %v6063_v36 = vsel %vm1848_vm9, 1.0, %v7618_v46  ;;  %v6069_v16 = vsel %vm1856_vm15, 1.0, %v7618_v46  ;;  %vm1822_vm9 = vcmp.eq.s32.totalorder %v7617_v1, %v5797_v32  ;;  %3047 = vmatpush1.bf16.msk.msra.mxu0 %vm3046_vm5, %v7668_v61 }
 0x21e   :  { %7680 = vst [vmem:[#allocation49_spill] sm:$0xff] %v6069_v16  ;;  %3083 = vmatpush1.bf16.msk.msra.mxu1 %vm3082_vm8, %v7668_v61  ;;  %vm3084_vm3 = vmpackc.low %vm1806_vm1, %vm7304_vm13  ;;  %v6089_v21 = vsel %vm1864_vm10, 1.0, %v7618_v46  ;;  %v6095_v35 = vsel %vm1872_vm0, 1.0, %v7618_v46  ;;  %v6101_v8 = vsel %vm7302_vm11, 1.0, %v7618_v46  ;;  %vm1810_vm5 = vcmp.eq.s32.totalorder %v7633_v60, %v5797_v32 }
 0x21f   :  { %7681 = vst [vmem:[#allocation37_spill] sm:$0xff] %v6089_v21  ;;  %7682 = vst [vmem:[#allocation51_spill] sm:$0xff] %v6095_v35  ;;  %3085 = vmatprep.subr.msk.bf16.mxu1 %vm3084_vm3, %v7668_v61  ;;  %2349 = vadd.xlane.f32.xlu1 %v2348_v25  ;;  %vm1818_vm4 = vcmp.eq.s32.totalorder %v7634_v26, %v5797_v32  ;;  %vm7684_vm8 = vcmp.eq.s32.totalorder %v7625_v13, %v5402_v11  ;;  %v7686_v35 = vld [vmem:[#allocation17_spill] sm:$0xff]  ;;  %v2775_v25 = vsel %vm1806_vm1, 1.0, %v7618_v46 }
 0x220   :  { %7683 = vst [vmem:[#allocation54_spill] sm:$0xff] %v6101_v8  ;;  %vm3048_vm7 = vmpackc.low %vm7684_vm8, %vm1856_vm15  ;;  %v6118_v8 = vsel %vm7303_vm6, 1.0, %v7618_v46  ;;  %vm7307_vm3 = vcmp.eq.s32.totalorder %v7686_v35, %v5402_v11  ;;  %vm1830_vm15 = vcmp.eq.s32.totalorder %v7620_v33, %v5797_v32  ;;  %v2783_v21 = vsel %vm1814_vm14, 1.0, %v7618_v46 }
 0x221   :  { %7685 = vst [vmem:[#allocation40_spill] sm:$0xff] %v6118_v8  ;;  %vm1833_vm8 = vcmp.eq.s32.totalorder %v7637_v7, %v5289_v5  ;;  %3049 = vmatprep.subr.msk.bf16.mxu0 %vm3048_vm7, %v7668_v61  ;;  %vm7687_vm1 = vcmp.eq.s32.totalorder %v7625_v13, %v5181_v19  ;;  %vm7688_vm11 = vcmp.eq.s32.totalorder %v7632_v59, %v5289_v5  ;;  %v2791_v13 = vsel %vm1822_vm9, 1.0, %v7618_v46 }
 0x222   :  { %vm3050_vm6 = vmpackc.low %vm7687_vm1, %vm7306_vm2  ;;  %vm7689_vm12 = vcmp.eq.s32.totalorder %v7615_v57, %v5289_v5  ;;  %v2358_v8 = vadd.f32 %v2775_v25, %v5557_v51  ;;  %v2368_v16 = vadd.f32 %v2783_v21, %v5599_v2  ;;  %vm1838_vm7 = vcmp.eq.s32.totalorder %v7621_v55, %v5797_v32 }
 0x223   :  { %vm3086_vm13 = vmpackc.low %vm7689_vm12, %vm7688_vm11  ;;  %v6169_v57 = vadd.f32 %v2791_v13, %v5608_v40  ;;  %3051 = vmatpush1.bf16.msk.msra.mxu0 %vm3050_vm6, %v7668_v61  ;;  %v6178_v51 = vsel %vm7307_vm3, 1.0, %v7618_v46  ;;  %v6182_v2 = vadd.f32 %v5875_v18, %v5806_v45  ;;  %v6186_v21 = vadd.f32 %v5891_v56, %v5808_v37 }
 0x224   :  { %3087 = vmatpush1.bf16.msk.msra.mxu1 %vm3086_vm13, %v7668_v61  ;;  %vm3088_vm11 = vmpackc.low %vm1814_vm14, %vm1810_vm5  ;;  %2359 = vadd.xlane.f32.xlu1 %v2358_v8  ;;  %vm7308_vm13 = vcmp.eq.s32.totalorder %v7622_v54, %v5797_v32  ;;  %v2799_v13 = vsel %vm1830_vm15, 1.0, %v7618_v46  ;;  %v2327_v40 = vadd.f32 %v5897_v28, %v5810_v15  ;;  %v2332_v45 = vadd.f32 %v5903_v50, %v5822_v23 }
 0x225   :  { %3089 = vmatprep.subr.msk.bf16.mxu1 %vm3088_vm11, %v7668_v61  ;;  %vm7690_vm11 = vcmp.eq.s32.totalorder %v7626_v43, %v5402_v11  ;;  %v6210_v37 = vadd.f32 %v2799_v13, %v5646_v63  ;;  %vm7691_vm14 = vcmp.eq.s32.totalorder %v7666_v44, %v5181_v19  ;;  %vm7693_vm2 = vcmp.eq.s32.totalorder %v7624_v48, %v5797_v32 }
 0x226   :  { %vm3052_vm3 = vmpackc.low %vm7690_vm11, %vm1864_vm10  ;;  %vm7692_vm10 = vcmp.eq.s32.totalorder %v7626_v43, %v5181_v19  ;;  %v2751_v15 = vsel %vm7693_vm2, 1.0, %v7618_v46  ;;  %vm7694_vm12 = vcmp.eq.s32.totalorder %v7629_v42, %v5797_v32  ;;  %vm7696_vm6 = vcmp.eq.s32.totalorder %v7616_v30, %v5289_v5 }
 0x227   :  { %3053 = vmatprep.subr.msk.bf16.mxu0 %vm3052_vm3, %v7668_v61  ;;  %vm3054_vm11 = vmpackc.low %vm7692_vm10, %vm7691_vm14  ;;  %v2755_v63 = vsel %vm7694_vm12, 1.0, %v7618_v46  ;;  %vm7695_vm3 = vcmp.eq.s32.totalorder %v7633_v60, %v5289_v5  ;;  %v2807_v23 = vsel %vm1838_vm7, 1.0, %v7618_v46  ;;  %vm1857_vm2 = vcmp.eq.s32.totalorder %v7658_v12, %v5289_v5 }
 0x228   :  { %vm3090_vm1 = vmpackc.low %vm7696_vm6, %vm7695_vm3  ;;  %vm1887_vm14 = vcmp.eq.s32.totalorder %v7678_v20, %v5181_v19  ;;  %v6243_v48 = vadd.f32 %v2751_v15, %v2327_v40  ;;  %v6245_v42 = vadd.f32 %v2755_v63, %v2332_v45  ;;  %v2342_v18 = vadd.f32 %v5909_v29, %v5824_v10  ;;  %3055 = vmatpush1.bf16.msk.msra.mxu0 %vm3054_vm11, %v7668_v61 }
 0x229   :  { %3091 = vmatpush1.bf16.msk.msra.mxu1 %vm3090_vm1, %v7668_v61  ;;  %vm3092_vm12 = vmpackc.low %vm1822_vm9, %vm1818_vm4  ;;  %v6257_v30 = vadd.f32 %v2807_v23, %v5664_v41  ;;  %vm1858_vm6 = vcmp.eq.s32.totalorder %v7658_v12, %v5797_v32  ;;  %v2815_v10 = vsel %vm7308_vm13, 1.0, %v7618_v46  ;;  %vm1865_vm1 = vcmp.eq.s32.totalorder %v7666_v44, %v5289_v5  ;;  %2369 = vadd.xlane.f32.xlu1 %v2368_v16 }
 0x22a   :  { %vm7697_vm9 = vcmp.eq.s32.totalorder %v7630_v58, %v5797_v32  ;;  %v2352_v41 = vadd.f32 %v5926_v6, %v5826_v53  ;;  %3093 = vmatprep.subr.msk.bf16.mxu1 %vm3092_vm12, %v7668_v61  ;;  %vm7698_vm11 = vcmp.eq.s32.totalorder %v7627_v62, %v5402_v11  ;;  %v2361_v16 = vadd.f32 %v5970_v9, %v5932_v4 }
 0x22b   :  { %v2763_v56 = vsel %vm7697_vm9, 1.0, %v7618_v46  ;;  %vm3056_vm3 = vmpackc.low %vm7698_vm11, %vm1872_vm0  ;;  %vm7699_vm9 = vcmp.eq.s32.totalorder %v7632_v59, %v5797_v32  ;;  %v2371_v53 = vadd.f32 %v5997_v3, %v5957_v24  ;;  %v6294_v50 = vadd.f32 %v2815_v10, %v5706_v34  ;;  %v7724_v10 = vld [vmem:[#allocation144_spill] sm:$0xff] }
 0x22c   :  { %v6283_v28 = vadd.f32 %v2763_v56, %v2342_v18  ;;  %v2771_v58 = vsel %vm7699_vm9, 1.0, %v7618_v46  ;;  %3057 = vmatprep.subr.msk.bf16.mxu0 %vm3056_vm3, %v7668_v61  ;;  %vm7700_vm0 = vcmp.eq.s32.totalorder %v7670_v14, %v5181_v19  ;;  %vm7701_vm12 = vcmp.eq.s32.totalorder %v7627_v62, %v5181_v19  ;;  %v7726_v56 = vld [vmem:[#allocation36_spill] sm:$0xff] }
 0x22d   :  { %vm3058_vm11 = vmpackc.low %vm7701_vm12, %vm7700_vm0  ;;  %v6305_v59 = vadd.f32 %v2771_v58, %v2352_v41  ;;  %v2779_v34 = vsel %vm1810_vm5, 1.0, %v7618_v46  ;;  %v2381_v29 = vadd.f32 %v6015_v17, %v5984_v47  ;;  %vm7702_vm3 = vcmp.eq.s32.totalorder %v7634_v26, %v5289_v5  ;;  %2379 = vadd.xlane.f32.xlu1 %v6169_v57  ;;  %v7709_v26 = vld [vmem:[#allocation31_spill] sm:$0xff]  ;;  %v7714_v57 = vld [vmem:[#allocation32_spill] sm:$0xff] }
 0x22e   :  { %vm7703_vm10 = vcmp.eq.s32.totalorder %v7617_v1, %v5289_v5  ;;  %vm1874_vm12 = vcmp.eq.s32.totalorder %v7670_v14, %v5797_v32  ;;  %v2362_v6 = vadd.f32 %v5951_v27, %v2361_v16  ;;  %v2372_v60 = vadd.f32 %v5978_v52, %v2371_v53  ;;  %3059 = vmatpush1.bf16.msk.msra.mxu0 %vm3058_vm11, %v7668_v61  ;;  %v7729_v16 = vld [vmem:[#allocation49_spill] sm:$0xff] }
 0x22f   :  { %vm3094_vm0 = vmpackc.low %vm7703_vm10, %vm7702_vm3  ;;  %vm7704_vm5 = vcmp.eq.s32.totalorder %v7636_v31, %v5289_v5  ;;  %vm7705_vm13 = vcmp.eq.s32.totalorder %v7637_v7, %v5181_v19  ;;  %vm7706_vm10 = vcmp.eq.s32.totalorder %v7636_v31, %v5797_v32  ;;  %v2787_v52 = vsel %vm1818_vm4, 1.0, %v7618_v46 }
 0x230   :  { %v2794_v17 = vsel %vm7704_vm5, 1.0, %v7618_v46  ;;  %v2800_v1 = vsel %vm7705_vm13, 1.0, %v7618_v46  ;;  %3095 = vmatpush1.bf16.msk.msra.mxu1 %vm3094_vm0, %v7668_v61  ;;  %vm3096_vm3 = vmpackc.low %vm1830_vm15, %vm7706_vm10  ;;  %vm1895_vm5 = vcmp.eq.s32.totalorder %v7686_v35, %v5181_v19  ;;  %vm7707_vm15 = vcmp.eq.s32.totalorder %v7647_v22, %v5181_v19 }
 0x231   :  { %v2382_v4 = vadd.f32 %v2794_v17, %v2381_v29  ;;  %v2391_v27 = vadd.f32 %v6033_v49, %v2800_v1  ;;  %v2808_v24 = vsel %vm7707_vm15, 1.0, %v7618_v46  ;;  %3097 = vmatprep.subr.msk.bf16.mxu1 %vm3096_vm3, %v7668_v61  ;;  %vm7708_vm11 = vcmp.eq.s32.totalorder %v7673_v38, %v5402_v11  ;;  %vm7711_vm3 = vmmov %vm7706_vm10  ;;  %2389 = vadd.xlane.f32.xlu1 %v6210_v37 }
 0x232   :  { %vm7710_vm4 = vcmp.eq.s32.totalorder %v7709_v26, %v5402_v11  ;;  %v6366_v49 = vadd.f32 %v2779_v34, %v2362_v6  ;;  %v6368_v9 = vadd.f32 %v2787_v52, %v2372_v60  ;;  %v2795_v47 = vsel %vm7711_vm3, 1.0, %v7618_v46  ;;  %v7732_v6 = vld [vmem:[#allocation37_spill] sm:$0xff] }
 0x233   :  { %vm3060_vm0 = vmpackc.low %vm7710_vm4, %vm7708_vm11  ;;  %v2802_v3 = vsel %vm1833_vm8, 1.0, %v7618_v46  ;;  %vm7712_vm15 = vcmp.eq.s32.totalorder %v7673_v38, %v5181_v19  ;;  %vm7713_vm11 = vcmp.eq.s32.totalorder %v7709_v26, %v5181_v19  ;;  %v6387_v8 = vadd.f32 %v2795_v47, %v2382_v4 }
 0x234   :  { %3061 = vmatprep.subr.msk.bf16.mxu0 %vm3060_vm0, %v7668_v61  ;;  %vm3062_vm4 = vmpackc.low %vm7713_vm11, %vm7712_vm15  ;;  %v2392_v25 = vadd.f32 %v2802_v3, %v2391_v27  ;;  %v2401_v13 = vadd.f32 %v7714_v57, %v2808_v24  ;;  %vm7715_vm3 = vcmp.eq.s32.totalorder %v7656_v39, %v5181_v19  ;;  %vm7716_vm0 = vcmp.eq.s32.totalorder %v7636_v31, %v5289_v5  ;;  %v7738_v24 = vld [vmem:[#allocation51_spill] sm:$0xff] }
 0x235   :  { %v2816_v40 = vsel %vm7715_vm3, 1.0, %v7618_v46  ;;  %vm7717_vm13 = vcmp.eq.s32.totalorder %v7620_v33, %v5289_v5  ;;  %vm1890_vm11 = vcmp.eq.s32.totalorder %v7678_v20, %v5797_v32  ;;  %vm7718_vm10 = vcmp.eq.s32.totalorder %v7637_v7, %v5797_v32  ;;  %3063 = vmatpush1.bf16.msk.msra.mxu0 %vm3062_vm4, %v7668_v61  ;;  %2399 = vadd.xlane.f32.xlu1 %v6257_v30 }
 0x236   :  { %vm3098_vm15 = vmpackc.low %vm7717_vm13, %vm7716_vm0  ;;  %v2803_v45 = vsel %vm7718_vm10, 1.0, %v7618_v46  ;;  %vm7719_vm9 = vcmp.eq.s32.totalorder %v7647_v22, %v5289_v5  ;;  %v2411_v63 = vadd.f32 %v6063_v36, %v2816_v40  ;;  %vm7720_vm3 = vcmp.eq.s32.totalorder %v7658_v12, %v5181_v19  ;;  %v7744_v40 = vld [vmem:[#allocation54_spill] sm:$0xff] }
 0x237   :  { %v2810_v15 = vsel %vm7719_vm9, 1.0, %v7618_v46  ;;  %v2824_v33 = vsel %vm7720_vm3, 1.0, %v7618_v46  ;;  %3099 = vmatpush1.bf16.msk.msra.mxu1 %vm3098_vm15, %v7668_v61  ;;  %vm7721_vm13 = vmmov %vm7718_vm10  ;;  %vm1898_vm9 = vcmp.eq.s32.totalorder %v7686_v35, %v5797_v32  ;;  %v6425_v36 = vadd.f32 %v2803_v45, %v2392_v25  ;;  %v7741_v25 = vld [vmem:[#allocation18_spill] sm:$0xff] }
 0x238   :  { %vm3100_vm10 = vmpackc.low %vm1838_vm7, %vm7721_vm13  ;;  %vm7722_vm0 = vcmp.eq.s32.totalorder %v7647_v22, %v5797_v32  ;;  %v2402_v23 = vadd.f32 %v2810_v15, %v2401_v13  ;;  %vm7723_vm15 = vcmp.eq.s32.totalorder %v7656_v39, %v5289_v5  ;;  %vm1862_vm7 = vcmp.eq.s32.totalorder %v7724_v10, %v5797_v32 }
 0x239   :  { %v2811_v31 = vsel %vm7722_vm0, 1.0, %v7618_v46  ;;  %v2818_v18 = vsel %vm7723_vm15, 1.0, %v7618_v46  ;;  %3101 = vmatprep.subr.msk.bf16.mxu1 %vm3100_vm10, %v7668_v61  ;;  %vm7725_vm4 = vcmp.eq.s32.totalorder %v7678_v20, %v5402_v11  ;;  %vm7727_vm3 = vcmp.eq.s32.totalorder %v7726_v56, %v5402_v11  ;;  %2409 = vadd.xlane.f32.xlu1 %v6294_v50 }
 0x23a   :  { %vm3064_vm13 = vmpackc.low %vm7727_vm3, %vm7725_vm4  ;;  %vm7728_vm0 = vcmp.eq.s32.totalorder %v7656_v39, %v5797_v32  ;;  %v2412_v58 = vadd.f32 %v2818_v18, %v2411_v63  ;;  %v2421_v53 = vadd.f32 %v7729_v16, %v2824_v33  ;;  %vm7730_vm10 = vcmp.eq.s32.totalorder %v7666_v44, %v5181_v19 }
 0x23b   :  { %v2819_v41 = vsel %vm7728_vm0, 1.0, %v7618_v46  ;;  %v2832_v37 = vsel %vm7730_vm10, 1.0, %v7618_v46  ;;  %3065 = vmatprep.subr.msk.bf16.mxu0 %vm3064_vm13, %v7668_v61  ;;  %vm7731_vm15 = vcmp.eq.s32.totalorder %v7726_v56, %v5181_v19  ;;  %v6461_v34 = vadd.f32 %v2811_v31, %v2402_v23  ;;  %v7750_v23 = vld [vmem:[#allocation40_spill] sm:$0xff] }
 0x23c   :  { %vm3066_vm4 = vmpackc.low %vm7731_vm15, %vm1887_vm14  ;;  %v2826_v29 = vsel %vm1857_vm2, 1.0, %v7618_v46  ;;  %v2431_v60 = vadd.f32 %v7732_v6, %v2832_v37  ;;  %vm7733_vm3 = vcmp.eq.s32.totalorder %v7670_v14, %v5181_v19  ;;  %vm7734_vm13 = vcmp.eq.s32.totalorder %v7621_v55, %v5289_v5  ;;  %v6583_v6 = vld [vmem:[%s6995_s2 + $0x18] sm:$0xff] }
 0x23d   :  { %v2840_v17 = vsel %vm7733_vm3, 1.0, %v7618_v46  ;;  %vm3102_vm0 = vmpackc.low %vm7734_vm13, %vm1833_vm8  ;;  %v6478_v1 = vadd.f32 %v2819_v41, %v2412_v58  ;;  %v2827_v52 = vsel %vm1858_vm6, 1.0, %v7618_v46  ;;  %v2422_v4 = vadd.f32 %v2826_v29, %v2421_v53  ;;  %3067 = vmatpush1.bf16.msk.msra.mxu0 %vm3066_vm4, %v7668_v61  ;;  %v6567_v58 = vld [vmem:[%s6995_s2] sm:$0xff] }
 0x23e   :  { %v2834_v27 = vsel %vm1865_vm1, 1.0, %v7618_v46  ;;  %3103 = vmatpush1.bf16.msk.msra.mxu1 %vm3102_vm0, %v7668_v61  ;;  %vm7735_vm10 = vcmp.eq.s32.totalorder %v7647_v22, %v5797_v32  ;;  %vm7736_vm8 = vcmp.eq.s32.totalorder %v7622_v54, %v5797_v32  ;;  %vm7737_vm3 = vcmp.eq.s32.totalorder %v7666_v44, %v5797_v32 }
 0x23f   :  { %vm3104_vm15 = vmpackc.low %vm7736_vm8, %vm7735_vm10  ;;  %v2835_v55 = vsel %vm7737_vm3, 1.0, %v7618_v46  ;;  %v2432_v7 = vadd.f32 %v2834_v27, %v2431_v60  ;;  %v2441_v47 = vadd.f32 %v7738_v24, %v2840_v17  ;;  %vm7739_vm13 = vcmp.eq.s32.totalorder %v7673_v38, %v5181_v19 }
 0x240   :  { %v2848_v3 = vsel %vm7739_vm13, 1.0, %v7618_v46  ;;  %3105 = vmatprep.subr.msk.bf16.mxu1 %vm3104_vm15, %v7668_v61  ;;  %vm7740_vm4 = vcmp.eq.s32.totalorder %v7686_v35, %v5402_v11  ;;  %vm7742_vm0 = vcmp.eq.s32.totalorder %v7741_v25, %v5402_v11  ;;  %v6513_v57 = vadd.f32 %v2827_v52, %v2422_v4  ;;  %v7756_v4 = vld [vmem:[#allocation38_spill] sm:$0xff] }
 0x241   :  { %vm3068_vm10 = vmpackc.low %vm7742_vm0, %vm7740_vm4  ;;  %vm7743_vm8 = vcmp.eq.s32.totalorder %v7670_v14, %v5289_v5  ;;  %v2451_v45 = vadd.f32 %v7744_v40, %v2848_v3  ;;  %v2856_v30 = vsel %vm1887_vm14, 1.0, %v7618_v46  ;;  %vm7745_vm15 = vcmp.eq.s32.totalorder %v7647_v22, %v5289_v5 }
 0x242   :  { %v2842_v13 = vsel %vm7743_vm8, 1.0, %v7618_v46  ;;  %vm7746_vm3 = vcmp.eq.s32.totalorder %v7622_v54, %v5289_v5  ;;  %3069 = vmatprep.subr.msk.bf16.mxu0 %vm3068_vm10, %v7668_v61  ;;  %v6531_v15 = vadd.f32 %v2835_v55, %v2432_v7  ;;  %v2843_v63 = vsel %vm1874_vm12, 1.0, %v7618_v46  ;;  %v7759_v55 = vld [vmem:[#allocation41_spill] sm:$0xff] }
 0x243   :  { %vm3106_vm13 = vmpackc.low %vm7746_vm3, %vm7745_vm15  ;;  %v2442_v33 = vadd.f32 %v2842_v13, %v2441_v47  ;;  %vm7747_vm14 = vcmp.eq.s32.totalorder %v7673_v38, %v5289_v5  ;;  %vm7748_vm4 = vcmp.eq.s32.totalorder %v7741_v25, %v5181_v19  ;;  %vm7749_vm10 = vcmp.eq.s32.totalorder %v7673_v38, %v5797_v32 }
 0x244   :  { %v2850_v31 = vsel %vm7747_vm14, 1.0, %v7618_v46  ;;  %vm3070_vm0 = vmpackc.low %vm7748_vm4, %vm1895_vm5  ;;  %v2851_v54 = vsel %vm7749_vm10, 1.0, %v7618_v46  ;;  %v2461_v18 = vadd.f32 %v7750_v23, %v2856_v30  ;;  %v2864_v41 = vsel %vm1895_vm5, 1.0, %v7618_v46  ;;  %3107 = vmatpush1.bf16.msk.msra.mxu1 %vm3106_vm13, %v7668_v61  ;;  %v7762_v30 = vld [vmem:[#allocation23_spill] sm:$0xff] }
 0x245   :  { %v2452_v22 = vadd.f32 %v2850_v31, %v2451_v45  ;;  %vm7751_vm8 = vcmp.eq.s32.totalorder %v7656_v39, %v5797_v32  ;;  %vm7752_vm15 = vcmp.eq.s32.totalorder %v7623_v0, %v5797_v32  ;;  %3071 = vmatpush1.bf16.msk.msra.mxu0 %vm3070_vm0, %v7668_v61  ;;  %v6569_v16 = vadd.f32 %v2843_v63, %v2442_v33 }
 0x246   :  { %vm3108_vm3 = vmpackc.low %vm7752_vm15, %vm7751_vm8  ;;  %vm7753_vm5 = vcmp.eq.s32.totalorder %v7678_v20, %v5289_v5  ;;  %v2471_v37 = vadd.f32 %v6178_v51, %v2864_v41  ;;  %v1746_v29 = vcombine.low %v5181_v19, %v5402_v11  ;;  %vm7754_vm13 = vcmp.eq.s32.totalorder %v7686_v35, %v5289_v5 }
 0x247   :  { %v2858_v53 = vsel %vm7753_vm5, 1.0, %v7618_v46  ;;  %3109 = vmatprep.subr.msk.bf16.mxu1 %vm3108_vm3, %v7668_v61  ;;  %v6585_v60 = vadd.f32 %v2851_v54, %v2452_v22  ;;  %v2866_v51 = vsel %vm7754_vm13, 1.0, %v7618_v46  ;;  %v1747_v19 = vcombine.low %v5289_v5, %v5797_v32  ;;  %vm7755_vm14 = vmmov %vm7752_vm15 }
 0x248   :  { %v2462_v17 = vadd.f32 %v2858_v53, %v2461_v18  ;;  %v2823_v11 = vsel %vm7755_vm14, 1.0, %v7618_v46  ;;  %v2859_v50 = vsel %vm1890_vm11, 1.0, %v7618_v46  ;;  %v2472_v52 = vadd.f32 %v2866_v51, %v2471_v37  ;;  %2224 = vmatmul.mubr.f32.vlgmr.msra.gmra.mrb[64].mxu0 %v6567_v58  ;;  %vm3112_vm8 = vmpackc.low %vm1862_vm7, %vm1858_vm6 }
 0x249   :  { %v1754_v27 = vrot.slane %v1746_v29, %v7756_v4  ;;  %vm7757_vm4 = vcmp.eq.s32.totalorder %v7656_v39, %v5289_v5  ;;  %vm7758_vm0 = vcmp.eq.s32.totalorder %v7623_v0, %v5289_v5  ;;  %v2418_v7 = vadd.f32 %v2823_v11, %v7759_v55  ;;  %2229 = vmatprep.mubr.f32.mxu0 %v6583_v6  ;;  %v64_v0 = vld [vmem:[%s6995_s2 + $0x10] sm:$0xff] }
 0x24a   :  { %vm3110_vm10 = vmpackc.low %vm7758_vm0, %vm7757_vm4  ;;  %v6610_v24 = vadd.f32 %v2859_v50, %v2462_v17  ;;  %v2867_v47 = vsel %vm1898_vm9, 1.0, %v7618_v46  ;;  %v1761_v3 = vrot.slane %v1747_v19, %v7756_v4  ;;  %vm1870_vm15 = vcmp.eq.s32.totalorder %v7626_v43, %v5797_v32 }
 0x24b   :  { %3111 = vmatpush1.bf16.msk.msra.mxu1 %vm3110_vm10, %v7668_v61  ;;  %v6628_v39 = vadd.f32 %v2867_v47, %v2472_v52  ;;  %2419 = vadd.xlane.f32.xlu1 %v2418_v7  ;;  %v2831_v40 = vsel %vm1862_vm7, 1.0, %v7618_v46  ;;  %v7760_v45 = vlaneseq  ;;  %vm7761_vm3 = vcmp.eq.s32.totalorder %v7724_v10, %v5289_v5  ;;  %v7765_v10 = vld [vmem:[#allocation44_spill] sm:$0xff] }
 0x24c   :  { %3113 = vmatprep.subr.msk.bf16.mxu1 %vm3112_vm8, %v7668_v61  ;;  %v1762_v13 = vcombine.low %v1754_v27, %v1761_v3  ;;  %vm3114_vm5 = vmpackc.low %vm7761_vm3, %vm1857_vm2  ;;  %v2428_v63 = vadd.f32 %v2831_v40, %v7762_v30  ;;  %2230 = vmatmul.mubr.f32.gmra.mrb[66].mxu0 %v64_v0  ;;  %vm7763_vm13 = vcmp.eq.s32.totalorder %v7666_v44, %v5797_v32  ;;  %v2839_v12 = vsel %vm1870_vm15, 1.0, %v7618_v46 }
 0x24d   :  { %vm1772_vm6 = vcmp.lt.s32.totalorder %v7760_v45, 512  ;;  %vm3116_vm7 = vmpackc.low %vm1870_vm15, %vm7763_vm13  ;;  %vm1878_vm14 = vcmp.eq.s32.totalorder %v7627_v62, %v5797_v32  ;;  %vm7764_vm2 = vcmp.eq.s32.totalorder %v7626_v43, %v5289_v5  ;;  %v2438_v31 = vadd.f32 %v2839_v12, %v7765_v10  ;;  %v7768_v43 = vld [vmem:[#allocation27_spill] sm:$0xff]  ;;  %v3157_v10 = vld [vmem:[%s6993_s0 + $0x8] sm:$0xff] }
 0x24e   :  { %v1769_v33 = vrot.slane %v1762_v13, %v7756_v4  ;;  %vm3118_vm4 = vmpackc.low %vm7764_vm2, %vm1865_vm1  ;;  %vm1886_vm10 = vcmp.eq.s32.totalorder %v7709_v26, %v5797_v32  ;;  %v2847_v44 = vsel %vm1878_vm14, 1.0, %v7618_v46  ;;  %vm7766_vm8 = vcmp.eq.s32.totalorder %v7670_v14, %v5289_v5 }
 0x24f   :  { %3115 = vmatpush1.bf16.msk.msra.mxu1 %vm3114_vm5, %v7668_v61  ;;  %2429 = vadd.xlane.f32.xlu1 %v2428_v63  ;;  %vm3120_vm0 = vmpackc.low %vm1878_vm14, %vm1874_vm12  ;;  %vm7767_vm1 = vcmp.eq.s32.totalorder %v7627_v62, %v5289_v5  ;;  %v2448_v54 = vadd.f32 %v2847_v44, %v7768_v43  ;;  %vm7769_vm12 = vcmp.eq.s32.totalorder %v7673_v38, %v5797_v32  ;;  %v2855_v14 = vsel %vm1886_vm10, 1.0, %v7618_v46  ;;  %v7772_v62 = vld [vmem:[#allocation47_spill] sm:$0xff] }
 0x250   :  { %3117 = vmatprep.subr.msk.bf16.mxu1 %vm3116_vm7, %v7668_v61  ;;  %1774 = vst.msk [vmem:[#allocation2] sm:$0xf] %vm1772_vm6, %v1769_v33  ;;  %vm3122_vm15 = vmpackc.low %vm7767_vm1, %vm7766_vm8  ;;  %vm1894_vm3 = vcmp.eq.s32.totalorder %v7726_v56, %v5797_v32  ;;  %vm7770_vm5 = vcmp.eq.s32.totalorder %v7673_v38, %v5289_v5  ;;  %vm7771_vm13 = vcmp.eq.s32.totalorder %v7709_v26, %v5289_v5  ;;  %v3156_v63 = vld [vmem:[%s6993_s0] sm:$0xff] }
 0x251   :  { %vm3124_vm6 = vmpackc.low %vm1886_vm10, %vm7769_vm12  ;;  %v2458_v22 = vadd.f32 %v2855_v14, %v7772_v62  ;;  %vm1902_vm2 = vcmp.eq.s32.totalorder %v7741_v25, %v5797_v32  ;;  %v2863_v38 = vsel %vm1894_vm3, 1.0, %v7618_v46  ;;  %vm7775_vm8 = vcmp.eq.s32.totalorder %v7686_v35, %v5289_v5 }
 0x252   :  { %vm3126_vm7 = vmpackc.low %vm7771_vm13, %vm7770_vm5  ;;  %v2468_v26 = vadd.f32 %v2863_v38, %v6182_v2  ;;  %v2871_v23 = vsel %vm1902_vm2, 1.0, %v7618_v46  ;;  %vm7776_vm1 = vcmp.eq.s32.totalorder %v7741_v25, %v5289_v5  ;;  %v6723_v32 = vand.u32 127, %v7760_v45  ;;  %v3158_v38 = vld [vmem:[%s6993_s0 + $0x10] sm:$0xff] }
 0x253   :  { %3119 = vmatpush1.bf16.msk.msra.mxu1 %vm3118_vm4, %v7668_v61  ;;  %2439 = vadd.xlane.f32.xlu1 %v2438_v31  ;;  %vm3128_vm14 = vmpackc.low %vm1894_vm3, %vm1890_vm11  ;;  %vm7773_vm4 = vcmp.eq.s32.totalorder %v7678_v20, %v5289_v5  ;;  %v2478_v20 = vadd.f32 %v2871_v23, %v6186_v21  ;;  %vm2613_vm12 = vcmask 15360  }
 0x254   :  { %3121 = vmatprep.subr.msk.bf16.mxu1 %vm3120_vm0, %v7668_v61  ;;  %vm7774_vm0 = vcmp.eq.s32.totalorder %v7726_v56, %v5289_v5  ;;  %vm3132_vm11 = vmpackc.low %vm1902_vm2, %vm1898_vm9  ;;  %vm2580_vm9 = vcmp.eq.s32.totalorder %v6723_v32, 0 }
 0x255   :  { %vm3130_vm10 = vmpackc.low %vm7774_vm0, %vm7773_vm4 }
 0x257   :  { %3123 = vmatpush1.bf16.msk.msra.mxu1 %vm3122_vm15, %v7668_v61  ;;  %2449 = vadd.xlane.f32.xlu1 %v2448_v54  ;;  %vm3134_vm15 = vmpackc.low %vm7776_vm1, %vm7775_vm8 }
 0x258   :  { %3125 = vmatprep.subr.msk.bf16.mxu1 %vm3124_vm6, %v7668_v61 }
 0x25b   :  { %3127 = vmatpush1.bf16.msk.msra.mxu1 %vm3126_vm7, %v7668_v61  ;;  %2459 = vadd.xlane.f32.xlu1 %v2458_v22 }
 0x25c   :  { %3129 = vmatprep.subr.msk.bf16.mxu1 %vm3128_vm14, %v7668_v61 }
 0x25f   :  { %3131 = vmatpush1.bf16.msk.msra.mxu1 %vm3130_vm10, %v7668_v61  ;;  %2469 = vadd.xlane.f32.xlu1 %v2468_v26 }
 0x260   :  { %3133 = vmatprep.subr.msk.bf16.mxu1 %vm3132_vm11, %v7668_v61 }
 0x263   :  { %3135 = vmatpush1.bf16.msk.msra.mxu1 %vm3134_vm15, %v7668_v61  ;;  %2479 = vadd.xlane.f32.xlu1 %v2478_v20  ;;  %v3159_v20 = vld [vmem:[%s6993_s0 + $0x20] sm:$0xff] }
 0x266   :  { %2301 = vmatmul.mubr.f32.vlgmr.msra.gmra.mrb[64].mxu1 %v6567_v58 }
 0x267   :  { %2306 = vmatprep.mubr.f32.mxu1 %v6583_v6 }
 0x26a   :  { %2307 = vmatmul.mubr.f32.gmra.mrb[66].mxu1 %v64_v0 }
 0x2a0   :  { %v6725_v46 = vpop.xlane.xlu1 %2324 }
 0x2a6   :  { %v2340_v5 = vpop.xlane.xlu1 %2339 }
 0x2a7   :  { %v2584_v35 = vsel %vm2580_vm9, %v2340_v5, 0.0 }
 0x2a8   :  { %2617 = vst.msk [vmem:[%s6999_s6 + $0x18] sm:$0xff] %vm2613_vm12, %v2584_v35  ;;  %v3160_v35 = vld [vmem:[%s6993_s0 + $0x18] sm:$0xff] }
 0x2ac   :  { %v2350_v61 = vpop.xlane.xlu1 %2349 }
 0x2ad   :  { %v2586_v2 = vsel %vm2580_vm9, %v2350_v61, 0.0 }
 0x2ae   :  { %2619 = vst.msk [vmem:[%s6999_s6 + $0x28] sm:$0xff] %vm2613_vm12, %v2586_v2 }
 0x2b1   :  { %v2360_v21 = vpop.xlane.xlu1 %2359 }
 0x2b2   :  { %v2588_v56 = vsel %vm2580_vm9, %v2360_v21, 0.0  ;;  %v3161_v21 = vld [vmem:[%s6993_s0 + $0x28] sm:$0xff] }
 0x2b3   :  { %2621 = vst.msk [vmem:[%s6999_s6 + $0x38] sm:$0xff] %vm2613_vm12, %v2588_v56 }
 0x2b6   :  { %v2370_v25 = vpop.xlane.xlu1 %2369 }
 0x2b7   :  { %v2590_v18 = vsel %vm2580_vm9, %v2370_v25, 0.0 }
 0x2b8   :  { %2623 = vst.msk [vmem:[%s6999_s6 + $0x48] sm:$0xff] %vm2613_vm12, %v2590_v18 }
 0x2ba   :  { %v2380_v41 = vpop.xlane.xlu1 %2379 }
 0x2bb   :  { %v2592_v58 = vsel %vm2580_vm9, %v2380_v41, 0.0 }
 0x2bc   :  { %2625 = vst.msk [vmem:[%s6999_s6 + $0x58] sm:$0xff] %vm2613_vm12, %v2592_v58 }
 0x2be   :  { %v2390_v53 = vpop.xlane.xlu1 %2389 }
 0x2bf   :  { %v2594_v37 = vsel %vm2580_vm9, %v2390_v53, 0.0  ;;  %v3162_v53 = vld [vmem:[%s6993_s0 + $0x30] sm:$0xff] }
 0x2c0   :  { %2627 = vst.msk [vmem:[%s6999_s6 + $0x68] sm:$0xff] %vm2613_vm12, %v2594_v37 }
 0x2c2   :  { %v2400_v29 = vpop.xlane.xlu1 %2399 }
 0x2c3   :  { %v2596_v6 = vsel %vm2580_vm9, %v2400_v29, 0.0 }
 0x2c4   :  { %2629 = vst.msk [vmem:[%s6999_s6 + $0x78] sm:$0xff] %vm2613_vm12, %v2596_v6 }
 0x2c6   :  { %v2410_v17 = vpop.xlane.xlu1 %2409 }
 0x2c7   :  { %v2598_v51 = vsel %vm2580_vm9, %v2410_v17, 0.0 }
 0x2c8   :  { %2631 = vst.msk [vmem:[%s6999_s6 + $0x88] sm:$0xff] %vm2613_vm12, %v2598_v51 }
 0x2d8   :  { %v2420_v19 = vpop.xlane.xlu1 %2419 }
 0x2d9   :  { %v2600_v11 = vsel %vm2580_vm9, %v2420_v19, 0.0 }
 0x2da   :  { %2633 = vst.msk [vmem:[%s6999_s6 + $0x98] sm:$0xff] %vm2613_vm12, %v2600_v11  ;;  %v3163_v11 = vld [vmem:[%s6993_s0 + $0x38] sm:$0xff]  ;;  %s3216_s0 = smov [#allocation2]  }
 0x2db   :  { %s2652_s1 = sshll.u32 %s3216_s0, 4  ;;  %s2653_s1 = int_to_ptr.vmem [resolvable:$true] %s2652_s1 }
 0x2dc   :  { %v2430_v50 = vpop.xlane.xlu1 %2429  ;;  %s3164_s21 = scalar_lea.vmem %s2653_s1, 64  ;;  %p3169_p1 = scmp.lt.s32.totalorder %s2653_s1, %s2653_s1 }
 0x2dd   :  { %v2602_v52 = vsel %vm2580_vm9, %v2430_v50, 0.0  ;;  %p3165_p0 = scmp.ne.s32.totalorder %s2653_s1, %s3164_s21  ;;  %p3170_p2 = scmp.lt.s32.totalorder %s3164_s21, %s3164_s21 }
 0x2de   :  { %2635 = vst.msk [vmem:[%s6999_s6 + $0xa8] sm:$0xff] %vm2613_vm12, %v2602_v52 }
 0x2df   :  { %p3171_p3 = por %p3170_p2, %p3169_p1 }
 0x2e0   :  { %v2440_v4 = vpop.xlane.xlu1 %2439 }
 0x2e1   :  { %v2604_v27 = vsel %vm2580_vm9, %v2440_v4, 0.0  ;;  %p3172_p4 = pnand %p3171_p3, %p3165_p0 }
 0x2e2   :  { %2637 = vst.msk [vmem:[%s6999_s6 + $0xb8] sm:$0xff] %vm2613_vm12, %v2604_v27 }
 0x2e4   :  { %v2450_v55 = vpop.xlane.xlu1 %2449 }
 0x2e5   :  { %v2606_v7 = vsel %vm2580_vm9, %v2450_v55, 0.0 }
 0x2e6   :  { %2639 = vst.msk [vmem:[%s6999_s6 + $0xc8] sm:$0xff] %vm2613_vm12, %v2606_v7 }
 0x2e8   :  { %v2460_v47 = vpop.xlane.xlu1 %2459 }
 0x2e9   :  { %v2608_v3 = vsel %vm2580_vm9, %v2460_v47, 0.0 }
 0x2ea   :  { %2641 = vst.msk [vmem:[%s6999_s6 + $0xd8] sm:$0xff] %vm2613_vm12, %v2608_v3 }
 0x2ec   :  { %v2470_v0 = vpop.xlane.xlu1 %2469 }
 0x2ed   :  { %v2610_v13 = vsel %vm2580_vm9, %v2470_v0, 0.0 }
 0x2ee   :  { %2643 = vst.msk [vmem:[%s6999_s6 + $0xe8] sm:$0xff] %vm2613_vm12, %v2610_v13 }
 0x2f0   :  { %v2480_v40 = vpop.xlane.xlu1 %2479 }
 0x2f1   :  { %v2612_v45 = vsel %vm2580_vm9, %v2480_v40, 0.0 }
 0x2f2   :  { %2645 = vst.msk [vmem:[%s6999_s6 + $0xf8] sm:$0xff] %vm2613_vm12, %v2612_v45 }
 0x31b   :  { %v2225_v30 = vpop.f32.mrb[64].mxu0 }
 0x31c   :  { %2313 = vst [vmem:[#allocation4] sm:$0xff] %v2225_v30  ;;  %v2481_v33 = vsub.f32 %v2225_v30, %v3156_v63  ;;  %v2227_v12 = vpop.f32.mrb[65].mxu0 }
 0x31d   :  { %2314 = vst [vmem:[#allocation4 + $0x8] sm:$0xff] %v2227_v12  ;;  %v2482_v31 = vsub.f32 %v2227_v12, %v3157_v10 }
 0x31e   :  { %v2489_v44 = vmul.f32 %v2481_v33, %v2481_v33 }
 0x31f   :  { %v2490_v43 = vmul.f32 %v2482_v31, %v2482_v31  ;;  %v2231_v54 = vpop.f32.mrb[66].mxu0 }
 0x320   :  { %2317 = vst [vmem:[#allocation4 + $0x20] sm:$0xff] %v2231_v54  ;;  %v2233_v14 = vpop.f32.mrb[67].mxu0  ;;  %v2485_v5 = vsub.f32 %v2231_v54, %v3159_v20 }
 0x321   :  { %v2497_v62 = vadd.f32 %v2490_v43, %v2489_v44  ;;  %2318 = vst [vmem:[#allocation4 + $0x28] sm:$0xff] %v2233_v14  ;;  %v2486_v56 = vsub.f32 %v2233_v14, %v3161_v21 }
 0x322   :  { %v2493_v58 = vmul.f32 %v2485_v5, %v2485_v5 }
 0x323   :  { %v2494_v51 = vmul.f32 %v2486_v56, %v2486_v56 }
 0x339   :  { %v2302_v22 = vpop.f32.mrb[64].mxu1 }
 0x33a   :  { %2315 = vst [vmem:[#allocation4 + $0x10] sm:$0xff] %v2302_v22  ;;  %v2483_v26 = vsub.f32 %v2302_v22, %v3158_v38  ;;  %v2304_v23 = vpop.f32.mrb[65].mxu1 }
 0x33b   :  { %2316 = vst [vmem:[#allocation4 + $0x18] sm:$0xff] %v2304_v23  ;;  %v2484_v61 = vsub.f32 %v2304_v23, %v3160_v35 }
 0x33c   :  { %v2491_v2 = vmul.f32 %v2483_v26, %v2483_v26 }
 0x33d   :  { %v2308_v25 = vpop.f32.mrb[66].mxu1  ;;  %v2492_v41 = vmul.f32 %v2484_v61, %v2484_v61 }
 0x33e   :  { %v2498_v18 = vadd.f32 %v2497_v62, %v2491_v2  ;;  %2319 = vst [vmem:[#allocation4 + $0x30] sm:$0xff] %v2308_v25  ;;  %v2487_v37 = vsub.f32 %v2308_v25, %v3162_v53  ;;  %v2310_v29 = vpop.f32.mrb[67].mxu1 }
 0x33f   :  { %2320 = vst [vmem:[#allocation4 + $0x38] sm:$0xff] %v2310_v29  ;;  %v2488_v50 = vsub.f32 %v2310_v29, %v3163_v11 }
 0x340   :  { %v2499_v6 = vadd.f32 %v2498_v18, %v2492_v41  ;;  %v2495_v19 = vmul.f32 %v2487_v37, %v2487_v37 }
 0x341   :  { %v2496_v4 = vmul.f32 %v2488_v50, %v2488_v50 }
 0x342   :  { %v2500_v17 = vadd.f32 %v2499_v6, %v2493_v58 }
 0x344   :  { %v2501_v52 = vadd.f32 %v2500_v17, %v2494_v51 }
 0x346   :  { %v2502_v27 = vadd.f32 %v2501_v52, %v2495_v19 }
 0x348   :  { %v2503_v55 = vadd.f32 %v2502_v27, %v2496_v4 }
 0x34a   :  { %2504 = vadd.xlane.f32.xlu0 %v2503_v55 }
 0x34e   :  { %2329 = vadd.xlane.f32.xlu0 %v6243_v48 }
 0x352   :  { %2334 = vadd.xlane.f32.xlu0 %v6245_v42 }
 0x356   :  { %2344 = vadd.xlane.f32.xlu0 %v6283_v28 }
 0x35a   :  { %2354 = vadd.xlane.f32.xlu0 %v6305_v59 }
 0x35e   :  { %2364 = vadd.xlane.f32.xlu0 %v6366_v49 }
 0x362   :  { %2374 = vadd.xlane.f32.xlu0 %v6368_v9 }
 0x366   :  { %2384 = vadd.xlane.f32.xlu0 %v6387_v8 }
 0x36a   :  { %2394 = vadd.xlane.f32.xlu0 %v6425_v36 }
 0x36e   :  { %2404 = vadd.xlane.f32.xlu0 %v6461_v34 }
 0x372   :  { %2414 = vadd.xlane.f32.xlu0 %v6478_v1 }
 0x376   :  { %2424 = vadd.xlane.f32.xlu0 %v6513_v57 }
 0x37a   :  { %2434 = vadd.xlane.f32.xlu0 %v6531_v15 }
 0x37e   :  { %2444 = vadd.xlane.f32.xlu0 %v6569_v16 }
 0x382   :  { %2454 = vadd.xlane.f32.xlu0 %v6585_v60 }
 0x386   :  { %2464 = vadd.xlane.f32.xlu0 %v6610_v24 }
 0x38a   :  { %2474 = vadd.xlane.f32.xlu0 %v6628_v39 }
 0x38b   :  { %3175 = shalt.err (!%p3172_p4)
}
 0x38c   :  { %s3176_s24 = scalar_lea.hbm %s6997_s4, 64 }
 0x38d   :  { %p3177_p5 = scmp.ne.s32.totalorder %s6997_s4, %s3176_s24  ;;  %p3180_p6 = scmp.lt.u32.totalorder %s3176_s24, %s6997_s4 }
 0x38f   :  { %p3182_p7 = pnand %p3180_p6, %p3177_p5 }
 0x391   :  { %3185 = shalt.err (!%p3182_p7)
}
 0x392   :  { %2655 = dma.vmem_to_hbm [thread:$0]  %s2653_s1, 64, %s6997_s4, [#allocation3]  }
 0x393   :  { %s3186_s30 = scalar_lea.vmem %s6858_s20, 1024  ;;  %p3191_p9 = scmp.lt.s32.totalorder %s6858_s20, %s6858_s20 }
 0x394   :  { %p3187_p8 = scmp.ne.s32.totalorder %s6858_s20, %s3186_s30  ;;  %p3192_p10 = scmp.lt.s32.totalorder %s3186_s30, %s3186_s30 }
 0x396   :  { %p3193_p11 = por %p3192_p10, %p3191_p9 }
 0x398   :  { %p3194_p12 = pnand %p3193_p11, %p3187_p8 }
 0x39a   :  { %3197 = shalt.err (!%p3194_p12)
}
 0x39b   :  { %s3198_s9 = scalar_lea.hbm %s6998_s5, 1024 }
 0x39c   :  { %p3199_p13 = scmp.ne.s32.totalorder %s6998_s5, %s3198_s9  ;;  %p3202_p0 = scmp.lt.u32.totalorder %s3198_s9, %s6998_s5 }
 0x39e   :  { %p3204_p1 = pnand %p3202_p0, %p3199_p13 }
 0x3a0   :  { %3207 = shalt.err (!%p3204_p1)
}
 0x3a1   :  { %s3218_s4 = smov 512   ;;  %s3219_s14 = smov 32   ;;  %v7777_v23 = vld [vmem:[#allocation108_spill] sm:$0xff] }
 0x3a2   :  { %2667 = dma.vmem_to_hbm [thread:$0]  %s6858_s20, 1024, %s6998_s5, [#allocation5], %s3218_s4, %s3218_s4, %s3219_s14   ;;  %vm2513_vm6 = vcmp.eq.s32.totalorder %v7777_v23, 0 }
 0x3d7   :  { %v2505_v48 = vpop.xlane.xlu0 %2504 }
 0x3d8   :  { %v2506_v42 = vrot.slane %v2505_v48, 4 }
 0x3da   :  { %v2507_v28 = vadd.f32 %v2506_v42, %v2505_v48 }
 0x3db   :  { %v2330_v59 = vpop.xlane.xlu0 %2329 }
 0x3dc   :  { %v2508_v49 = vrot.slane %v2507_v28, 2  ;;  %v2582_v9 = vsel %vm2580_vm9, %v2330_v59, 0.0 }
 0x3dd   :  { %2615 = vst.msk [vmem:[%s6999_s6 + $0x8] sm:$0xff] %vm2613_vm12, %v2582_v9 }
 0x3de   :  { %v2509_v8 = vadd.f32 %v2508_v49, %v2507_v28 }
 0x3df   :  { %v2335_v36 = vpop.xlane.xlu0 %2334 }
 0x3e0   :  { %v2583_v34 = vsel %vm2580_vm9, %v2335_v36, 0.0  ;;  %v2510_v1 = vrot.slane %v2509_v8, 1 }
 0x3e1   :  { %2616 = vst.msk [vmem:[%s6999_s6 + $0x10] sm:$0xff] %vm2613_vm12, %v2583_v34 }
 0x3e2   :  { %v2511_v57 = vadd.f32 %v2510_v1, %v2509_v8 }
 0x3e3   :  { %v2345_v15 = vpop.xlane.xlu0 %2344 }
 0x3e4   :  { %v2585_v16 = vsel %vm2580_vm9, %v2345_v15, 0.0  ;;  %3144 = vpush %v2511_v57 }
 0x3e5   :  { %2618 = vst.msk [vmem:[%s6999_s6 + $0x20] sm:$0xff] %vm2613_vm12, %v2585_v16 }
 0x3e7   :  { %v2355_v60 = vpop.xlane.xlu0 %2354 }
 0x3e8   :  { %v2587_v24 = vsel %vm2580_vm9, %v2355_v60, 0.0 }
 0x3e9   :  { %2620 = vst.msk [vmem:[%s6999_s6 + $0x30] sm:$0xff] %vm2613_vm12, %v2587_v24 }
 0x3eb   :  { %v2365_v39 = vpop.xlane.xlu0 %2364 }
 0x3ec   :  { %v2589_v7 = vsel %vm2580_vm9, %v2365_v39, 0.0 }
 0x3ed   :  { %2622 = vst.msk [vmem:[%s6999_s6 + $0x40] sm:$0xff] %vm2613_vm12, %v2589_v7 }
 0x3ef   :  { %v2375_v47 = vpop.xlane.xlu0 %2374 }
 0x3f0   :  { %v2591_v3 = vsel %vm2580_vm9, %v2375_v47, 0.0 }
 0x3f1   :  { %2624 = vst.msk [vmem:[%s6999_s6 + $0x50] sm:$0xff] %vm2613_vm12, %v2591_v3 }
 0x3f3   :  { %v2385_v0 = vpop.xlane.xlu0 %2384 }
 0x3f4   :  { %v2593_v13 = vsel %vm2580_vm9, %v2385_v0, 0.0 }
 0x3f5   :  { %2626 = vst.msk [vmem:[%s6999_s6 + $0x60] sm:$0xff] %vm2613_vm12, %v2593_v13 }
 0x3f7   :  { %v2395_v40 = vpop.xlane.xlu0 %2394 }
 0x3f8   :  { %v2595_v45 = vsel %vm2580_vm9, %v2395_v40, 0.0 }
 0x3f9   :  { %2628 = vst.msk [vmem:[%s6999_s6 + $0x70] sm:$0xff] %vm2613_vm12, %v2595_v45 }
 0x3fb   :  { %v2405_v30 = vpop.xlane.xlu0 %2404 }
 0x3fc   :  { %v2597_v63 = vsel %vm2580_vm9, %v2405_v30, 0.0 }
 0x3fd   :  { %2630 = vst.msk [vmem:[%s6999_s6 + $0x80] sm:$0xff] %vm2613_vm12, %v2597_v63 }
 0x3ff   :  { %v2415_v33 = vpop.xlane.xlu0 %2414 }
 0x400   :  { %v2599_v12 = vsel %vm2580_vm9, %v2415_v33, 0.0 }
 0x401   :  { %2632 = vst.msk [vmem:[%s6999_s6 + $0x90] sm:$0xff] %vm2613_vm12, %v2599_v12 }
 0x403   :  { %v2425_v10 = vpop.xlane.xlu0 %2424 }
 0x404   :  { %v2601_v31 = vsel %vm2580_vm9, %v2425_v10, 0.0 }
 0x405   :  { %2634 = vst.msk [vmem:[%s6999_s6 + $0xa0] sm:$0xff] %vm2613_vm12, %v2601_v31 }
 0x407   :  { %v2435_v44 = vpop.xlane.xlu0 %2434 }
 0x408   :  { %v2603_v43 = vsel %vm2580_vm9, %v2435_v44, 0.0 }
 0x409   :  { %2636 = vst.msk [vmem:[%s6999_s6 + $0xb0] sm:$0xff] %vm2613_vm12, %v2603_v43 }
 0x40b   :  { %v2445_v54 = vpop.xlane.xlu0 %2444 }
 0x40c   :  { %v2605_v14 = vsel %vm2580_vm9, %v2445_v54, 0.0 }
 0x40d   :  { %2638 = vst.msk [vmem:[%s6999_s6 + $0xc0] sm:$0xff] %vm2613_vm12, %v2605_v14 }
 0x40f   :  { %v2455_v62 = vpop.xlane.xlu0 %2454 }
 0x410   :  { %v2607_v22 = vsel %vm2580_vm9, %v2455_v62, 0.0 }
 0x411   :  { %2640 = vst.msk [vmem:[%s6999_s6 + $0xd0] sm:$0xff] %vm2613_vm12, %v2607_v22 }
 0x413   :  { %v2465_v38 = vpop.xlane.xlu0 %2464 }
 0x414   :  { %v2609_v26 = vsel %vm2580_vm9, %v2465_v38, 0.0 }
 0x415   :  { %2642 = vst.msk [vmem:[%s6999_s6 + $0xe0] sm:$0xff] %vm2613_vm12, %v2609_v26  ;;  %s3145_s3 = spop %3144 }
 0x416   :  { %v2545_v20 = vstv %s3145_s3 }
 0x417   :  { %v2546_v5 = vsel %vm2513_vm6, %v2545_v20, 0.0  ;;  %v2475_v35 = vpop.xlane.xlu0 %2474 }
 0x418   :  { %v2581_v61 = vsel %vm2580_vm9, %v6725_v46, %v2546_v5  ;;  %v2611_v2 = vsel %vm2580_vm9, %v2475_v35, 0.0 }
 0x419   :  { %2614 = vst.msk [vmem:[%s6999_s6] sm:$0xff] %vm2613_vm12, %v2581_v61  ;;  %2644 = vst.msk [vmem:[%s6999_s6 + $0xf0] sm:$0xff] %vm2613_vm12, %v2611_v2 }
 0x41a   :  { %3208 = dma.done.wait [#allocation3], 64  }
 0x41b   :  { %3209 = vsyncadd [#allocation3], 4294967232 }
 0x41c   :  { %3210 = dma.done.wait [#allocation5], 1024  }
 0x41d   :  { %3211 = vsyncadd [#allocation5], 4294966272 }
 0x41e   :  { %2678 = vsyncpa [#allocation3], 1 }
 0x41f   :  { %2679 = vsyncpa [#allocation5], 1 }

</bundles_post_ra>
